<compile_context>
chip_gen: v5e
topology: v5e:2x2
jax: 0.10.0
libtpu: 0.0.40
codegen_flags: <defaults>
</compile_context>

<pallas_src>
import functools

import jax
import jax.numpy as jnp
from jax.experimental import pallas as pl
from jax.experimental.pallas import tpu as pltpu

EMB_DIMS = 32                                     # feature_model.emb_dims (small demo size)
PN_DIMS = (3, 64, 64, 64, 128, EMB_DIMS)          # PointNet 1x1-conv stack
HEAD_DIMS = (2 * EMB_DIMS, 1024, 512, 256, 6)     # fc1..fc4

_VMEM_LIMIT = 32 * 1024 * 1024                    # safe on v5e/v6e/v7x
_PN_TILE_TARGET = 2048                            # target points per tile (128-aligned)


def _round_up(x, m):
    return ((x + m - 1) // m) * m


def _cdiv(a, b):
    return -(-a // b)


def _vmem_spec():
    return pl.BlockSpec(memory_space=pltpu.MemorySpace.VMEM)


# ----------------------------------------------------------------------------
# Pallas kernels
# ----------------------------------------------------------------------------
def _pointnet_pool_kernel(x_ref, w1, b1, w2, b2, w3, b3, w4, b4, w5, b5,
                          o_ref, *, n_valid, tile_n):
    """Fused per-point MLP (5 x 1x1 conv + ReLU) and running max over points.

    Channels-first, lane-dense:
      x_ref : (3, tile_n) bf16   one point tile of one cloud (points on lanes)
      w*    : (Cout, Cin) bf16   VMEM-resident across the whole grid
      b*    : (Cout, 1)   f32
      o_ref : (1, 1, EMB) f32    running max accumulator for this cloud
    """
    k = pl.program_id(1)

    @pl.when(k == 0)
    def _init():
        o_ref[...] = jnp.full(o_ref.shape, -jnp.inf, o_ref.dtype)

    # Layer 1 (Cin=3): VPU broadcast-FMA — an MXU dot here would be ~98% padded.
    x = x_ref[...].astype(jnp.float32)                          # (3, tn)
    w1f = w1[...].astype(jnp.float32)                           # (64, 3)
    h = (w1f[:, 0:1] * x[0:1, :]
         + w1f[:, 1:2] * x[1:2, :]
         + w1f[:, 2:3] * x[2:3, :])                             # (64, tn)
    h = jnp.maximum(h + b1[...], 0.0).astype(jnp.bfloat16)

    # Layers 2..4: lane-dense (C, tn) MXU matmuls, f32 accumulation, bias+ReLU.
    for w, b in ((w2, b2), (w3, b3), (w4, b4)):
        h = jnp.maximum(
            jnp.dot(w[...], h, preferred_element_type=jnp.float32) + b[...],
            0.0).astype(jnp.bfloat16)

    # Layer 5: keep f32 for masking / max pooling.
    h = jnp.maximum(
        jnp.dot(w5[...], h, preferred_element_type=jnp.float32) + b5[...],
        0.0)                                                    # (EMB, tn) f32

    def _tile_max(hv):
        return jnp.max(hv, axis=-1)[None, None, :]              # (1, 1, EMB)

    if n_valid % tile_n != 0:
        last = pl.num_programs(1) - 1

        @pl.when(k != last)
        def _update_full():
            o_ref[...] = jnp.maximum(o_ref[...], _tile_max(h))

        @pl.when(k == last)
        def _update_masked():
            # Mask padded points so they never win the max (torch.max semantics).
            cols = k * tile_n + jax.lax.broadcasted_iota(jnp.int32, h.shape, 1)
            hm = jnp.where(cols < n_valid, h, -jnp.inf)
            o_ref[...] = jnp.maximum(o_ref[...], _tile_max(hm))
    else:
        o_ref[...] = jnp.maximum(o_ref[...], _tile_max(h))


def _mlp_head_kernel(y_ref, w1, b1, w2, b2, w3, b3, w4, b4, o_ref):
    """fc1/fc2/fc3 with ReLU, fc4 linear.  y_ref: (B_pad, 2*EMB) -> (B_pad, 6)."""
    h = y_ref[...]
    for w, b in ((w1, b1), (w2, b2), (w3, b3)):
        h = jnp.maximum(
            jnp.dot(h.astype(jnp.bfloat16), w[...],
                    preferred_element_type=jnp.float32) + b[...],
            0.0)
    o_ref[...] = (
        jnp.dot(h.astype(jnp.bfloat16), w4[...],
                preferred_element_type=jnp.float32) + b4[...]
    ).astype(o_ref.dtype)


# ----------------------------------------------------------------------------
# Pallas wrappers
# ----------------------------------------------------------------------------
def pointnet_pool(points, params):
    """points: (BC, N, 3) -> max-pooled per-cloud features (BC, EMB_DIMS)."""
    BC, N, _ = points.shape

    # Channels-first, lane-dense, bf16 streamed input (halves the HBM bytes).
    x = jnp.transpose(points, (0, 2, 1)).astype(jnp.bfloat16)   # (BC, 3, N)

    # 128-aligned tile size targeting ~2048 points/tile; bounds padding waste.
    n_tiles = max(1, _cdiv(N, _PN_TILE_TARGET))
    tn = _round_up(_cdiv(N, n_tiles), 128)
    n_pad = _round_up(N, tn)
    if n_pad != N:
        x = jnp.pad(x, ((0, 0), (0, 0), (0, n_pad - N)))
    num_k = n_pad // tn

    args = [x]
    in_specs = [pl.BlockSpec((None, 3, tn), lambda b, k: (b, 0, k))]
    for w, b in params:
        args += [w, b]
        # Full-array blocks with a constant index_map -> weights stay
        # VMEM-resident; no re-DMA between grid steps.
        in_specs += [pl.BlockSpec(w.shape, lambda b_, k_: (0, 0)),
                     pl.BlockSpec(b.shape, lambda b_, k_: (0, 0))]

    flops = 2 * BC * n_pad * sum(
        PN_DIMS[i] * PN_DIMS[i + 1] for i in range(len(PN_DIMS) - 1))
    weight_bytes = sum(int(w.size) * w.dtype.itemsize + int(b.size) * b.dtype.itemsize
                       for w, b in params)
    bytes_accessed = int(x.size) * x.dtype.itemsize + weight_bytes + BC * EMB_DIMS * 4

    kernel = functools.partial(_pointnet_pool_kernel, n_valid=N, tile_n=tn)
    pooled = pl.pallas_call(
        kernel,
        out_shape=jax.ShapeDtypeStruct((BC, 1, EMB_DIMS), jnp.float32),
        grid=(BC, num_k),
        in_specs=in_specs,
        out_specs=pl.BlockSpec((1, 1, EMB_DIMS), lambda b, k: (b, 0, 0)),
        compiler_params=pltpu.CompilerParams(
            dimension_semantics=("parallel", "arbitrary"),
            vmem_limit_bytes=_VMEM_LIMIT),
        cost_estimate=pl.CostEstimate(
            flops=int(flops), transcendentals=0,
            bytes_accessed=int(bytes_accessed)),
    )(*args)
    return pooled[:, 0, :]


def mlp_head(y, params):
    """y: (B, 2*emb_dims) -> pose_6d (B, 6).  Batch is sublane-padded to 8.

    Review: head is launch/weight-DMA bound at M=8; keep it as one trivial
    whole-array VMEM kernel, no tiling.
    """
    B = y.shape[0]
    b_pad = _round_up(B, 8)
    if b_pad != B:
        y = jnp.pad(y, ((0, b_pad - B), (0, 0)))

    args = [y]
    for w, b in params:
        args += [w, b]

    out = pl.pallas_call(
        _mlp_head_kernel,
        out_shape=jax.ShapeDtypeStruct((b_pad, HEAD_DIMS[-1]), jnp.float32),
        in_specs=[_vmem_spec() for _ in args],
        out_specs=_vmem_spec(),
        compiler_params=pltpu.CompilerParams(vmem_limit_bytes=_VMEM_LIMIT),
    )(*args)
    return out[:B]


# ----------------------------------------------------------------------------
# Pose algebra (plain-JAX glue, tiny 3x3 math)
# ----------------------------------------------------------------------------
def create_pose_6d(pose_6d):
    """pose_6d: (B, 6) -> est_R (B, 3, 3), est_t (B, 1, 3)."""
    # TODO(synk): PCRNetTransform.create_pose_6d's exact rotation parameterization
    # is repo-specific; we use the common PCRNet-6d convention (euler XYZ + t).
    rx, ry, rz = pose_6d[:, 0], pose_6d[:, 1], pose_6d[:, 2]
    est_t = pose_6d[:, 3:6].reshape(-1, 1, 3)
    cx, sx = jnp.cos(rx), jnp.sin(rx)
    cy, sy = jnp.cos(ry), jnp.sin(ry)
    cz, sz = jnp.cos(rz), jnp.sin(rz)
    one, zero = jnp.ones_like(rx), jnp.zeros_like(rx)
    Rx = jnp.stack([one, zero, zero,
                    zero, cx, -sx,
                    zero, sx, cx], axis=-1).reshape(-1, 3, 3)
    Ry = jnp.stack([cy, zero, sy,
                    zero, one, zero,
                    -sy, zero, cy], axis=-1).reshape(-1, 3, 3)
    Rz = jnp.stack([cz, -sz, zero,
                    sz, cz, zero,
                    zero, zero, one], axis=-1).reshape(-1, 3, 3)
    est_R = Rz @ Ry @ Rx
    return est_R, est_t


def convert2transformation(est_R, est_t):
    """est_R: (B,3,3), est_t: (B,1,3) -> (B,4,4) homogeneous transform."""
    B = est_R.shape[0]
    top = jnp.concatenate([est_R, jnp.transpose(est_t, (0, 2, 1))], axis=2)  # (B,3,4)
    bottom = jnp.tile(jnp.array([[[0.0, 0.0, 0.0, 1.0]]], jnp.float32), (B, 1, 1))
    return jnp.concatenate([top, bottom], axis=1)


# ----------------------------------------------------------------------------
# Parameter construction (deterministic, PyTorch-default-like uniform init)
#   PointNet weights: (Cout, Cin) bf16 (channels-first matmuls), bias (Cout, 1) f32
#   Head weights:     (Cin, Cout) bf16, bias (1, Cout) f32
# ----------------------------------------------------------------------------
def _init_linear(key, fan_in, fan_out, *, channels_first=False):
    kw, kb = jax.random.split(key)
    bound = 1.0 / jnp.sqrt(jnp.float32(fan_in))
    if channels_first:
        w = jax.random.uniform(kw, (fan_out, fan_in), jnp.float32, -bound, bound)
        b = jax.random.uniform(kb, (fan_out, 1), jnp.float32, -bound, bound)
    else:
        w = jax.random.uniform(kw, (fan_in, fan_out), jnp.float32, -bound, bound)
        b = jax.random.uniform(kb, (1, fan_out), jnp.float32, -bound, bound)
    return w.astype(jnp.bfloat16), b


def init_params(key):
    n_pn = len(PN_DIMS) - 1
    n_head = len(HEAD_DIMS) - 1
    keys = jax.random.split(key, n_pn + n_head)
    pn_params = [
        _init_linear(keys[i], PN_DIMS[i], PN_DIMS[i + 1], channels_first=True)
        for i in range(n_pn)
    ]
    head_params = [
        _init_linear(keys[n_pn + i], HEAD_DIMS[i], HEAD_DIMS[i + 1])
        for i in range(n_head)
    ]
    return pn_params, head_params


# ----------------------------------------------------------------------------
# DirectnetF forward
# ----------------------------------------------------------------------------
@jax.jit
def directnet_f_forward(template, source, pn_params, head_params):
    # TODO(synk): `feature_model` is a constructor argument in the original; we use a
    # shared PointNet (the standard PCRNet backbone) applied to each cloud.
    B = template.shape[0]

    # One fused PointNet + max-pool pass over both clouds (stacked along batch).
    stacked = jnp.concatenate([template, source], axis=0)     # (2B, N, 3)
    pooled = pointnet_pool(stacked, pn_params)                # (2B, EMB)
    template_pooled, source_pooled = pooled[:B], pooled[B:]

    y = jnp.concatenate([template_pooled, source_pooled], axis=1)  # (B, 2*EMB)
    pose_6d = mlp_head(y, head_params)                         # (B, 6)

    est_R, est_t = create_pose_6d(pose_6d)
    est_T = convert2transformation(est_R, est_t)
    return {"est_R": est_R, "est_t": est_t, "est_T": est_T}


if __name__ == "__main__":
    key = jax.random.PRNGKey(0)
    k_params, k_tmpl, k_src = jax.random.split(key, 3)

    B, N = 2, 16
    template = jax.random.normal(k_tmpl, (B, N, 3), jnp.float32)
    source = jax.random.normal(k_src, (B, N, 3), jnp.float32)

    pn_params, head_params = init_params(k_params)

    out = directnet_f_forward(template, source, pn_params, head_params)
    out = jax.block_until_ready(out)

    assert out["est_R"].shape == (B, 3, 3)
    assert out["est_t"].shape == (B, 1, 3)
    assert out["est_T"].shape == (B, 4, 4)
    assert all(jnp.all(jnp.isfinite(v)) for v in out.values())
    print("KERNEL_OK")
</pallas_src>

<mosaic_0001>
module attributes {stable_mosaic.version = 11 : i64} {
  func.func @_pointnet_pool_kernel(%arg0: i32, %arg1: i32, %arg2: memref<1x3x128xbf16, #tpu.memory_space<vmem>>, %arg3: memref<64x3xbf16, #tpu.memory_space<vmem>>, %arg4: memref<64x1xf32, #tpu.memory_space<vmem>>, %arg5: memref<64x64xbf16, #tpu.memory_space<vmem>>, %arg6: memref<64x1xf32, #tpu.memory_space<vmem>>, %arg7: memref<64x64xbf16, #tpu.memory_space<vmem>>, %arg8: memref<64x1xf32, #tpu.memory_space<vmem>>, %arg9: memref<128x64xbf16, #tpu.memory_space<vmem>>, %arg10: memref<128x1xf32, #tpu.memory_space<vmem>>, %arg11: memref<32x128xbf16, #tpu.memory_space<vmem>>, %arg12: memref<32x1xf32, #tpu.memory_space<vmem>>, %arg13: memref<1x1x32xf32, #tpu.memory_space<vmem>>) attributes {dimension_semantics = [#tpu.dimension_semantics<parallel>, #tpu.dimension_semantics<arbitrary>], iteration_bounds = array<i64: 4, 1>, scalar_prefetch = 0 : i64, scratch_operands = 0 : i64, tpu.core_type = #tpu.core_type<tc>, window_params = [{transform_indices = @transform_0, window_bounds = array<i64: 1, 3, 128>}, {pipeline_mode = #tpu.pipeline_mode<synchronous>, transform_indices = @transform_1, window_bounds = array<i64: 64, 3>}, {pipeline_mode = #tpu.pipeline_mode<synchronous>, transform_indices = @transform_2, window_bounds = array<i64: 64, 1>}, {pipeline_mode = #tpu.pipeline_mode<synchronous>, transform_indices = @transform_3, window_bounds = array<i64: 64, 64>}, {pipeline_mode = #tpu.pipeline_mode<synchronous>, transform_indices = @transform_4, window_bounds = array<i64: 64, 1>}, {pipeline_mode = #tpu.pipeline_mode<synchronous>, transform_indices = @transform_5, window_bounds = array<i64: 64, 64>}, {pipeline_mode = #tpu.pipeline_mode<synchronous>, transform_indices = @transform_6, window_bounds = array<i64: 64, 1>}, {pipeline_mode = #tpu.pipeline_mode<synchronous>, transform_indices = @transform_7, window_bounds = array<i64: 128, 64>}, {pipeline_mode = #tpu.pipeline_mode<synchronous>, transform_indices = @transform_8, window_bounds = array<i64: 128, 1>}, {pipeline_mode = #tpu.pipeline_mode<synchronous>, transform_indices = @transform_9, window_bounds = array<i64: 32, 128>}, {pipeline_mode = #tpu.pipeline_mode<synchronous>, transform_indices = @transform_10, window_bounds = array<i64: 32, 1>}, {transform_indices = @transform_11, window_bounds = array<i64: 1, 1, 32>}]} {
    %c0_i32 = arith.constant 0 : i32
    %0 = arith.cmpi eq, %arg1, %c0_i32 : i32
    %1 = arith.extui %0 : i1 to i32
    %c0_i32_0 = arith.constant 0 : i32
    %2 = arith.cmpi ne, %1, %c0_i32_0 : i32
    scf.if %2 {
      %cst_35 = arith.constant 0xFF800000 : f32
      %68 = vector.broadcast %cst_35 : f32 to vector<1x1x32xf32>
      %c0_36 = arith.constant 0 : index
      %c0_37 = arith.constant 0 : index
      %c0_38 = arith.constant 0 : index
      %69 = vector.load %arg13[%c0_36, %c0_37, %c0_38] : memref<1x1x32xf32, #tpu.memory_space<vmem>>, vector<1x1x32xf32>
      tpu.vector_store %arg13[%c0_36, %c0_37, %c0_38], %68 {strides = array<i32>} : memref<1x1x32xf32, #tpu.memory_space<vmem>>, vector<1x1x32xf32>,
    } else {
    }
    %c0 = arith.constant 0 : index
    %c0_1 = arith.constant 0 : index
    %c0_2 = arith.constant 0 : index
    %3 = vector.load %arg2[%c0, %c0_1, %c0_2] : memref<1x3x128xbf16, #tpu.memory_space<vmem>>, vector<1x3x128xbf16>
    %4 = vector.shape_cast %3 : vector<1x3x128xbf16> to vector<3x128xbf16>
    %5 = arith.extf %4 : vector<3x128xbf16> to vector<3x128xf32>
    %c0_3 = arith.constant 0 : index
    %c0_4 = arith.constant 0 : index
    %6 = vector.load %arg3[%c0_3, %c0_4] : memref<64x3xbf16, #tpu.memory_space<vmem>>, vector<64x3xbf16>
    %7 = arith.extf %6 : vector<64x3xbf16> to vector<64x3xf32>
    %8 = vector.extract_strided_slice %7 {offsets = [0, 0], sizes = [64, 1], strides = [1, 1]} : vector<64x3xf32> to vector<64x1xf32>
    %9 = vector.extract_strided_slice %5 {offsets = [0, 0], sizes = [1, 128], strides = [1, 1]} : vector<3x128xf32> to vector<1x128xf32>
    %10 = vector.broadcast %8 : vector<64x1xf32> to vector<64x128xf32>
    %11 = vector.broadcast %9 : vector<1x128xf32> to vector<64x128xf32>
    %12 = arith.mulf %10, %11 : vector<64x128xf32>
    %13 = vector.extract_strided_slice %7 {offsets = [0, 1], sizes = [64, 1], strides = [1, 1]} : vector<64x3xf32> to vector<64x1xf32>
    %14 = vector.extract_strided_slice %5 {offsets = [1, 0], sizes = [1, 128], strides = [1, 1]} : vector<3x128xf32> to vector<1x128xf32>
    %15 = vector.broadcast %13 : vector<64x1xf32> to vector<64x128xf32>
    %16 = vector.broadcast %14 : vector<1x128xf32> to vector<64x128xf32>
    %17 = arith.mulf %15, %16 : vector<64x128xf32>
    %18 = arith.addf %12, %17 : vector<64x128xf32>
    %19 = vector.extract_strided_slice %7 {offsets = [0, 2], sizes = [64, 1], strides = [1, 1]} : vector<64x3xf32> to vector<64x1xf32>
    %20 = vector.extract_strided_slice %5 {offsets = [2, 0], sizes = [1, 128], strides = [1, 1]} : vector<3x128xf32> to vector<1x128xf32>
    %21 = vector.broadcast %19 : vector<64x1xf32> to vector<64x128xf32>
    %22 = vector.broadcast %20 : vector<1x128xf32> to vector<64x128xf32>
    %23 = arith.mulf %21, %22 : vector<64x128xf32>
    %24 = arith.addf %18, %23 : vector<64x128xf32>
    %c0_5 = arith.constant 0 : index
    %c0_6 = arith.constant 0 : index
    %25 = vector.load %arg4[%c0_5, %c0_6] : memref<64x1xf32, #tpu.memory_space<vmem>>, vector<64x1xf32>
    %26 = vector.broadcast %25 : vector<64x1xf32> to vector<64x128xf32>
    %27 = arith.addf %24, %26 : vector<64x128xf32>
    %cst = arith.constant 0.000000e+00 : f32
    %28 = vector.broadcast %cst : f32 to vector<64x128xf32>
    %29 = arith.maximumf %27, %28 : vector<64x128xf32>
    %30 = arith.truncf %29 : vector<64x128xf32> to vector<64x128xbf16>
    %c0_7 = arith.constant 0 : index
    %c0_8 = arith.constant 0 : index
    %31 = vector.load %arg5[%c0_7, %c0_8] : memref<64x64xbf16, #tpu.memory_space<vmem>>, vector<64x64xbf16>
    %cst_9 = arith.constant dense<0.000000e+00> : vector<64x128xf32>
    %32 = tpu.matmul %31, %30, %cst_9 {dimension_numbers = #tpu.dot_dimension_numbers<[1], [0], [0], [1], [0, 0, 1, 1], [], []>} : vector<64x64xbf16>, vector<64x128xbf16>, vector<64x128xf32> -> vector<64x128xf32>
    %c0_10 = arith.constant 0 : index
    %c0_11 = arith.constant 0 : index
    %33 = vector.load %arg6[%c0_10, %c0_11] : memref<64x1xf32, #tpu.memory_space<vmem>>, vector<64x1xf32>
    %34 = vector.broadcast %33 : vector<64x1xf32> to vector<64x128xf32>
    %35 = arith.addf %32, %34 : vector<64x128xf32>
    %cst_12 = arith.constant 0.000000e+00 : f32
    %36 = vector.broadcast %cst_12 : f32 to vector<64x128xf32>
    %37 = arith.maximumf %35, %36 : vector<64x128xf32>
    %38 = arith.truncf %37 : vector<64x128xf32> to vector<64x128xbf16>
    %c0_13 = arith.constant 0 : index
    %c0_14 = arith.constant 0 : index
    %39 = vector.load %arg7[%c0_13, %c0_14] : memref<64x64xbf16, #tpu.memory_space<vmem>>, vector<64x64xbf16>
    %cst_15 = arith.constant dense<0.000000e+00> : vector<64x128xf32>
    %40 = tpu.matmul %39, %38, %cst_15 {dimension_numbers = #tpu.dot_dimension_numbers<[1], [0], [0], [1], [0, 0, 1, 1], [], []>} : vector<64x64xbf16>, vector<64x128xbf16>, vector<64x128xf32> -> vector<64x128xf32>
    %c0_16 = arith.constant 0 : index
    %c0_17 = arith.constant 0 : index
    %41 = vector.load %arg8[%c0_16, %c0_17] : memref<64x1xf32, #tpu.memory_space<vmem>>, vector<64x1xf32>
    %42 = vector.broadcast %41 : vector<64x1xf32> to vector<64x128xf32>
    %43 = arith.addf %40, %42 : vector<64x128xf32>
    %cst_18 = arith.constant 0.000000e+00 : f32
    %44 = vector.broadcast %cst_18 : f32 to vector<64x128xf32>
    %45 = arith.maximumf %43, %44 : vector<64x128xf32>
    %46 = arith.truncf %45 : vector<64x128xf32> to vector<64x128xbf16>
    %c0_19 = arith.constant 0 : index
    %c0_20 = arith.constant 0 : index
    %47 = vector.load %arg9[%c0_19, %c0_20] : memref<128x64xbf16, #tpu.memory_space<vmem>>, vector<128x64xbf16>
    %cst_21 = arith.constant dense<0.000000e+00> : vector<128x128xf32>
    %48 = tpu.matmul %47, %46, %cst_21 {dimension_numbers = #tpu.dot_dimension_numbers<[1], [0], [0], [1], [0, 0, 1, 1], [], []>} : vector<128x64xbf16>, vector<64x128xbf16>, vector<128x128xf32> -> vector<128x128xf32>
    %c0_22 = arith.constant 0 : index
    %c0_23 = arith.constant 0 : index
    %49 = vector.load %arg10[%c0_22, %c0_23] : memref<128x1xf32, #tpu.memory_space<vmem>>, vector<128x1xf32>
    %50 = vector.broadcast %49 : vector<128x1xf32> to vector<128x128xf32>
    %51 = arith.addf %48, %50 : vector<128x128xf32>
    %cst_24 = arith.constant 0.000000e+00 : f32
    %52 = vector.broadcast %cst_24 : f32 to vector<128x128xf32>
    %53 = arith.maximumf %51, %52 : vector<128x128xf32>
    %54 = arith.truncf %53 : vector<128x128xf32> to vector<128x128xbf16>
    %c0_25 = arith.constant 0 : index
    %c0_26 = arith.constant 0 : index
    %55 = vector.load %arg11[%c0_25, %c0_26] : memref<32x128xbf16, #tpu.memory_space<vmem>>, vector<32x128xbf16>
    %cst_27 = arith.constant dense<0.000000e+00> : vector<32x128xf32>
    %56 = tpu.matmul %55, %54, %cst_27 {dimension_numbers = #tpu.dot_dimension_numbers<[1], [0], [0], [1], [0, 0, 1, 1], [], []>} : vector<32x128xbf16>, vector<128x128xbf16>, vector<32x128xf32> -> vector<32x128xf32>
    %c0_28 = arith.constant 0 : index
    %c0_29 = arith.constant 0 : index
    %57 = vector.load %arg12[%c0_28, %c0_29] : memref<32x1xf32, #tpu.memory_space<vmem>>, vector<32x1xf32>
    %58 = vector.broadcast %57 : vector<32x1xf32> to vector<32x128xf32>
    %59 = arith.addf %56, %58 : vector<32x128xf32>
    %cst_30 = arith.constant 0.000000e+00 : f32
    %60 = vector.broadcast %cst_30 : f32 to vector<32x128xf32>
    %61 = arith.maximumf %59, %60 : vector<32x128xf32>
    %c0_i32_31 = arith.constant 0 : i32
    %62 = arith.cmpi ne, %arg1, %c0_i32_31 : i32
    %63 = arith.extui %62 : i1 to i32
    %c0_i32_32 = arith.constant 0 : i32
    %64 = arith.cmpi ne, %63, %c0_i32_32 : i32
    scf.if %64 {
      %c0_35 = arith.constant 0 : index
      %c0_36 = arith.constant 0 : index
      %c0_37 = arith.constant 0 : index
      %68 = vector.load %arg13[%c0_35, %c0_36, %c0_37] : memref<1x1x32xf32, #tpu.memory_space<vmem>>, vector<1x1x32xf32>
      %cst_38 = arith.constant dense<0xFF800000> : vector<32xf32>
      %69 = vector.multi_reduction <maximumf>, %61, %cst_38 [1] : vector<32x128xf32> to vector<32xf32>
      %70 = vector.shape_cast %69 : vector<32xf32> to vector<1x1x32xf32>
      %71 = arith.maximumf %68, %70 : vector<1x1x32xf32>
      %c0_39 = arith.constant 0 : index
      %c0_40 = arith.constant 0 : index
      %c0_41 = arith.constant 0 : index
      %72 = vector.load %arg13[%c0_39, %c0_40, %c0_41] : memref<1x1x32xf32, #tpu.memory_space<vmem>>, vector<1x1x32xf32>
      tpu.vector_store %arg13[%c0_39, %c0_40, %c0_41], %71 {strides = array<i32>} : memref<1x1x32xf32, #tpu.memory_space<vmem>>, vector<1x1x32xf32>,
    } else {
    }
    %c0_i32_33 = arith.constant 0 : i32
    %65 = arith.cmpi eq, %arg1, %c0_i32_33 : i32
    %66 = arith.extui %65 : i1 to i32
    %c0_i32_34 = arith.constant 0 : i32
    %67 = arith.cmpi ne, %66, %c0_i32_34 : i32
    scf.if %67 {
      %c128_i32 = arith.constant 128 : i32
      %68 = arith.muli %arg1, %c128_i32 : i32
      %69 = tpu.iota {dimensions = array<i32: 1>} : vector<32x128xi32>
      %70 = vector.broadcast %68 : i32 to vector<32x128xi32>
      %71 = arith.addi %70, %69 : vector<32x128xi32>
      %c16_i32 = arith.constant 16 : i32
      %72 = vector.broadcast %c16_i32 : i32 to vector<32x128xi32>
      %73 = arith.cmpi slt, %71, %72 : vector<32x128xi32>
      %cst_35 = arith.constant 0xFF800000 : f32
      %74 = vector.broadcast %cst_35 : f32 to vector<32x128xf32>
      %75 = arith.select %73, %61, %74 : vector<32x128xi1>, vector<32x128xf32>
      %c0_36 = arith.constant 0 : index
      %c0_37 = arith.constant 0 : index
      %c0_38 = arith.constant 0 : index
      %76 = vector.load %arg13[%c0_36, %c0_37, %c0_38] : memref<1x1x32xf32, #tpu.memory_space<vmem>>, vector<1x1x32xf32>
      %cst_39 = arith.constant dense<0xFF800000> : vector<32xf32>
      %77 = vector.multi_reduction <maximumf>, %75, %cst_39 [1] : vector<32x128xf32> to vector<32xf32>
      %78 = vector.shape_cast %77 : vector<32xf32> to vector<1x1x32xf32>
      %79 = arith.maximumf %76, %78 : vector<1x1x32xf32>
      %c0_40 = arith.constant 0 : index
      %c0_41 = arith.constant 0 : index
      %c0_42 = arith.constant 0 : index
      %80 = vector.load %arg13[%c0_40, %c0_41, %c0_42] : memref<1x1x32xf32, #tpu.memory_space<vmem>>, vector<1x1x32xf32>
      tpu.vector_store %arg13[%c0_40, %c0_41, %c0_42], %79 {strides = array<i32>} : memref<1x1x32xf32, #tpu.memory_space<vmem>>, vector<1x1x32xf32>,
    } else {
    }
    return
  }
  func.func @transform_0(%arg0: i32, %arg1: i32) -> (i32, i32, i32) {
    %c0_i32 = arith.constant 0 : i32
    %c0_i32_0 = arith.constant 0 : i32
    return %arg0, %c0_i32, %arg1 : i32, i32, i32
  }
  func.func @transform_1(%arg0: i32, %arg1: i32) -> (i32, i32) {
    %c0_i32 = arith.constant 0 : i32
    %c0_i32_0 = arith.constant 0 : i32
    %c0_i32_1 = arith.constant 0 : i32
    return %c0_i32, %c0_i32_0 : i32, i32
  }
  func.func @transform_2(%arg0: i32, %arg1: i32) -> (i32, i32) {
    %c0_i32 = arith.constant 0 : i32
    %c0_i32_0 = arith.constant 0 : i32
    %c0_i32_1 = arith.constant 0 : i32
    return %c0_i32, %c0_i32_0 : i32, i32
  }
  func.func @transform_3(%arg0: i32, %arg1: i32) -> (i32, i32) {
    %c0_i32 = arith.constant 0 : i32
    %c0_i32_0 = arith.constant 0 : i32
    %c0_i32_1 = arith.constant 0 : i32
    return %c0_i32, %c0_i32_0 : i32, i32
  }
  func.func @transform_4(%arg0: i32, %arg1: i32) -> (i32, i32) {
    %c0_i32 = arith.constant 0 : i32
    %c0_i32_0 = arith.constant 0 : i32
    %c0_i32_1 = arith.constant 0 : i32
    return %c0_i32, %c0_i32_0 : i32, i32
  }
  func.func @transform_5(%arg0: i32, %arg1: i32) -> (i32, i32) {
    %c0_i32 = arith.constant 0 : i32
    %c0_i32_0 = arith.constant 0 : i32
    %c0_i32_1 = arith.constant 0 : i32
    return %c0_i32, %c0_i32_0 : i32, i32
  }
  func.func @transform_6(%arg0: i32, %arg1: i32) -> (i32, i32) {
    %c0_i32 = arith.constant 0 : i32
    %c0_i32_0 = arith.constant 0 : i32
    %c0_i32_1 = arith.constant 0 : i32
    return %c0_i32, %c0_i32_0 : i32, i32
  }
  func.func @transform_7(%arg0: i32, %arg1: i32) -> (i32, i32) {
    %c0_i32 = arith.constant 0 : i32
    %c0_i32_0 = arith.constant 0 : i32
    %c0_i32_1 = arith.constant 0 : i32
    return %c0_i32, %c0_i32_0 : i32, i32
  }
  func.func @transform_8(%arg0: i32, %arg1: i32) -> (i32, i32) {
    %c0_i32 = arith.constant 0 : i32
    %c0_i32_0 = arith.constant 0 : i32
    %c0_i32_1 = arith.constant 0 : i32
    return %c0_i32, %c0_i32_0 : i32, i32
  }
  func.func @transform_9(%arg0: i32, %arg1: i32) -> (i32, i32) {
    %c0_i32 = arith.constant 0 : i32
    %c0_i32_0 = arith.constant 0 : i32
    %c0_i32_1 = arith.constant 0 : i32
    return %c0_i32, %c0_i32_0 : i32, i32
  }
  func.func @transform_10(%arg0: i32, %arg1: i32) -> (i32, i32) {
    %c0_i32 = arith.constant 0 : i32
    %c0_i32_0 = arith.constant 0 : i32
    %c0_i32_1 = arith.constant 0 : i32
    return %c0_i32, %c0_i32_0 : i32, i32
  }
  func.func @transform_11(%arg0: i32, %arg1: i32) -> (i32, i32, i32) {
    %c0_i32 = arith.constant 0 : i32
    %c0_i32_0 = arith.constant 0 : i32
    %c0_i32_1 = arith.constant 0 : i32
    return %arg0, %c0_i32, %c0_i32_0 : i32, i32, i32
  }
}

module attributes {stable_mosaic.version = 11 : i64} {
  func.func @_mlp_head_kernel(%arg0: memref<8x64xf32, #tpu.memory_space<vmem>>, %arg1: memref<64x1024xbf16, #tpu.memory_space<vmem>>, %arg2: memref<1x1024xf32, #tpu.memory_space<vmem>>, %arg3: memref<1024x512xbf16, #tpu.memory_space<vmem>>, %arg4: memref<1x512xf32, #tpu.memory_space<vmem>>, %arg5: memref<512x256xbf16, #tpu.memory_space<vmem>>, %arg6: memref<1x256xf32, #tpu.memory_space<vmem>>, %arg7: memref<256x6xbf16, #tpu.memory_space<vmem>>, %arg8: memref<1x6xf32, #tpu.memory_space<vmem>>, %arg9: memref<8x6xf32, #tpu.memory_space<vmem>>) attributes {dimension_semantics = [], scalar_prefetch = 0 : i64, scratch_operands = 0 : i64, tpu.core_type = #tpu.core_type<tc>} {
    %c0 = arith.constant 0 : index
    %c0_0 = arith.constant 0 : index
    %0 = vector.load %arg0[%c0, %c0_0] : memref<8x64xf32, #tpu.memory_space<vmem>>, vector<8x64xf32>
    %1 = arith.truncf %0 : vector<8x64xf32> to vector<8x64xbf16>
    %c0_1 = arith.constant 0 : index
    %c0_2 = arith.constant 0 : index
    %2 = vector.load %arg1[%c0_1, %c0_2] : memref<64x1024xbf16, #tpu.memory_space<vmem>>, vector<64x1024xbf16>
    %cst = arith.constant dense<0.000000e+00> : vector<8x1024xf32>
    %3 = tpu.matmul %1, %2, %cst {dimension_numbers = #tpu.dot_dimension_numbers<[1], [0], [0], [1], [0, 0, 1, 1], [], []>} : vector<8x64xbf16>, vector<64x1024xbf16>, vector<8x1024xf32> -> vector<8x1024xf32>
    %c0_3 = arith.constant 0 : index
    %c0_4 = arith.constant 0 : index
    %4 = vector.load %arg2[%c0_3, %c0_4] : memref<1x1024xf32, #tpu.memory_space<vmem>>, vector<1x1024xf32>
    %5 = vector.broadcast %4 : vector<1x1024xf32> to vector<8x1024xf32>
    %6 = arith.addf %3, %5 : vector<8x1024xf32>
    %cst_5 = arith.constant 0.000000e+00 : f32
    %7 = vector.broadcast %cst_5 : f32 to vector<8x1024xf32>
    %8 = arith.maximumf %6, %7 : vector<8x1024xf32>
    %9 = arith.truncf %8 : vector<8x1024xf32> to vector<8x1024xbf16>
    %c0_6 = arith.constant 0 : index
    %c0_7 = arith.constant 0 : index
    %10 = vector.load %arg3[%c0_6, %c0_7] : memref<1024x512xbf16, #tpu.memory_space<vmem>>, vector<1024x512xbf16>
    %cst_8 = arith.constant dense<0.000000e+00> : vector<8x512xf32>
    %11 = tpu.matmul %9, %10, %cst_8 {dimension_numbers = #tpu.dot_dimension_numbers<[1], [0], [0], [1], [0, 0, 1, 1], [], []>} : vector<8x1024xbf16>, vector<1024x512xbf16>, vector<8x512xf32> -> vector<8x512xf32>
    %c0_9 = arith.constant 0 : index
    %c0_10 = arith.constant 0 : index
    %12 = vector.load %arg4[%c0_9, %c0_10] : memref<1x512xf32, #tpu.memory_space<vmem>>, vector<1x512xf32>
    %13 = vector.broadcast %12 : vector<1x512xf32> to vector<8x512xf32>
    %14 = arith.addf %11, %13 : vector<8x512xf32>
    %cst_11 = arith.constant 0.000000e+00 : f32
    %15 = vector.broadcast %cst_11 : f32 to vector<8x512xf32>
    %16 = arith.maximumf %14, %15 : vector<8x512xf32>
    %17 = arith.truncf %16 : vector<8x512xf32> to vector<8x512xbf16>
    %c0_12 = arith.constant 0 : index
    %c0_13 = arith.constant 0 : index
    %18 = vector.load %arg5[%c0_12, %c0_13] : memref<512x256xbf16, #tpu.memory_space<vmem>>, vector<512x256xbf16>
    %cst_14 = arith.constant dense<0.000000e+00> : vector<8x256xf32>
    %19 = tpu.matmul %17, %18, %cst_14 {dimension_numbers = #tpu.dot_dimension_numbers<[1], [0], [0], [1], [0, 0, 1, 1], [], []>} : vector<8x512xbf16>, vector<512x256xbf16>, vector<8x256xf32> -> vector<8x256xf32>
    %c0_15 = arith.constant 0 : index
    %c0_16 = arith.constant 0 : index
    %20 = vector.load %arg6[%c0_15, %c0_16] : memref<1x256xf32, #tpu.memory_space<vmem>>, vector<1x256xf32>
    %21 = vector.broadcast %20 : vector<1x256xf32> to vector<8x256xf32>
    %22 = arith.addf %19, %21 : vector<8x256xf32>
    %cst_17 = arith.constant 0.000000e+00 : f32
    %23 = vector.broadcast %cst_17 : f32 to vector<8x256xf32>
    %24 = arith.maximumf %22, %23 : vector<8x256xf32>
    %25 = arith.truncf %24 : vector<8x256xf32> to vector<8x256xbf16>
    %c0_18 = arith.constant 0 : index
    %c0_19 = arith.constant 0 : index
    %26 = vector.load %arg7[%c0_18, %c0_19] : memref<256x6xbf16, #tpu.memory_space<vmem>>, vector<256x6xbf16>
    %cst_20 = arith.constant dense<0.000000e+00> : vector<8x6xf32>
    %27 = tpu.matmul %25, %26, %cst_20 {dimension_numbers = #tpu.dot_dimension_numbers<[1], [0], [0], [1], [0, 0, 1, 1], [], []>} : vector<8x256xbf16>, vector<256x6xbf16>, vector<8x6xf32> -> vector<8x6xf32>
    %c0_21 = arith.constant 0 : index
    %c0_22 = arith.constant 0 : index
    %28 = vector.load %arg8[%c0_21, %c0_22] : memref<1x6xf32, #tpu.memory_space<vmem>>, vector<1x6xf32>
    %29 = vector.broadcast %28 : vector<1x6xf32> to vector<8x6xf32>
    %30 = arith.addf %27, %29 : vector<8x6xf32>
    %c0_23 = arith.constant 0 : index
    %c0_24 = arith.constant 0 : index
    %31 = vector.load %arg9[%c0_23, %c0_24] : memref<8x6xf32, #tpu.memory_space<vmem>>, vector<8x6xf32>
    tpu.vector_store %arg9[%c0_23, %c0_24], %30 {strides = array<i32>} : memref<8x6xf32, #tpu.memory_space<vmem>>, vector<8x6xf32>,
    return
  }
}

</mosaic_0001>

<bundles_post_ra>
// kernel: directnet_f_forward.2
= control target key start
LH: loop header
LB: loop body
LE: loop exit
PB: predicated region body
PF: predicated region fallthrough
CT: control target
= control target key end

     0   :  { %s1853_s17 = smov 0   ;;  %s1855_s18 = smov 0   ;;  %s2167_s0 = inlined_call_operand.vmem [shape: bf16[4,3,128], index: 0, kind: input, shape index: {}]   ;;  %s2168_s1 = inlined_call_operand.vmem [shape: bf16[64,3], index: 1, kind: input, shape index: {}]   ;;  %s2169_s2 = inlined_call_operand.vmem [shape: f32[64,1], index: 2, kind: input, shape index: {}]   ;;  %s2170_s3 = inlined_call_operand.vmem [shape: bf16[64,64], index: 3, kind: input, shape index: {}]   ;;  %s2171_s4 = inlined_call_operand.vmem [shape: f32[64,1], index: 4, kind: input, shape index: {}]   ;;  %s2172_s5 = inlined_call_operand.vmem [shape: bf16[64,64], index: 5, kind: input, shape index: {}]   ;;  %s2173_s6 = inlined_call_operand.vmem [shape: f32[64,1], index: 6, kind: input, shape index: {}]   ;;  %s2174_s7 = inlined_call_operand.vmem [shape: bf16[128,64], index: 7, kind: input, shape index: {}]   ;;  %s2175_s8 = inlined_call_operand.vmem [shape: f32[128,1], index: 8, kind: input, shape index: {}]   ;;  %s2176_s9 = inlined_call_operand.vmem [shape: bf16[32,128], index: 9, kind: input, shape index: {}]   ;;  %s2177_s10 = inlined_call_operand.vmem [shape: f32[32,1], index: 10, kind: input, shape index: {}]   ;;  %s2178_s11 = inlined_call_operand.vmem [shape: f32[4,1,32], index: 11, kind: output, shape index: {}]  }
   0x1   :  { %s1857_s19 = smov 0  }
   0x2 LB: > { %s33_s20 = sadd.s32 1, %s1783_s18  ;;  %p1529_p0 = scmp.ge.s32.totalorder %s1787_s19, 1  ;;  %s1787_s19 = sphi %s1857_s19, %s21_s19   ;;  %s1783_s18 = sphi %s1855_s18, %s2180_s18   ;;  %s1779_s17 = sphi %s1853_s17, %s2179_s17  }
   0x3   : > { %p35_p1 = scmp.ge.s32.totalorder %s33_s20, 4  ;;  %p353_p2 = scmp.lt.s32.totalorder %s1787_s19, 5 }
   0x5   : > { %s2182_s20 = smov (%p35_p1, %s33_s20), 0  ;;  %p354_p3 = pnand %p1529_p0, %p353_p2 }
   0x6   : > { %p393_p4 = scmp.lt.s32.totalorder (!%p354_p3), %s1779_s17, 3 }
   0x7   : > { %357 = sbr.rel (%p354_p3) target bundleno = 1270 (0x4f6), region = 64 }
   0xc   : > { %v1657_v0 = vld [vmem:[%s2168_s1 + $0x18] sm:$0xff]   ;;  %v1656_v1 = vld [vmem:[%s2168_s1 + $0x10] sm:$0xff]   ;;  %v1789_v2 = vmov 2   ;;  %v1790_v3 = vmov 1   ;;  %v1655_v10 = vld [vmem:[%s2168_s1 + $0x8] sm:$0xff]   ;;  %v1791_v11 = vmov 0  }
   0xd   : > { %1702 = vset.pattern.permute.xlu1 %v1789_v2  ;;  %1714 = vset.pattern.permute.xlu2 %v1790_v3  ;;  %v1653_v4 = vunpack.c.l.bf16 %v1657_v0  ;;  %v1654_v5 = vunpack.c.h.bf16 %v1657_v0  ;;  %v1649_v6 = vunpack.c.l.bf16 %v1656_v1  ;;  %v1650_v7 = vunpack.c.h.bf16 %v1656_v1  ;;  %v1640_v15 = vld [vmem:[%s2168_s1] sm:$0xff]   ;;  %v581_v16 = vld [vmem:[%s2169_s2 + $0x30] sm:$0xff]  ;;  %v582_v17 = vld [vmem:[%s2169_s2 + $0x38] sm:$0xff]  ;;  %s2184_s17 = smov (!%p393_p4, %s1779_s17), 3 }
   0xe   : > { %1690 = vset.pattern.permute.xlu0 %v1790_v3  ;;  %v1645_v12 = vunpack.c.l.bf16 %v1655_v10  ;;  %v1646_v13 = vunpack.c.h.bf16 %v1655_v10  ;;  %v1641_v18 = vunpack.c.l.bf16 %v1640_v15  ;;  %v1642_v19 = vunpack.c.h.bf16 %v1640_v15  ;;  %v577_v21 = vld [vmem:[%s2169_s2 + $0x10] sm:$0xff]  ;;  %v579_v22 = vld [vmem:[%s2169_s2 + $0x20] sm:$0xff]  ;;  %v580_v23 = vld [vmem:[%s2169_s2 + $0x28] sm:$0xff]  ;;  %s1530_s29 = sshll.u32 %s2184_s17, 1  ;;  %s402_s24 = scalar_lea.vmem %s2178_s11, %s2184_s17 }
   0xf   : > { %v1703_v8 = vpack.i.bf16 %v1654_v5, %v1653_v4  ;;  %v1715_v9 = vpack.i.bf16 %v1650_v7, %v1649_v6  ;;  %v576_v24 = vld [vmem:[%s2169_s2 + $0x8] sm:$0xff]  ;;  %v655_v25 = vld [vmem:[%s2171_s4 + $0x20] sm:$0xff]  ;;  %v578_v26 = vld [vmem:[%s2169_s2 + $0x18] sm:$0xff]  ;;  %s399_s15 = scalar_lea.vmem %s2167_s0, %s1530_s29  ;;  %vm719_vm0 = vcmask 523264   ;;  %vm408_vm2 = vcmask 253952  }
  0x10   : > { %v1727_v14 = vpack.i.bf16 %v1646_v13, %v1645_v12  ;;  %v1746_v20 = vpack.i.bf16 %v1642_v19, %v1641_v18  ;;  %v575_v27 = vld [vmem:[%s2169_s2] sm:$0xff]  ;;  %v654_v28 = vld [vmem:[%s2171_s4 + $0x18] sm:$0xff]  ;;  %v657_v29 = vld [vmem:[%s2171_s4 + $0x30] sm:$0xff]  ;;  %vm1453_vm3 = vcmask 130112   ;;  %vm1457_vm4 = vcmask 195712  }
  0x11   : > { %1704 = vperm.xlu1 %1702, %v1703_v8   ;;  %1692 = vperm.xlu0 %1690, %v1703_v8   ;;  %v658_v30 = vld [vmem:[%s2171_s4 + $0x38] sm:$0xff]  ;;  %v787_v31 = vld [vmem:[%s2173_s6 + $0x30] sm:$0xff]  ;;  %v656_v32 = vld [vmem:[%s2171_s4 + $0x28] sm:$0xff]  ;;  %vm1461_vm5 = vcmask 261312  }
  0x12   : > { %1716 = vperm.xlu2 %1714, %v1715_v9   ;;  %v653_v33 = vld [vmem:[%s2171_s4 + $0x10] sm:$0xff]  ;;  %v786_v34 = vld [vmem:[%s2173_s6 + $0x28] sm:$0xff]  ;;  %v651_v35 = vld [vmem:[%s2171_s4] sm:$0xff] }
  0x13   : > { %v652_v36 = vld [vmem:[%s2171_s4 + $0x8] sm:$0xff]  ;;  %v781_v37 = vld [vmem:[%s2173_s6] sm:$0xff]  ;;  %v788_v38 = vld [vmem:[%s2173_s6 + $0x38] sm:$0xff] }
  0x14   : > { %v785_v39 = vld [vmem:[%s2173_s6 + $0x20] sm:$0xff]  ;;  %v933_v40 = vld [vmem:[%s2175_s8 + $0x78] sm:$0xff]  ;;  %v783_v41 = vld [vmem:[%s2173_s6 + $0x10] sm:$0xff] }
  0x15   : > { %v784_v42 = vld [vmem:[%s2173_s6 + $0x18] sm:$0xff]  ;;  %v928_v43 = vld [vmem:[%s2175_s8 + $0x50] sm:$0xff]  ;;  %v782_v44 = vld [vmem:[%s2173_s6 + $0x8] sm:$0xff] }
  0x16   : > { %v932_v45 = vld [vmem:[%s2175_s8 + $0x70] sm:$0xff]  ;;  %v927_v46 = vld [vmem:[%s2175_s8 + $0x48] sm:$0xff]  ;;  %v930_v48 = vld [vmem:[%s2175_s8 + $0x60] sm:$0xff] }
  0x17   : > { %v931_v49 = vld [vmem:[%s2175_s8 + $0x68] sm:$0xff]  ;;  %v922_v50 = vld [vmem:[%s2175_s8 + $0x20] sm:$0xff]  ;;  %v929_v53 = vld [vmem:[%s2175_s8 + $0x58] sm:$0xff] }
  0x18   : > { %v410_v54 = vld [vmem:[%s399_s15] sm:$0x3]  ;;  %v921_v57 = vld [vmem:[%s2175_s8 + $0x18] sm:$0xff] }
  0x19   : > { %1708 = vset.pattern.permute.xlu1 %v1791_v11  ;;  %1696 = vset.pattern.permute.xlu0 %v1791_v11  ;;  %v926_v56 = vld [vmem:[%s2175_s8 + $0x40] sm:$0xff]  ;;  %v411_v58 = vunpack.c.l.bf16 %v410_v54 }
  0x1a   : > { %1720 = vset.pattern.permute.xlu2 %v1789_v2  ;;  %1698 = vperm.xlu0 %1696, %v1703_v8   ;;  %v1155_v13 = vld [vmem:[%s2177_s10] sm:$0xff] }
  0x1b   : > { %1722 = vperm.xlu2 %1720, %v1715_v9   ;;  %1710 = vperm.xlu1 %1708, %v1715_v9   ;;  %v1999_v61 = vperm.slane %v411_v58, 1  ;;  %v2001_v62 = vperm.slane %v411_v58, 0  ;;  %v2003_v63 = vperm.slane %v411_v58, 2  ;;  %v925_v9 = vld [vmem:[%s2175_s8 + $0x38] sm:$0xff] }
  0x22   : > { %1728 = vperm.xlu0 %1696, %v1727_v14  }
  0x23   : > { %1726 = vset.pattern.permute.xlu2 %v1791_v11  ;;  %615 = vperm.xlu1 %1708, %v581_v16  }
  0x24   : > { %620 = vperm.xlu2 %1726, %v582_v17  }
  0x2a   : > { %1747 = vperm.xlu0 %1696, %v1746_v20  }
  0x2b   : > { %1732 = vset.pattern.permute.xlu1 %v1790_v3 }
  0x2c   : > { %1738 = vset.pattern.permute.xlu2 %v1789_v2  ;;  %1734 = vperm.xlu1 %1732, %v1727_v14  }
  0x2d   : > { %1740 = vperm.xlu2 %1738, %v1727_v14  }
  0x32   : > { %595 = vperm.xlu0 %1696, %v577_v21  }
  0x34   : > { %1744 = vset.pattern.permute.xlu1 %v1791_v11 }
  0x35   : > { %1745 = vset.pattern.permute.xlu2 %v1791_v11  ;;  %605 = vperm.xlu1 %1744, %v579_v22   ;;  %v920_v22 = vld [vmem:[%s2175_s8 + $0x10] sm:$0xff] }
  0x36   : > { %610 = vperm.xlu2 %1745, %v580_v23  }
  0x3a   : > { %590 = vperm.xlu0 %1696, %v576_v24  }
  0x3d   : > { %1751 = vset.pattern.permute.xlu1 %v1790_v3  ;;  %v924_v3 = vld [vmem:[%s2175_s8 + $0x30] sm:$0xff] }
  0x3e   : > { %1757 = vset.pattern.permute.xlu2 %v1789_v2  ;;  %1753 = vperm.xlu1 %1751, %v1746_v20  }
  0x3f   : > { %1759 = vperm.xlu2 %1757, %v1746_v20   ;;  %v923_v20 = vld [vmem:[%s2175_s8 + $0x28] sm:$0xff] }
  0x42   : > { %681 = vperm.xlu0 %1696, %v655_v25  }
  0x46   : > { %1763 = vset.pattern.permute.xlu1 %v1791_v11 }
  0x47   : > { %1764 = vset.pattern.permute.xlu2 %v1791_v11  ;;  %600 = vperm.xlu1 %1763, %v578_v26   ;;  %v1158_v26 = vld [vmem:[%s2177_s10 + $0x18] sm:$0xff] }
  0x48   : > { %585 = vperm.xlu2 %1764, %v575_v27  }
  0x4a   : > { %676 = vperm.xlu0 %1696, %v654_v28  }
  0x4f   : > { %691 = vperm.xlu1 %1763, %v657_v29  }
  0x50   : > { %696 = vperm.xlu2 %1764, %v658_v30  }
  0x52   : > { %821 = vperm.xlu0 %1696, %v787_v31  }
  0x57   : > { %686 = vperm.xlu1 %1763, %v656_v32  }
  0x58   : > { %671 = vperm.xlu2 %1764, %v653_v33  }
  0x5a   : > { %816 = vperm.xlu0 %1696, %v786_v34  }
  0x5f   : > { %661 = vperm.xlu1 %1763, %v651_v35  }
  0x60   : > { %666 = vperm.xlu2 %1764, %v652_v36  }
  0x62   : > { %791 = vperm.xlu0 %1696, %v781_v37  }
  0x67   : > { %826 = vperm.xlu1 %1763, %v788_v38   ;;  %v918_v38 = vld [vmem:[%s2175_s8] sm:$0xff] }
  0x68   : > { %811 = vperm.xlu2 %1764, %v785_v39   ;;  %v919_v39 = vld [vmem:[%s2175_s8 + $0x8] sm:$0xff] }
  0x6a   : > { %1011 = vperm.xlu0 %1696, %v933_v40  }
  0x6c   : > { %v1970_v47 = vpop.permute.xlu2 %1716 }
  0x6d   : > { %v1719_v28 = vunpack.i.h.bf16 %v1970_v47  ;;  %v1718_v36 = vunpack.i.l.bf16 %v1970_v47 }
  0x6f   : > { %801 = vperm.xlu1 %1763, %v783_v41   ;;  %v515_v37 = vmul.f32 %v1719_v28, %v1999_v61 }
  0x70   : > { %806 = vperm.xlu2 %1764, %v784_v42  }
  0x72   : > { %986 = vperm.xlu0 %1696, %v928_v43  }
  0x75   : > { %v1991_v55 = vpop.permute.xlu2 %1722 }
  0x76   : > { %v1725_v31 = vunpack.i.h.bf16 %v1991_v55  ;;  %v1724_v40 = vunpack.i.l.bf16 %v1991_v55 }
  0x77   : > { %796 = vperm.xlu1 %1763, %v782_v44  }
  0x78   : > { %1006 = vperm.xlu2 %1764, %v932_v45   ;;  %v564_v41 = vmul.f32 %v1725_v31, %v2003_v63  ;;  %v514_v45 = vmul.f32 %v1718_v36, %v1999_v61 }
  0x7a   : > { %981 = vperm.xlu0 %1696, %v927_v46   ;;  %v563_v46 = vmul.f32 %v1724_v40, %v2003_v63 }
  0x7e   : > { %v621_v10 = vpop.permute.xlu2 %620 }
  0x7f   : > { %996 = vperm.xlu1 %1763, %v930_v48  }
  0x80   : > { %1001 = vperm.xlu2 %1764, %v931_v49  }
  0x82   : > { %956 = vperm.xlu0 %1696, %v922_v50   ;;  %v1156_v50 = vld [vmem:[%s2177_s10 + $0x8] sm:$0xff] }
  0x83   : > { %v1705_v51 = vpop.permute.xlu1 %1704  ;;  %v1693_v52 = vpop.permute.xlu0 %1692 }
  0x84   : > { %v1695_v59 = vunpack.i.h.bf16 %v1693_v52  ;;  %v1694_v60 = vunpack.i.l.bf16 %v1693_v52  ;;  %v1707_v0 = vunpack.i.h.bf16 %v1705_v51  ;;  %v1706_v1 = vunpack.i.l.bf16 %v1705_v51  ;;  %v1157_v52 = vld [vmem:[%s2177_s10 + $0x10] sm:$0xff] }
  0x86   : > { %v516_v4 = vmul.f32 %v1694_v60, %v1999_v61  ;;  %v517_v5 = vmul.f32 %v1695_v59, %v1999_v61  ;;  %v565_v14 = vmul.f32 %v1706_v1, %v2003_v63  ;;  %v566_v15 = vmul.f32 %v1707_v0, %v2003_v63 }
  0x87   : > { %991 = vperm.xlu1 %1763, %v929_v53   ;;  %v2030_v30 = vpop.permute.xlu2 %1740 }
  0x88   : > { %976 = vperm.xlu2 %1764, %v926_v56   ;;  %v1742_v0 = vunpack.i.l.bf16 %v2030_v30 }
  0x8a   : > { %951 = vperm.xlu0 %1696, %v921_v57  }
  0x8c   : > { %v1699_v2 = vpop.permute.xlu0 %1698 }
  0x8d   : > { %v1701_v6 = vunpack.i.h.bf16 %v1699_v2  ;;  %v1700_v7 = vunpack.i.l.bf16 %v1699_v2  ;;  %v1711_v8 = vpop.permute.xlu1 %1710 }
  0x8e   : > { %v1713_v24 = vunpack.i.h.bf16 %v1711_v8  ;;  %v1712_v32 = vunpack.i.l.bf16 %v1711_v8 }
  0x8f   : > { %v475_v11 = vmul.f32 %v1700_v7, %v2001_v62  ;;  %v476_v12 = vmul.f32 %v1701_v6, %v2001_v62  ;;  %966 = vperm.xlu1 %1763, %v924_v3  }
  0x90   : > { %971 = vperm.xlu2 %1764, %v925_v9   ;;  %v474_v33 = vmul.f32 %v1713_v24, %v2001_v62  ;;  %v473_v42 = vmul.f32 %v1712_v32, %v2001_v62  ;;  %v611_v49 = vpop.permute.xlu2 %610  ;;  %v1743_v9 = vunpack.i.h.bf16 %v2030_v30 }
  0x91   : > { %v525_v16 = vadd.f32 %v517_v5, %v476_v12  ;;  %v524_v17 = vadd.f32 %v516_v4, %v475_v11 }
  0x92   : > { %1161 = vperm.xlu0 %1696, %v1155_v13   ;;  %v523_v43 = vadd.f32 %v515_v37, %v474_v33  ;;  %v522_v48 = vadd.f32 %v514_v45, %v473_v42  ;;  %v561_v13 = vmul.f32 %v1742_v0, %v2003_v63  ;;  %v1622_v45 = vld [vmem:[%s2170_s3 + $0x8] sm:$0xff] }
  0x93   : > { %v573_v18 = vadd.f32 %v565_v14, %v524_v17  ;;  %v574_v19 = vadd.f32 %v566_v15, %v525_v16 }
  0x94   : > { %v1729_v35 = vpop.permute.xlu0 %1728  ;;  %v572_v47 = vadd.f32 %v564_v41, %v523_v43  ;;  %v571_v54 = vadd.f32 %v563_v46, %v522_v48  ;;  %v1623_v46 = vld [vmem:[%s2170_s3 + $0x10] sm:$0xff] }
  0x95   : > { %v616_v21 = vpop.permute.xlu1 %615  ;;  %v630_v23 = vadd.f32 %v621_v10, %v574_v19  ;;  %v1730_v56 = vunpack.i.l.bf16 %v1729_v35  ;;  %v1731_v1 = vunpack.i.h.bf16 %v1729_v35 }
  0x96   : > { %v629_v25 = vadd.f32 %v616_v21, %v573_v18  ;;  %v628_v53 = vadd.f32 %v611_v49, %v572_v47  ;;  %v1624_v47 = vld [vmem:[%s2170_s3 + $0x18] sm:$0xff] }
  0x97   : > { %961 = vperm.xlu1 %1763, %v923_v20   ;;  %v638_v27 = vmax.f32 %v630_v23, 0.0  ;;  %v471_v2 = vmul.f32 %v1730_v56, %v2001_v62  ;;  %v472_v14 = vmul.f32 %v1731_v1, %v2001_v62 }
  0x98   : > { %v637_v29 = vmax.f32 %v629_v25, 0.0  ;;  %946 = vperm.xlu2 %1764, %v920_v22   ;;  %v636_v59 = vmax.f32 %v628_v53, 0.0 }
  0x99   : > { %v1760_v6 = vpop.permute.xlu2 %1759 }
  0x9a   : > { %1176 = vperm.xlu0 %1696, %v1158_v26   ;;  %v642_v34 = vpack.c.bf16 %v638_v27, %v637_v29  ;;  %v1762_v7 = vunpack.i.h.bf16 %v1760_v6  ;;  %v1761_v8 = vunpack.i.l.bf16 %v1760_v6  ;;  %v562_v26 = vmul.f32 %v1743_v9, %v2003_v63 }
  0x9c   : > { %736 = vmatpush.bf16.msra.mxu0 %v642_v34  ;;  %v1748_v51 = vpop.permute.xlu0 %1747  ;;  %v559_v20 = vmul.f32 %v1761_v8, %v2003_v63  ;;  %v560_v21 = vmul.f32 %v1762_v7, %v2003_v63 }
  0x9d   : > { %v1750_v10 = vunpack.i.h.bf16 %v1748_v51  ;;  %v1749_v11 = vunpack.i.l.bf16 %v1748_v51 }
  0x9e   : > { %v1735_v44 = vpop.permute.xlu1 %1734 }
  0x9f   : > { %936 = vperm.xlu1 %1763, %v918_v38   ;;  %v1736_v57 = vunpack.i.l.bf16 %v1735_v44  ;;  %v1737_v3 = vunpack.i.h.bf16 %v1735_v44  ;;  %v469_v22 = vmul.f32 %v1749_v11, %v2001_v62  ;;  %v470_v23 = vmul.f32 %v1750_v10, %v2001_v62  ;;  %v1621_v44 = vld [vmem:[%s2170_s3] sm:$0xff] }
  0xa0   : > { %941 = vperm.xlu2 %1764, %v919_v39  }
  0xa1   : > { %v512_v4 = vmul.f32 %v1736_v57, %v1999_v61  ;;  %v513_v15 = vmul.f32 %v1737_v3, %v1999_v61 }
  0xa2   : > { %v586_v33 = vpop.permute.xlu2 %585 }
  0xa3   : > { %v520_v16 = vadd.f32 %v512_v4, %v471_v2  ;;  %v521_v28 = vadd.f32 %v513_v15, %v472_v14 }
  0xa4   : > { %v596_v12 = vpop.permute.xlu0 %595 }
  0xa5   : > { %v569_v27 = vadd.f32 %v561_v13, %v520_v16  ;;  %v570_v35 = vadd.f32 %v562_v26, %v521_v28  ;;  %v1628_v26 = vld [vmem:[%s2172_s5 + $0x18] sm:$0xff] }
  0xa7   : > { %v606_v55 = vpop.permute.xlu1 %605  ;;  %1166 = vperm.xlu1 %1763, %v1156_v50   ;;  %v625_v34 = vadd.f32 %v596_v12, %v569_v27 }
  0xa8   : > { %v627_v58 = vadd.f32 %v606_v55, %v571_v54  ;;  %1171 = vperm.xlu2 %1764, %v1157_v52  }
  0xa9   : > { %v633_v40 = vmax.f32 %v625_v34, 0.0 }
  0xaa   : > { %v635_v60 = vmax.f32 %v627_v58, 0.0  ;;  %v697_v54 = vpop.permute.xlu2 %696 }
  0xac   : > { %v641_v5 = vpack.c.bf16 %v636_v59, %v635_v60  ;;  %v591_v36 = vpop.permute.xlu0 %590 }
  0xae   : > { %737 = vmatpush.bf16.msra.mxu0 %v641_v5 }
  0xb0   : > { %v1754_v17 = vpop.permute.xlu1 %1753 }
  0xb1   : > { %v1756_v18 = vunpack.i.h.bf16 %v1754_v17  ;;  %v1755_v19 = vunpack.i.l.bf16 %v1754_v17 }
  0xb2   : > { %v672_v58 = vpop.permute.xlu2 %671 }
  0xb3   : > { %v510_v24 = vmul.f32 %v1755_v19, %v1999_v61  ;;  %v511_v25 = vmul.f32 %v1756_v18, %v1999_v61 }
  0xb4   : > { %v682_v57 = vpop.permute.xlu0 %681 }
  0xb5   : > { %v518_v29 = vadd.f32 %v510_v24, %v469_v22  ;;  %v519_v30 = vadd.f32 %v511_v25, %v470_v23  ;;  %v1625_v23 = vld [vmem:[%s2172_s5] sm:$0xff]  ;;  %v1626_v24 = vld [vmem:[%s2172_s5 + $0x8] sm:$0xff]  ;;  %v1627_v25 = vld [vmem:[%s2172_s5 + $0x10] sm:$0xff] }
  0xb7   : > { %v567_v31 = vadd.f32 %v559_v20, %v518_v29  ;;  %v568_v32 = vadd.f32 %v560_v21, %v519_v30 }
  0xb9   : > { %v601_v37 = vpop.permute.xlu1 %600  ;;  %v623_v39 = vadd.f32 %v586_v33, %v567_v31  ;;  %v624_v62 = vadd.f32 %v591_v36, %v568_v32 }
  0xba   : > { %v626_v38 = vadd.f32 %v601_v37, %v570_v35  ;;  %v667_v12 = vpop.permute.xlu2 %666 }
  0xbb   : > { %v631_v61 = vmax.f32 %v623_v39, 0.0  ;;  %v632_v43 = vmax.f32 %v624_v62, 0.0 }
  0xbc   : > { %v634_v41 = vmax.f32 %v626_v38, 0.0  ;;  %v677_v6 = vpop.permute.xlu0 %676 }
  0xbd   : > { %v639_v63 = vpack.c.bf16 %v632_v43, %v631_v61 }
  0xbe   : > { %v640_v42 = vpack.c.bf16 %v634_v41, %v633_v40 }
  0xc0   : > { %738 = vmatpush.bf16.msra.mxu0 %v640_v42 }
  0xc1   : > { %v692_v55 = vpop.permute.xlu1 %691 }
  0xc2   : > { %v812_v36 = vpop.permute.xlu2 %811 }
  0xc4   : > { %739 = vmatpush.bf16.msra.mxu0 %v639_v63  ;;  %v822_v34 = vpop.permute.xlu0 %821 }
  0xc7   : > { %1547 = vmatmul.msk.bf16.vlgmr.msra.gmra.mxu0 %vm719_vm0, %v1621_v44 }
  0xc9   : > { %v687_v60 = vpop.permute.xlu1 %686 }
  0xca   : > { %v807_v63 = vpop.permute.xlu2 %806 }
  0xcc   : > { %v817_v39 = vpop.permute.xlu0 %816 }
  0xd1   : > { %v662_v16 = vpop.permute.xlu1 %661 }
  0xd7   : > { %1548 = vmatmul.msk.bf16.gmra.mxu0 %vm719_vm0, %v1622_v45 }
  0xd9   : > { %v827_v33 = vpop.permute.xlu1 %826 }
  0xe1   : > { %v802_v37 = vpop.permute.xlu1 %801 }
  0xe7   : > { %1549 = vmatmul.msk.bf16.gmra.mxu0 %vm719_vm0, %v1623_v46 }
  0xf7   : > { %1550 = vmatmul.msk.bf16.gmra.mxu0 %vm719_vm0, %v1624_v47 }
 0x144   : > { %v741_v48 = vpop.f32.mrf.mxu0 }
 0x145   : > { %v742_v17 = vadd.f32 %v741_v48, %v662_v16 }
 0x147   : > { %v761_v21 = vmax.f32 %v742_v17, 0.0 }
 0x14c   : > { %v743_v49 = vpop.f32.mrf.mxu0 }
 0x14d   : > { %v744_v13 = vadd.f32 %v743_v49, %v667_v12  ;;  %v797_v49 = vpop.permute.xlu1 %796 }
 0x14f   : > { %v762_v19 = vmax.f32 %v744_v13, 0.0 }
 0x151   : > { %v769_v22 = vpack.c.bf16 %v762_v19, %v761_v21 }
 0x154   : > { %v746_v50 = vpop.f32.mrf.mxu0 }
 0x155   : > { %v747_v10 = vadd.f32 %v746_v50, %v672_v58 }
 0x157   : > { %v763_v18 = vmax.f32 %v747_v10, 0.0 }
 0x15c   : > { %v748_v51 = vpop.f32.mrf.mxu0 }
 0x15d   : > { %v749_v7 = vadd.f32 %v748_v51, %v677_v6  ;;  %v1633_v6 = vld [vmem:[%s2174_s7 + $0x20] sm:$0xff] }
 0x15f   : > { %v764_v14 = vmax.f32 %v749_v7, 0.0  ;;  %v1007_v7 = vpop.permute.xlu2 %1006 }
 0x161   : > { %v770_v20 = vpack.c.bf16 %v764_v14, %v763_v18 }
 0x164   : > { %v751_v52 = vpop.f32.mrf.mxu0 }
 0x165   : > { %v752_v3 = vadd.f32 %v751_v52, %v682_v57 }
 0x167   : > { %v765_v11 = vmax.f32 %v752_v3, 0.0  ;;  %v1631_v3 = vld [vmem:[%s2174_s7 + $0x10] sm:$0xff] }
 0x16c   : > { %v753_v53 = vpop.f32.mrf.mxu0 }
 0x16d   : > { %v754_v1 = vadd.f32 %v753_v53, %v687_v60  ;;  %v792_v53 = vpop.permute.xlu0 %791  ;;  %v1629_v60 = vld [vmem:[%s2174_s7] sm:$0xff] }
 0x16f   : > { %v766_v8 = vmax.f32 %v754_v1, 0.0  ;;  %v1630_v1 = vld [vmem:[%s2174_s7 + $0x8] sm:$0xff] }
 0x171   : > { %v771_v15 = vpack.c.bf16 %v766_v8, %v765_v11  ;;  %v997_v8 = vpop.permute.xlu1 %996 }
 0x174   : > { %v756_v56 = vpop.f32.mrf.mxu0 }
 0x175   : > { %v757_v59 = vadd.f32 %v756_v56, %v692_v55 }
 0x177   : > { %v767_v4 = vmax.f32 %v757_v59, 0.0 }
 0x179   : > { %v992_v10 = vpop.permute.xlu1 %991 }
 0x17c   : > { %v758_v0 = vpop.f32.mrf.mxu0 }
 0x17d   : > { %v759_v2 = vadd.f32 %v758_v0, %v697_v54  ;;  %v1634_v0 = vld [vmem:[%s2174_s7 + $0x28] sm:$0xff] }
 0x17f   : > { %v768_v5 = vmax.f32 %v759_v2, 0.0  ;;  %v1635_v2 = vld [vmem:[%s2174_s7 + $0x30] sm:$0xff] }
 0x181   : > { %v772_v9 = vpack.c.bf16 %v768_v5, %v767_v4  ;;  %v1636_v4 = vld [vmem:[%s2174_s7 + $0x38] sm:$0xff]  ;;  %v967_v12 = vpop.permute.xlu1 %966 }
 0x182   : > { %v1632_v5 = vld [vmem:[%s2174_s7 + $0x18] sm:$0xff] }
 0x183   : > { %865 = vmatpush.bf16.msra.mxu1 %v772_v9  ;;  %v1002_v9 = vpop.permute.xlu2 %1001 }
 0x187   : > { %866 = vmatpush.bf16.msra.mxu1 %v771_v15 }
 0x189   : > { %v962_v14 = vpop.permute.xlu1 %961 }
 0x18b   : > { %867 = vmatpush.bf16.msra.mxu1 %v770_v20  ;;  %v977_v11 = vpop.permute.xlu2 %976 }
 0x18f   : > { %868 = vmatpush.bf16.msra.mxu1 %v769_v22 }
 0x191   : > { %v937_v18 = vpop.permute.xlu1 %936 }
 0x192   : > { %1567 = vmatmul.msk.bf16.vlgmr.msra.gmra.mxu1 %vm719_vm0, %v1625_v23 }
 0x193   : > { %v972_v13 = vpop.permute.xlu2 %971 }
 0x19b   : > { %v947_v15 = vpop.permute.xlu2 %946 }
 0x1a2   : > { %1568 = vmatmul.msk.bf16.gmra.mxu1 %vm719_vm0, %v1626_v24 }
 0x1a3   : > { %v942_v19 = vpop.permute.xlu2 %941 }
 0x1b2   : > { %1569 = vmatmul.msk.bf16.gmra.mxu1 %vm719_vm0, %v1627_v25 }
 0x1c2   : > { %1570 = vmatmul.msk.bf16.gmra.mxu1 %vm719_vm0, %v1628_v26 }
 0x20f   : > { %v870_v27 = vpop.f32.mrf.mxu1 }
 0x210   : > { %v871_v54 = vadd.f32 %v870_v27, %v792_v53 }
 0x212   : > { %v890_v58 = vmax.f32 %v871_v54, 0.0 }
 0x217   : > { %v872_v28 = vpop.f32.mrf.mxu1 }
 0x218   : > { %v873_v50 = vadd.f32 %v872_v28, %v797_v49 }
 0x21a   : > { %v891_v56 = vmax.f32 %v873_v50, 0.0 }
 0x21c   : > { %v898_v59 = vpack.c.bf16 %v891_v56, %v890_v58 }
 0x21f   : > { %v875_v29 = vpop.f32.mrf.mxu1 }
 0x220   : > { %v876_v47 = vadd.f32 %v875_v29, %v802_v37 }
 0x222   : > { %v892_v55 = vmax.f32 %v876_v47, 0.0 }
 0x227   : > { %v877_v30 = vpop.f32.mrf.mxu1 }
 0x228   : > { %v878_v44 = vadd.f32 %v877_v30, %v807_v63 }
 0x22a   : > { %v893_v51 = vmax.f32 %v878_v44, 0.0 }
 0x22c   : > { %v899_v57 = vpack.c.bf16 %v893_v51, %v892_v55 }
 0x22f   : > { %v880_v31 = vpop.f32.mrf.mxu1 }
 0x230   : > { %v881_v42 = vadd.f32 %v880_v31, %v812_v36 }
 0x232   : > { %v894_v48 = vmax.f32 %v881_v42, 0.0 }
 0x237   : > { %v882_v32 = vpop.f32.mrf.mxu1 }
 0x238   : > { %v883_v40 = vadd.f32 %v882_v32, %v817_v39 }
 0x23a   : > { %v895_v45 = vmax.f32 %v883_v40, 0.0 }
 0x23c   : > { %v900_v52 = vpack.c.bf16 %v895_v45, %v894_v48 }
 0x23f   : > { %v885_v35 = vpop.f32.mrf.mxu1 }
 0x240   : > { %v886_v38 = vadd.f32 %v885_v35, %v822_v34 }
 0x242   : > { %v896_v61 = vmax.f32 %v886_v38, 0.0 }
 0x247   : > { %v887_v62 = vpop.f32.mrf.mxu1 }
 0x248   : > { %v888_v41 = vadd.f32 %v887_v62, %v827_v33  ;;  %v1012_v33 = vpop.permute.xlu0 %1011 }
 0x24a   : > { %v897_v43 = vmax.f32 %v888_v41, 0.0 }
 0x24c   : > { %v901_v46 = vpack.c.bf16 %v897_v43, %v896_v61 }
 0x24e   : > { %1082 = vmatpush.bf16.msra.mxu2 %v901_v46  ;;  %1658 = vmatpush.bf16.msra.mxu3 %v901_v46 }
 0x250   : > { %v987_v43 = vpop.permute.xlu0 %986 }
 0x252   : > { %1083 = vmatpush.bf16.msra.mxu2 %v900_v52  ;;  %1659 = vmatpush.bf16.msra.mxu3 %v900_v52 }
 0x256   : > { %1084 = vmatpush.bf16.msra.mxu2 %v899_v57  ;;  %1660 = vmatpush.bf16.msra.mxu3 %v899_v57 }
 0x258   : > { %v982_v51 = vpop.permute.xlu0 %981 }
 0x25a   : > { %1085 = vmatpush.bf16.msra.mxu2 %v898_v59  ;;  %1661 = vmatpush.bf16.msra.mxu3 %v898_v59 }
 0x25d   : > { %1603 = vmatmul.msk.bf16.vlgmr.msra.gmra.mxu2 %vm719_vm0, %v1629_v60  ;;  %1608 = vmatmul.msk.bf16.vlgmr.msra.gmra.mxu3 %vm719_vm0, %v1634_v0 }
 0x260   : > { %v957_v53 = vpop.permute.xlu0 %956 }
 0x26d   : > { %1604 = vmatmul.msk.bf16.gmra.mxu2 %vm719_vm0, %v1630_v1  ;;  %1609 = vmatmul.msk.bf16.gmra.mxu3 %vm719_vm0, %v1635_v2 }
 0x27d   : > { %1605 = vmatmul.msk.bf16.gmra.mxu2 %vm719_vm0, %v1631_v3  ;;  %1610 = vmatmul.msk.bf16.gmra.mxu3 %vm719_vm0, %v1636_v4 }
 0x28d   : > { %1606 = vmatmul.msk.bf16.gmra.mxu2 %vm719_vm0, %v1632_v5  ;;  %v952_v5 = vpop.permute.xlu0 %951 }
 0x29d   : > { %1607 = vmatmul.msk.bf16.gmra.mxu2 %vm719_vm0, %v1633_v6 }
 0x2e0   : > { %v1087_v16 = vpop.f32.mrf.mxu2  ;;  %v1112_v17 = vpop.f32.mrf.mxu3 }
 0x2e1   : > { %v1088_v20 = vadd.f32 %v1087_v16, %v937_v18  ;;  %v1113_v63 = vadd.f32 %v1112_v17, %v987_v43  ;;  %v1638_v17 = vld [vmem:[%s2176_s9 + $0x8] sm:$0xff] }
 0x2e3   : > { %v1127_v24 = vmax.f32 %v1088_v20, 0.0  ;;  %v1137_v48 = vmax.f32 %v1113_v63, 0.0 }
 0x2e8   : > { %v1089_v21 = vpop.f32.mrf.mxu2  ;;  %v1114_v22 = vpop.f32.mrf.mxu3 }
 0x2e9   : > { %v1090_v23 = vadd.f32 %v1089_v21, %v942_v19  ;;  %v1115_v41 = vadd.f32 %v1114_v22, %v992_v10  ;;  %v1162_v19 = vpop.permute.xlu0 %1161 }
 0x2eb   : > { %v1128_v25 = vmax.f32 %v1090_v23, 0.0  ;;  %v1138_v46 = vmax.f32 %v1115_v41, 0.0 }
 0x2ed   : > { %v1143_v26 = vpack.c.bf16 %v1128_v25, %v1127_v24  ;;  %v1148_v49 = vpack.c.bf16 %v1138_v46, %v1137_v48  ;;  %v1167_v24 = vpop.permute.xlu1 %1166 }
 0x2f0   : > { %v1092_v27 = vpop.f32.mrf.mxu2  ;;  %v1117_v28 = vpop.f32.mrf.mxu3 }
 0x2f1   : > { %v1118_v39 = vadd.f32 %v1117_v28, %v997_v8 }
 0x2f3   : > { %v1139_v44 = vmax.f32 %v1118_v39, 0.0 }
 0x2f8   : > { %v1094_v29 = vpop.f32.mrf.mxu2  ;;  %v1119_v30 = vpop.f32.mrf.mxu3 }
 0x2f9   : > { %v1120_v37 = vadd.f32 %v1119_v30, %v1002_v9  ;;  %v1095_v6 = vadd.f32 %v1094_v29, %v952_v5  ;;  %v1093_v9 = vadd.f32 %v1092_v27, %v947_v15  ;;  %v1341_v15 = vlaneseq  ;;  %v1172_v29 = vpop.permute.xlu2 %1171 }
 0x2fb   : > { %v1140_v42 = vmax.f32 %v1120_v37, 0.0  ;;  %v2137_v18 = vand.u32 127, %v1341_v15 }
 0x2fd   : > { %v1149_v47 = vpack.c.bf16 %v1140_v42, %v1139_v44  ;;  %vm1345_vm1 = vcmp.lt.s32.totalorder %v2137_v18, 16  ;;  %v1455_v15 = vadd.s32 4294967280, %v2137_v18 }
 0x300   : > { %v1097_v31 = vpop.f32.mrf.mxu2  ;;  %v1122_v32 = vpop.f32.mrf.mxu3 }
 0x301   : > { %v1123_v34 = vadd.f32 %v1122_v32, %v1007_v7  ;;  %v1098_v3 = vadd.f32 %v1097_v31, %v957_v53 }
 0x303   : > { %v1141_v62 = vmax.f32 %v1123_v34, 0.0  ;;  %v1131_v10 = vmax.f32 %v1098_v3, 0.0  ;;  %v1177_v34 = vpop.permute.xlu0 %1176 }
 0x308   : > { %v1099_v35 = vpop.f32.mrf.mxu2  ;;  %v1124_v36 = vpop.f32.mrf.mxu3 }
 0x309   : > { %v1125_v38 = vadd.f32 %v1124_v36, %v1012_v33  ;;  %v1100_v0 = vadd.f32 %v1099_v35, %v962_v14  ;;  %v1637_v14 = vld [vmem:[%s2176_s9] sm:$0xff] }
 0x30b   : > { %v1142_v40 = vmax.f32 %v1125_v38, 0.0  ;;  %v1132_v7 = vmax.f32 %v1100_v0, 0.0 }
 0x30d   : > { %v1150_v61 = vpack.c.bf16 %v1142_v40, %v1141_v62  ;;  %v1145_v16 = vpack.c.bf16 %v1132_v7, %v1131_v10 }
 0x30f   : > { %1191 = vmatpush.bf16.msrb.mxu3 %v1150_v61 }
 0x310   : > { %v1102_v45 = vpop.f32.mrf.mxu2 }
 0x311   : > { %v1103_v58 = vadd.f32 %v1102_v45, %v967_v12 }
 0x313   : > { %1192 = vmatpush.bf16.msrb.mxu3 %v1149_v47  ;;  %v1133_v4 = vmax.f32 %v1103_v58, 0.0 }
 0x317   : > { %1193 = vmatpush.bf16.msrb.mxu3 %v1148_v49 }
 0x318   : > { %v1104_v50 = vpop.f32.mrf.mxu2 }
 0x319   : > { %v1105_v56 = vadd.f32 %v1104_v50, %v972_v13  ;;  %v1129_v13 = vmax.f32 %v1093_v9, 0.0 }
 0x31b   : > { %v1134_v1 = vmax.f32 %v1105_v56, 0.0 }
 0x31d   : > { %v1146_v8 = vpack.c.bf16 %v1134_v1, %v1133_v4 }
 0x320   : > { %v1107_v52 = vpop.f32.mrf.mxu2 }
 0x321   : > { %v1108_v54 = vadd.f32 %v1107_v52, %v977_v11  ;;  %v1130_v11 = vmax.f32 %v1095_v6, 0.0 }
 0x323   : > { %v1135_v59 = vmax.f32 %v1108_v54, 0.0  ;;  %v1144_v12 = vpack.c.bf16 %v1130_v11, %v1129_v13 }
 0x328   : > { %v1109_v55 = vpop.f32.mrf.mxu2 }
 0x329   : > { %v1110_v57 = vadd.f32 %v1109_v55, %v982_v51 }
 0x32b   : > { %v1136_v60 = vmax.f32 %v1110_v57, 0.0 }
 0x32d   : > { %v1147_v2 = vpack.c.bf16 %v1136_v60, %v1135_v59 }
 0x32f   : > { %1194 = vmatpush.bf16.msrb.mxu3 %v1147_v2 }
 0x333   : > { %1195 = vmatpush.bf16.msrb.mxu3 %v1146_v8 }
 0x337   : > { %1196 = vmatpush.bf16.msrb.mxu3 %v1145_v16 }
 0x33b   : > { %1197 = vmatpush.bf16.msrb.mxu3 %v1144_v12 }
 0x33f   : > { %1198 = vmatpush.bf16.msrb.mxu3 %v1143_v26 }
 0x342   : > { %1199 = vmatmul.bf16.vlgmr.msrb.gmra.mxu3 %v1637_v14  ;;  %v1792_v14 = vmov -inf  }
 0x343   : > { %409 = vst.msk [vmem:[%s402_s24] sm:$0x1] %vm408_vm2, %v1792_v14 }
 0x352   : > { %1204 = vmatmul.bf16.gmra.mxu3 %v1638_v17 }
 0x3c5   : > { %v1200_v20 = vpop.f32.mrf.mxu3 }
 0x3c6   : > { %v1201_v21 = vadd.f32 %v1200_v20, %v1162_v19  ;;  %v1451_v19 = vadd.s32 4294967288, %v2137_v18 }
 0x3c8   : > { %v1210_v22 = vmax.f32 %v1201_v21, 0.0 }
 0x3ca   : > { %v1346_v23 = vsel %vm1345_vm1, %v1210_v22, -inf }
 0x3cb   : > { %1351 = vmax.xlane.f32.xlu1 %v1346_v23  ;;  %v1459_v23 = vadd.s32 4294967272, %v2137_v18 }
 0x3cd   : > { %v1202_v25 = vpop.f32.mrf.mxu3 }
 0x3ce   : > { %v1203_v26 = vadd.f32 %v1202_v25, %v1167_v24 }
 0x3d0   : > { %v1211_v27 = vmax.f32 %v1203_v26, 0.0 }
 0x3d2   : > { %v1347_v28 = vsel %vm1345_vm1, %v1211_v27, -inf }
 0x3d3   : > { %1353 = vmax.xlane.f32.xlu2 %v1347_v28  ;;  %v1350_v28 = vld [vmem:[%s402_s24] sm:$0x1] }
 0x3d5   : > { %v1205_v30 = vpop.f32.mrf.mxu3 }
 0x3d6   : > { %v1206_v31 = vadd.f32 %v1205_v30, %v1172_v29 }
 0x3d8   : > { %v1212_v32 = vmax.f32 %v1206_v31, 0.0 }
 0x3da   : > { %v1348_v33 = vsel %vm1345_vm1, %v1212_v32, -inf }
 0x3db   : > { %1355 = vmax.xlane.f32.xlu0 %v1348_v33 }
 0x3dd   : > { %v1207_v35 = vpop.f32.mrf.mxu3 }
 0x3de   : > { %v1208_v36 = vadd.f32 %v1207_v35, %v1177_v34 }
 0x3e0   : > { %v1213_v37 = vmax.f32 %v1208_v36, 0.0 }
 0x3e2   : > { %v1349_v38 = vsel %vm1345_vm1, %v1213_v37, -inf }
 0x3e3   : > { %1357 = vmax.xlane.f32.xlu2 %v1349_v38 }
 0x43e   : > { %v1352_v39 = vpop.xlane.xlu1 %1351 }
 0x43f   : > { %v1363_v62 = vperm.slane %v1352_v39, 0  ;;  %v1364_v40 = vperm.slane %v1352_v39, 1  ;;  %v1365_v41 = vperm.slane %v1352_v39, 2  ;;  %v1366_v42 = vperm.slane %v1352_v39, 3 }
 0x440   : > { %v1367_v61 = vperm.slane %v1352_v39, 4  ;;  %v1368_v43 = vperm.slane %v1352_v39, 5  ;;  %v1369_v63 = vperm.slane %v1352_v39, 6  ;;  %v1370_v44 = vperm.slane %v1352_v39, 7 }
 0x441   : > { %1395 = vst [vmem:[#allocation1] ss:$9 sm:$0xff] %v1363_v62 }
 0x442   : > { %1397 = vst [vmem:[#allocation1 + $0x1] ss:$9 sm:$0xff] %v1364_v40 }
 0x443   : > { %1399 = vst [vmem:[#allocation1 + $0x2] ss:$9 sm:$0xff] %v1365_v41 }
 0x444   : > { %1401 = vst [vmem:[#allocation1 + $0x3] ss:$9 sm:$0xff] %v1366_v42 }
 0x445   : > { %1403 = vst [vmem:[#allocation1 + $0x4] ss:$9 sm:$0xff] %v1367_v61 }
 0x446   : > { %1405 = vst [vmem:[#allocation1 + $0x5] ss:$9 sm:$0xff] %v1368_v43  ;;  %v1354_v45 = vpop.xlane.xlu2 %1353 }
 0x447   : > { %1407 = vst [vmem:[#allocation1 + $0x6] ss:$9 sm:$0xff] %v1369_v63  ;;  %v1371_v46 = vperm.slane %v1354_v45, 0  ;;  %v1372_v47 = vperm.slane %v1354_v45, 1  ;;  %v1373_v48 = vperm.slane %v1354_v45, 2  ;;  %v1374_v50 = vperm.slane %v1354_v45, 3 }
 0x448   : > { %1409 = vst [vmem:[#allocation1 + $0x7] ss:$9 sm:$0xff] %v1370_v44  ;;  %v1375_v51 = vperm.slane %v1354_v45, 4  ;;  %v1376_v52 = vperm.slane %v1354_v45, 5  ;;  %v1377_v53 = vperm.slane %v1354_v45, 6  ;;  %v1378_v54 = vperm.slane %v1354_v45, 7 }
 0x44e   : > { %v1356_v55 = vpop.xlane.xlu0 %1355 }
 0x44f   : > { %v1410_v49 = vld [vmem:[#allocation1] sm:$0xff]  ;;  %v1379_v56 = vperm.slane %v1356_v55, 0  ;;  %v1380_v57 = vperm.slane %v1356_v55, 1  ;;  %v1381_v58 = vperm.slane %v1356_v55, 2  ;;  %v1382_v60 = vperm.slane %v1356_v55, 3 }
 0x450   : > { %1411 = vst [vmem:[#allocation1] ss:$9 sm:$0xff] %v1371_v46  ;;  %1439 = vperm.xlu1 %1763, %v1410_v49   ;;  %v1383_v0 = vperm.slane %v1356_v55, 4  ;;  %v1384_v1 = vperm.slane %v1356_v55, 5  ;;  %v1385_v2 = vperm.slane %v1356_v55, 6  ;;  %v1386_v3 = vperm.slane %v1356_v55, 7 }
 0x451   : > { %1412 = vst [vmem:[#allocation1 + $0x1] ss:$9 sm:$0xff] %v1372_v47 }
 0x452   : > { %1413 = vst [vmem:[#allocation1 + $0x2] ss:$9 sm:$0xff] %v1373_v48 }
 0x453   : > { %1414 = vst [vmem:[#allocation1 + $0x3] ss:$9 sm:$0xff] %v1374_v50 }
 0x454   : > { %1415 = vst [vmem:[#allocation1 + $0x4] ss:$9 sm:$0xff] %v1375_v51 }
 0x455   : > { %1416 = vst [vmem:[#allocation1 + $0x5] ss:$9 sm:$0xff] %v1376_v52 }
 0x456   : > { %1417 = vst [vmem:[#allocation1 + $0x6] ss:$9 sm:$0xff] %v1377_v53  ;;  %v1358_v4 = vpop.xlane.xlu2 %1357 }
 0x457   : > { %1418 = vst [vmem:[#allocation1 + $0x7] ss:$9 sm:$0xff] %v1378_v54  ;;  %v1387_v5 = vperm.slane %v1358_v4, 0  ;;  %v1388_v6 = vperm.slane %v1358_v4, 1  ;;  %v1389_v7 = vperm.slane %v1358_v4, 2  ;;  %v1390_v8 = vperm.slane %v1358_v4, 3 }
 0x458   : > { %v1391_v10 = vperm.slane %v1358_v4, 4  ;;  %v1392_v11 = vperm.slane %v1358_v4, 5  ;;  %v1393_v16 = vperm.slane %v1358_v4, 6  ;;  %v1394_v13 = vperm.slane %v1358_v4, 7 }
 0x45e   : > { %v1419_v59 = vld [vmem:[#allocation1] sm:$0xff] }
 0x45f   : > { %1420 = vst [vmem:[#allocation1] ss:$9 sm:$0xff] %v1379_v56  ;;  %1442 = vperm.xlu2 %1764, %v1419_v59  }
 0x460   : > { %1421 = vst [vmem:[#allocation1 + $0x1] ss:$9 sm:$0xff] %v1380_v57 }
 0x461   : > { %1422 = vst [vmem:[#allocation1 + $0x2] ss:$9 sm:$0xff] %v1381_v58 }
 0x462   : > { %1423 = vst [vmem:[#allocation1 + $0x3] ss:$9 sm:$0xff] %v1382_v60 }
 0x463   : > { %1424 = vst [vmem:[#allocation1 + $0x4] ss:$9 sm:$0xff] %v1383_v0 }
 0x464   : > { %1425 = vst [vmem:[#allocation1 + $0x5] ss:$9 sm:$0xff] %v1384_v1 }
 0x465   : > { %1426 = vst [vmem:[#allocation1 + $0x6] ss:$9 sm:$0xff] %v1385_v2 }
 0x466   : > { %1427 = vst [vmem:[#allocation1 + $0x7] ss:$9 sm:$0xff] %v1386_v3 }
 0x46d   : > { %v1428_v9 = vld [vmem:[#allocation1] sm:$0xff] }
 0x46e   : > { %1445 = vperm.xlu0 %1696, %v1428_v9   ;;  %1429 = vst [vmem:[#allocation1] ss:$9 sm:$0xff] %v1387_v5 }
 0x46f   : > { %1430 = vst [vmem:[#allocation1 + $0x1] ss:$9 sm:$0xff] %v1388_v6 }
 0x470   : > { %1431 = vst [vmem:[#allocation1 + $0x2] ss:$9 sm:$0xff] %v1389_v7 }
 0x471   : > { %1432 = vst [vmem:[#allocation1 + $0x3] ss:$9 sm:$0xff] %v1390_v8 }
 0x472   : > { %1433 = vst [vmem:[#allocation1 + $0x4] ss:$9 sm:$0xff] %v1391_v10 }
 0x473   : > { %1434 = vst [vmem:[#allocation1 + $0x5] ss:$9 sm:$0xff] %v1392_v11 }
 0x474   : > { %1435 = vst [vmem:[#allocation1 + $0x6] ss:$9 sm:$0xff] %v1393_v16 }
 0x475   : > { %1436 = vst [vmem:[#allocation1 + $0x7] ss:$9 sm:$0xff] %v1394_v13 }
 0x47c   : > { %v1437_v12 = vld [vmem:[#allocation1] sm:$0xff] }
 0x47d   : > { %1448 = vperm.xlu1 %1763, %v1437_v12  }
 0x4b9   : > { %v1443_v21 = vpop.permute.xlu2 %1442 }
 0x4ba   : > { %v1452_v25 = vperm.slane %v1443_v21, %v1451_v19 }
 0x4c2   : > { %v1440_v17 = vpop.permute.xlu1 %1439 }
 0x4c3   : > { %v1450_v22 = vperm.slane %v1440_v17, %v2137_v18 }
 0x4c5   : > { %v1454_v27 = vsel %vm1453_vm3, %v1452_v25, %v1450_v22 }
 0x4e0   : > { %v1446_v20 = vpop.permute.xlu0 %1445 }
 0x4e1   : > { %v1456_v24 = vperm.slane %v1446_v20, %v1455_v15 }
 0x4e3   : > { %v1458_v30 = vsel %vm1457_vm4, %v1456_v24, %v1454_v27 }
 0x4ef   : > { %v1449_v26 = vpop.permute.xlu1 %1448 }
 0x4f0   : > { %v1460_v29 = vperm.slane %v1449_v26, %v1459_v23 }
 0x4f2   : > { %v1462_v31 = vsel %vm1461_vm5, %v1460_v29, %v1458_v30 }
 0x4f3   : > { %v1464_v32 = vmax.f32 %v1350_v28, %v1462_v31 }
 0x4f5   : > { %1466 = vst.msk [vmem:[%s402_s24] sm:$0x1] %vm408_vm2, %v1464_v32 }
 0x4f6 PF: > { %s21_s19 = sadd.s32 1, %s1787_s19   ;;  %s2179_s17 = smov %s1783_s18 }
 0x4f7   : > { %p18_p5 = scmp.ge.s32.totalorder %s21_s19, 6   ;;  %s2180_s18 = smov %s2182_s20 }
 0x4f9   :  { %20 = sbr.rel (!%p18_p5) target bundleno = 2 (0x2), region = 120 }

// kernel: directnet_f_forward.3
= control target key start
LH: loop header
LB: loop body
LE: loop exit
PB: predicated region body
PF: predicated region fallthrough
CT: control target
= control target key end

     0   :  { %14 = vsyncpa [#allocation3], 0  ;;  %s5403_s0 = inlined_call_operand.vmem [shape: f32[8,64], index: 0, kind: input, shape index: {}]   ;;  %s5404_s1 = inlined_call_operand.vmem [shape: bf16[64,1024], index: 1, kind: input, shape index: {}]   ;;  %s5405_s2 = inlined_call_operand.vmem [shape: f32[1,1024], index: 2, kind: input, shape index: {}]   ;;  %s5406_s3 = inlined_call_operand.hbm [shape: bf16[1024,512], index: 3, kind: input, shape index: {}]   ;;  %s5407_s4 = inlined_call_operand.vmem [shape: f32[1,512], index: 4, kind: input, shape index: {}]   ;;  %s5408_s5 = inlined_call_operand.hbm [shape: bf16[512,256], index: 5, kind: input, shape index: {}]   ;;  %s5409_s6 = inlined_call_operand.vmem [shape: f32[1,256], index: 6, kind: input, shape index: {}]   ;;  %s5410_s7 = inlined_call_operand.vmem [shape: bf16[256,6], index: 7, kind: input, shape index: {}]   ;;  %s5411_s8 = inlined_call_operand.vmem [shape: f32[1,6], index: 8, kind: input, shape index: {}]   ;;  %s5412_s9 = inlined_call_operand.vmem [shape: f32[8,6], index: 9, kind: output, shape index: {}]  }
   0x1   :  { %s26_s11 = sshll.u32 %s5406_s3, 4  ;;  %s27_s11 = int_to_ptr.hbm [resolvable:$true] %s26_s11 }
   0x2   :  { %15 = vsyncpa [#allocation5], 0  ;;  %s4943_s12 = smov [#allocation2]   ;;  %s41_s16 = sshll.u32 %s5408_s5, 4  ;;  %s42_s16 = int_to_ptr.hbm [resolvable:$true] %s41_s16 }
   0x3   :  { %s28_s13 = sshll.u32 %s4943_s12, 4  ;;  %s4944_s17 = smov 256   ;;  %s29_s13 = int_to_ptr.vmem [resolvable:$true] %s28_s13 }
   0x4   :  { %s4945_s18 = smov 16   ;;  %s4946_s19 = smov [#allocation4]  }
   0x5   :  { %34 = dma.hbm_to_vmem [thread:$0]  %s27_s11, 32768, %s29_s13, [#allocation3], %s4944_s17, %s4944_s17, %s4945_s18  }
   0x6   :  { %s43_s20 = sshll.u32 %s4946_s19, 4  ;;  %s4947_s21 = smov 128   ;;  %s44_s20 = int_to_ptr.vmem [resolvable:$true] %s43_s20 }
   0x7   :  { %s4948_s22 = smov 8  }
   0x8   :  { %49 = dma.hbm_to_vmem [thread:$0]  %s42_s16, 8192, %s44_s20, [#allocation5], %s4947_s21, %s4947_s21, %s4948_s22  }
   0x9   :  { %4939 = dma.done.wait [#allocation3], 32768  }
   0xa   :  { %4940 = vsyncadd [#allocation3], 4294934528 }
   0xb   :  { %4941 = dma.done.wait [#allocation5], 8192  }
   0xc   :  { %4942 = vsyncadd [#allocation5], 4294959104  ;;  %v3133_v0 = vld [vmem:[%s5404_s1 + $0xc0] sm:$0xf]  ;;  %v4539_v2 = vld [vmem:[%s5404_s1 + $0xc4] sm:$0xf] }
   0xd   :  { %v4543_v1 = vld [vmem:[%s5404_s1 + $0xdc] sm:$0xf0]  ;;  %v3135_v4 = vld [vmem:[%s5404_s1 + $0xe0] sm:$0xf0]  ;;  %v3141_v22 = vld [vmem:[%s5404_s1 + $0xc8] sm:$0xf] }
   0xe   :  { %v3134_v3 = vor.u32 %v4543_v1, %v3133_v0  ;;  %v3101_v5 = vld [vmem:[%s5404_s1 + $0x80] sm:$0xf]  ;;  %v3138_v7 = vor.u32 %v4539_v2, %v3135_v4  ;;  %v4531_v8 = vld [vmem:[%s5404_s1 + $0x84] sm:$0xf]  ;;  %v3149_v23 = vld [vmem:[%s5404_s1 + $0xd0] sm:$0xf] }
   0xf   :  { %v4535_v6 = vld [vmem:[%s5404_s1 + $0x9c] sm:$0xf0]  ;;  %v3103_v9 = vld [vmem:[%s5404_s1 + $0xa0] sm:$0xf0]  ;;  %v4545_v24 = vld [vmem:[%s5404_s1 + $0xec] sm:$0xf0] }
  0x10   :  { %285 = vmatpush.bf16.msra.mxu2 %v3134_v3  ;;  %v3102_v10 = vor.u32 %v4535_v6, %v3101_v5  ;;  %298 = vmatpush.bf16.msra.mxu3 %v3138_v7  ;;  %v3106_v11 = vor.u32 %v4531_v8, %v3103_v9  ;;  %v3069_v12 = vld [vmem:[%s5404_s1 + $0x40] sm:$0xf]  ;;  %v4523_v14 = vld [vmem:[%s5404_s1 + $0x44] sm:$0xf]  ;;  %v4544_v25 = vld [vmem:[%s5404_s1 + $0xe4] sm:$0xf0]  ;;  %v3150_v26 = vor.u32 %v4545_v24, %v3149_v23 }
  0x11   :  { %v4527_v13 = vld [vmem:[%s5404_s1 + $0x5c] sm:$0xf0]  ;;  %v3071_v15 = vld [vmem:[%s5404_s1 + $0x60] sm:$0xf0]  ;;  %v4541_v27 = vld [vmem:[%s5404_s1 + $0xd4] sm:$0xf]  ;;  %v3142_v38 = vor.u32 %v4544_v25, %v3141_v22 }
  0x12   :  { %v3037_v16 = vld [vmem:[%s5404_s1] sm:$0xf]  ;;  %v3070_v17 = vor.u32 %v4527_v13, %v3069_v12  ;;  %v4515_v19 = vld [vmem:[%s5404_s1 + $0x4] sm:$0xf]  ;;  %v3074_v21 = vor.u32 %v4523_v14, %v3071_v15  ;;  %v3151_v28 = vld [vmem:[%s5404_s1 + $0xf0] sm:$0xf0]  ;;  %337 = vmatpush.bf16.msra.mxu0 %v3150_v26 }
  0x13   :  { %v4519_v18 = vld [vmem:[%s5404_s1 + $0x1c] sm:$0xf0]  ;;  %v3039_v20 = vld [vmem:[%s5404_s1 + $0x20] sm:$0xf0]  ;;  %v4540_v30 = vld [vmem:[%s5404_s1 + $0xcc] sm:$0xf]  ;;  %v3154_v32 = vor.u32 %v4541_v27, %v3151_v28 }
  0x14   :  { %286 = vmatpush.bf16.msra.mxu2 %v3102_v10  ;;  %299 = vmatpush.bf16.msra.mxu3 %v3106_v11  ;;  %v65_v29 = vld [vmem:[%s5403_s0] sm:$0xff]  ;;  %v3143_v31 = vld [vmem:[%s5404_s1 + $0xe8] sm:$0xf0]  ;;  %v3038_v33 = vor.u32 %v4519_v18, %v3037_v16  ;;  %v3117_v34 = vld [vmem:[%s5404_s1 + $0x90] sm:$0xf]  ;;  %v3042_v37 = vor.u32 %v4515_v19, %v3039_v20  ;;  %vm277_vm0 = vcmask 523264  }
  0x15   :  { %v4537_v35 = vld [vmem:[%s5404_s1 + $0xac] sm:$0xf0]  ;;  %v4533_v36 = vld [vmem:[%s5404_s1 + $0x94] sm:$0xf]  ;;  %v3109_v39 = vld [vmem:[%s5404_s1 + $0x88] sm:$0xf]  ;;  %350 = vmatpush.bf16.msra.mxu1 %v3154_v32  ;;  %v3146_v43 = vor.u32 %v4540_v30, %v3143_v31  ;;  %v5107_v48 = vpack.c.bf16 %v65_v29, %v65_v29 }
  0x16   :  { %v4536_v40 = vld [vmem:[%s5404_s1 + $0xa4] sm:$0xf0]  ;;  %v3118_v41 = vor.u32 %v4537_v35, %v3117_v34  ;;  %v3119_v42 = vld [vmem:[%s5404_s1 + $0xb0] sm:$0xf0]  ;;  %v4532_v44 = vld [vmem:[%s5404_s1 + $0x8c] sm:$0xf] }
  0x17   :  { %v3111_v45 = vld [vmem:[%s5404_s1 + $0xa8] sm:$0xf0]  ;;  %v3122_v46 = vor.u32 %v4533_v36, %v3119_v42  ;;  %v3085_v47 = vld [vmem:[%s5404_s1 + $0x50] sm:$0xf]  ;;  %v4525_v50 = vld [vmem:[%s5404_s1 + $0x54] sm:$0xf]  ;;  %v3110_v53 = vor.u32 %v4536_v40, %v3109_v39 }
  0x18   :  { %287 = vmatpush.bf16.msra.mxu2 %v3070_v17  ;;  %300 = vmatpush.bf16.msra.mxu3 %v3074_v21  ;;  %v4529_v49 = vld [vmem:[%s5404_s1 + $0x6c] sm:$0xf0]  ;;  %v3087_v51 = vld [vmem:[%s5404_s1 + $0x70] sm:$0xf0]  ;;  %v3114_v56 = vor.u32 %v4532_v44, %v3111_v45  ;;  %v3077_v57 = vld [vmem:[%s5404_s1 + $0x48] sm:$0xf] }
  0x19   :  { %338 = vmatpush.bf16.msra.mxu0 %v3118_v41  ;;  %v3086_v52 = vor.u32 %v4529_v49, %v3085_v47  ;;  %v3053_v54 = vld [vmem:[%s5404_s1 + $0x10] sm:$0xf]  ;;  %v4528_v58 = vld [vmem:[%s5404_s1 + $0x64] sm:$0xf0]  ;;  %v4524_v59 = vld [vmem:[%s5404_s1 + $0x4c] sm:$0xf]  ;;  %351 = vmatpush.bf16.msra.mxu1 %v3122_v46  ;;  %v3090_v60 = vor.u32 %v4525_v50, %v3087_v51 }
  0x1a   :  { %v4521_v55 = vld [vmem:[%s5404_s1 + $0x2c] sm:$0xf0]  ;;  %v3079_v61 = vld [vmem:[%s5404_s1 + $0x68] sm:$0xf0]  ;;  %v4517_v62 = vld [vmem:[%s5404_s1 + $0x14] sm:$0xf]  ;;  %v3078_v2 = vor.u32 %v4528_v58, %v3077_v57 }
  0x1b   :  { %v3055_v63 = vld [vmem:[%s5404_s1 + $0x30] sm:$0xf0]  ;;  %v3045_v0 = vld [vmem:[%s5404_s1 + $0x8] sm:$0xf]  ;;  %v3054_v1 = vor.u32 %v4521_v55, %v3053_v54  ;;  %v4516_v4 = vld [vmem:[%s5404_s1 + $0xc] sm:$0xf]  ;;  %v3082_v6 = vor.u32 %v4524_v59, %v3079_v61 }
  0x1c   :  { %288 = vmatpush.bf16.msra.mxu2 %v3038_v33  ;;  %301 = vmatpush.bf16.msra.mxu3 %v3042_v37  ;;  %v4520_v3 = vld [vmem:[%s5404_s1 + $0x24] sm:$0xf0]  ;;  %v3047_v5 = vld [vmem:[%s5404_s1 + $0x28] sm:$0xf0]  ;;  %v3157_v7 = vld [vmem:[%s5404_s1 + $0xd8] sm:$0xf]  ;;  %v3058_v9 = vor.u32 %v4517_v62, %v3055_v63 }
  0x1d   :  { %339 = vmatpush.bf16.msra.mxu0 %v3086_v52  ;;  %352 = vmatpush.bf16.msra.mxu1 %v3090_v60  ;;  %v4546_v8 = vld [vmem:[%s5404_s1 + $0xf4] sm:$0xf0]  ;;  %v3285_v10 = vld [vmem:[#allocation2 + $0xe0] sm:$0xf]  ;;  %v4577_v11 = vld [vmem:[#allocation2 + $0xec] sm:$0xf0]  ;;  %v3046_v19 = vor.u32 %v4520_v3, %v3045_v0  ;;  %v3050_v23 = vor.u32 %v4516_v4, %v3047_v5 }
  0x1e   :  { %v3413_v12 = vld [vmem:[#allocation2 + $0x1e0] sm:$0xf]  ;;  %v4609_v13 = vld [vmem:[#allocation2 + $0x1ec] sm:$0xf0]  ;;  %v4542_v14 = vld [vmem:[%s5404_s1 + $0xdc] sm:$0xf]  ;;  %v3286_v16 = vor.u32 %v4577_v11, %v3285_v10  ;;  %v3158_v24 = vor.u32 %v4546_v8, %v3157_v7 }
  0x1f   :  { %3163 = vmatmul.msk.bf16.vlgmr.msra.gmra.mxu2 %vm277_vm0, %v5107_v48  ;;  %3164 = vmatmul.msk.bf16.vlgmr.msra.gmra.mxu3 %vm277_vm0, %v5107_v48  ;;  %v3159_v15 = vld [vmem:[%s5404_s1 + $0xf8] sm:$0xf0]  ;;  %v3414_v17 = vor.u32 %v4609_v13, %v3413_v12  ;;  %v3397_v18 = vld [vmem:[#allocation2 + $0x1c0] sm:$0xf]  ;;  %v4573_v21 = vld [vmem:[#allocation2 + $0xcc] sm:$0xf0] }
  0x20   :  { %311 = vmatpush.bf16.msrb.mxu2 %v3142_v38  ;;  %324 = vmatpush.bf16.msrb.mxu3 %v3146_v43  ;;  %v3269_v20 = vld [vmem:[#allocation2 + $0xc0] sm:$0xf]  ;;  %v4605_v22 = vld [vmem:[#allocation2 + $0x1cc] sm:$0xf0]  ;;  %v3162_v25 = vor.u32 %v4542_v14, %v3159_v15  ;;  %v3125_v26 = vld [vmem:[%s5404_s1 + $0x98] sm:$0xf] }
  0x21   :  { %340 = vmatpush.bf16.msra.mxu0 %v3054_v1  ;;  %353 = vmatpush.bf16.msra.mxu1 %v3058_v9  ;;  %v4538_v27 = vld [vmem:[%s5404_s1 + $0xb4] sm:$0xf0]  ;;  %v3398_v28 = vor.u32 %v4605_v22, %v3397_v18  ;;  %v4534_v29 = vld [vmem:[%s5404_s1 + $0x9c] sm:$0xf]  ;;  %v3270_v31 = vor.u32 %v4573_v21, %v3269_v20  ;;  %v3253_v32 = vld [vmem:[#allocation2 + $0xa0] sm:$0xf] }
  0x22   :  { %v3127_v30 = vld [vmem:[%s5404_s1 + $0xb8] sm:$0xf0]  ;;  %v4569_v33 = vld [vmem:[#allocation2 + $0xac] sm:$0xf0]  ;;  %v3126_v34 = vor.u32 %v4538_v27, %v3125_v26  ;;  %v3381_v35 = vld [vmem:[#allocation2 + $0x1a0] sm:$0xf] }
  0x23   :  { %v4601_v36 = vld [vmem:[#allocation2 + $0x1ac] sm:$0xf0]  ;;  %v3130_v37 = vor.u32 %v4534_v29, %v3127_v30  ;;  %v3093_v38 = vld [vmem:[%s5404_s1 + $0x58] sm:$0xf]  ;;  %v4526_v40 = vld [vmem:[%s5404_s1 + $0x5c] sm:$0xf]  ;;  %v3254_v42 = vor.u32 %v4569_v33, %v3253_v32 }
  0x24   :  { %312 = vmatpush.bf16.msrb.mxu2 %v3110_v53  ;;  %325 = vmatpush.bf16.msrb.mxu3 %v3114_v56  ;;  %v4530_v39 = vld [vmem:[%s5404_s1 + $0x74] sm:$0xf0]  ;;  %v3095_v41 = vld [vmem:[%s5404_s1 + $0x78] sm:$0xf0]  ;;  %v3382_v43 = vor.u32 %v4601_v36, %v3381_v35  ;;  %v3237_v44 = vld [vmem:[#allocation2 + $0x80] sm:$0xf] }
  0x25   :  { %3167 = vmatmul.msk.bf16.vlgmr.msra.gmra.mxu0 %vm277_vm0, %v5107_v48  ;;  %1960 = vmatpush.bf16.msrb.mxu1 %v3414_v17  ;;  %v4565_v45 = vld [vmem:[#allocation2 + $0x8c] sm:$0xf0]  ;;  %v3094_v46 = vor.u32 %v4530_v39, %v3093_v38  ;;  %v3061_v47 = vld [vmem:[%s5404_s1 + $0x18] sm:$0xf]  ;;  %v3365_v49 = vld [vmem:[#allocation2 + $0x180] sm:$0xf]  ;;  %v3098_v51 = vor.u32 %v4526_v40, %v3095_v41 }
  0x26   :  { %1947 = vmatpush.bf16.msrb.mxu0 %v3286_v16  ;;  %3168 = vmatmul.msk.bf16.vlgmr.msra.gmra.mxu1 %vm277_vm0, %v5107_v48  ;;  %v4597_v50 = vld [vmem:[#allocation2 + $0x18c] sm:$0xf0]  ;;  %v4522_v52 = vld [vmem:[%s5404_s1 + $0x34] sm:$0xf0]  ;;  %v4518_v53 = vld [vmem:[%s5404_s1 + $0x1c] sm:$0xf]  ;;  %v3238_v55 = vor.u32 %v4565_v45, %v3237_v44 }
  0x27   :  { %v3063_v54 = vld [vmem:[%s5404_s1 + $0x38] sm:$0xf0]  ;;  %v3221_v56 = vld [vmem:[#allocation2 + $0x60] sm:$0xf]  ;;  %v4641_v58 = vld [vmem:[#allocation2 + $0x2ec] sm:$0xf0]  ;;  %v3366_v59 = vor.u32 %v4597_v50, %v3365_v49  ;;  %v3062_v63 = vor.u32 %v4522_v52, %v3061_v47 }
  0x28   :  { %313 = vmatpush.bf16.msrb.mxu2 %v3078_v2  ;;  %326 = vmatpush.bf16.msrb.mxu3 %v3082_v6  ;;  %v3541_v57 = vld [vmem:[#allocation2 + $0x2e0] sm:$0xf]  ;;  %v4561_v60 = vld [vmem:[#allocation2 + $0x6c] sm:$0xf0]  ;;  %v3066_v2 = vor.u32 %v4518_v53, %v3063_v54  ;;  %vm3027_vm1 = vcmask 48128  }
  0x29   :  { %1961 = vmatpush.bf16.msrb.mxu1 %v3398_v28  ;;  %v3669_v61 = vld [vmem:[#allocation2 + $0x3e0] sm:$0xf]  ;;  %v4673_v62 = vld [vmem:[#allocation2 + $0x3ec] sm:$0xf0]  ;;  %v3542_v3 = vor.u32 %v4641_v58, %v3541_v57  ;;  %v3222_v4 = vor.u32 %v4561_v60, %v3221_v56 }
  0x2a   :  { %1948 = vmatpush.bf16.msrb.mxu0 %v3270_v31  ;;  %v3349_v0 = vld [vmem:[#allocation2 + $0x160] sm:$0xf]  ;;  %v4593_v1 = vld [vmem:[#allocation2 + $0x16c] sm:$0xf0]  ;;  %v3670_v5 = vor.u32 %v4673_v62, %v3669_v61 }
  0x2b   :  { %v3205_v6 = vld [vmem:[#allocation2 + $0x40] sm:$0xf]  ;;  %v4637_v8 = vld [vmem:[#allocation2 + $0x2cc] sm:$0xf0]  ;;  %v3350_v9 = vor.u32 %v4593_v1, %v3349_v0 }
  0x2c   :  { %314 = vmatpush.bf16.msrb.mxu2 %v3046_v19  ;;  %327 = vmatpush.bf16.msrb.mxu3 %v3050_v23  ;;  %v3525_v7 = vld [vmem:[#allocation2 + $0x2c0] sm:$0xf]  ;;  %v4557_v10 = vld [vmem:[#allocation2 + $0x4c] sm:$0xf0] }
  0x2d   :  { %1962 = vmatpush.bf16.msrb.mxu1 %v3382_v43  ;;  %v3653_v11 = vld [vmem:[#allocation2 + $0x3c0] sm:$0xf]  ;;  %v4669_v12 = vld [vmem:[#allocation2 + $0x3cc] sm:$0xf0]  ;;  %v3526_v15 = vor.u32 %v4637_v8, %v3525_v7  ;;  %v3206_v16 = vor.u32 %v4557_v10, %v3205_v6 }
  0x2e   :  { %1949 = vmatpush.bf16.msrb.mxu0 %v3254_v42  ;;  %v3333_v13 = vld [vmem:[#allocation2 + $0x140] sm:$0xf]  ;;  %v4589_v14 = vld [vmem:[#allocation2 + $0x14c] sm:$0xf0]  ;;  %v3654_v17 = vor.u32 %v4669_v12, %v3653_v11 }
  0x2f   :  { %3165 = vmatmul.msk.bf16.vlgmr.msrb.gmra.mxu2 %vm277_vm0, %v5107_v48  ;;  %3166 = vmatmul.msk.bf16.vlgmr.msrb.gmra.mxu3 %vm277_vm0, %v5107_v48  ;;  %v3334_v18 = vor.u32 %v4589_v14, %v3333_v13  ;;  %v3189_v19 = vld [vmem:[#allocation2 + $0x20] sm:$0xf]  ;;  %v4553_v20 = vld [vmem:[#allocation2 + $0x2c] sm:$0xf0] }
  0x30   :  { %363 = vmatpush.bf16.msra.mxu2 %v3158_v24  ;;  %376 = vmatpush.bf16.msra.mxu3 %v3162_v25  ;;  %v3317_v21 = vld [vmem:[#allocation2 + $0x120] sm:$0xf]  ;;  %v4585_v22 = vld [vmem:[#allocation2 + $0x12c] sm:$0xf0]  ;;  %v3190_v27 = vor.u32 %v4553_v20, %v3189_v19 }
  0x31   :  { %1963 = vmatpush.bf16.msrb.mxu1 %v3366_v59  ;;  %v3509_v23 = vld [vmem:[#allocation2 + $0x2a0] sm:$0xf]  ;;  %v4633_v24 = vld [vmem:[#allocation2 + $0x2ac] sm:$0xf0]  ;;  %v3318_v29 = vor.u32 %v4585_v22, %v3317_v21 }
  0x32   :  { %1950 = vmatpush.bf16.msrb.mxu0 %v3238_v55  ;;  %v3637_v25 = vld [vmem:[#allocation2 + $0x3a0] sm:$0xf]  ;;  %v4665_v26 = vld [vmem:[#allocation2 + $0x3ac] sm:$0xf0]  ;;  %v3510_v30 = vor.u32 %v4633_v24, %v3509_v23 }
  0x33   :  { %v3173_v28 = vld [vmem:[#allocation2] sm:$0xf]  ;;  %v4549_v31 = vld [vmem:[#allocation2 + $0xc] sm:$0xf0] }
  0x34   :  { %364 = vmatpush.bf16.msra.mxu2 %v3126_v34  ;;  %377 = vmatpush.bf16.msra.mxu3 %v3130_v37  ;;  %v3301_v32 = vld [vmem:[#allocation2 + $0x100] sm:$0xf]  ;;  %v4581_v33 = vld [vmem:[#allocation2 + $0x10c] sm:$0xf0]  ;;  %v3638_v34 = vor.u32 %v4665_v26, %v3637_v25  ;;  %v3174_v41 = vor.u32 %v4549_v31, %v3173_v28 }
  0x35   :  { %1964 = vmatpush.bf16.msrb.mxu1 %v3350_v9  ;;  %v3493_v35 = vld [vmem:[#allocation2 + $0x280] sm:$0xf]  ;;  %v4629_v36 = vld [vmem:[#allocation2 + $0x28c] sm:$0xf0]  ;;  %v3302_v44 = vor.u32 %v4581_v33, %v3301_v32 }
  0x36   :  { %1951 = vmatpush.bf16.msrb.mxu0 %v3222_v4  ;;  %v3621_v37 = vld [vmem:[#allocation2 + $0x380] sm:$0xf]  ;;  %v4661_v38 = vld [vmem:[#allocation2 + $0x38c] sm:$0xf0]  ;;  %v3494_v45 = vor.u32 %v4629_v36, %v3493_v35 }
  0x37   :  { %v3797_v39 = vld [vmem:[#allocation2 + $0x4e0] sm:$0xf]  ;;  %v4705_v40 = vld [vmem:[#allocation2 + $0x4ec] sm:$0xf0]  ;;  %v3622_v47 = vor.u32 %v4661_v38, %v3621_v37 }
  0x38   :  { %365 = vmatpush.bf16.msra.mxu2 %v3094_v46  ;;  %378 = vmatpush.bf16.msra.mxu3 %v3098_v51  ;;  %v3925_v42 = vld [vmem:[#allocation2 + $0x5e0] sm:$0xf]  ;;  %v4737_v43 = vld [vmem:[#allocation2 + $0x5ec] sm:$0xf0]  ;;  %v3798_v49 = vor.u32 %v4705_v40, %v3797_v39 }
  0x39   :  { %1965 = vmatpush.bf16.msrb.mxu1 %v3334_v18  ;;  %v3477_v46 = vld [vmem:[#allocation2 + $0x260] sm:$0xf]  ;;  %v4625_v50 = vld [vmem:[#allocation2 + $0x26c] sm:$0xf0]  ;;  %v3926_v53 = vor.u32 %v4737_v43, %v3925_v42 }
  0x3a   :  { %1952 = vmatpush.bf16.msrb.mxu0 %v3206_v16  ;;  %v3605_v51 = vld [vmem:[#allocation2 + $0x360] sm:$0xf]  ;;  %v4657_v52 = vld [vmem:[#allocation2 + $0x36c] sm:$0xf0]  ;;  %v3478_v57 = vor.u32 %v4625_v50, %v3477_v46 }
  0x3b   :  { %v3781_v54 = vld [vmem:[#allocation2 + $0x4c0] sm:$0xf]  ;;  %v4701_v55 = vld [vmem:[#allocation2 + $0x4cc] sm:$0xf0]  ;;  %v3606_v58 = vor.u32 %v4657_v52, %v3605_v51 }
  0x3c   :  { %366 = vmatpush.bf16.msra.mxu2 %v3062_v63  ;;  %379 = vmatpush.bf16.msra.mxu3 %v3066_v2  ;;  %v4733_v56 = vld [vmem:[#allocation2 + $0x5cc] sm:$0xf0]  ;;  %v3782_v59 = vor.u32 %v4701_v55, %v3781_v54  ;;  %v3461_v60 = vld [vmem:[#allocation2 + $0x240] sm:$0xf] }
  0x3d   :  { %1966 = vmatpush.bf16.msrb.mxu1 %v3318_v29  ;;  %v4621_v61 = vld [vmem:[#allocation2 + $0x24c] sm:$0xf0]  ;;  %v3589_v62 = vld [vmem:[#allocation2 + $0x340] sm:$0xf] }
  0x3e   :  { %1953 = vmatpush.bf16.msrb.mxu0 %v3190_v27  ;;  %v4653_v0 = vld [vmem:[#allocation2 + $0x34c] sm:$0xf0]  ;;  %v3765_v1 = vld [vmem:[#allocation2 + $0x4a0] sm:$0xf] }
  0x3f   :  { %3169 = vmatmul.msk.bf16.vlgmr.msra.gmra.mxu2 %vm277_vm0, %v5107_v48  ;;  %3170 = vmatmul.msk.bf16.vlgmr.msra.gmra.mxu3 %vm277_vm0, %v5107_v48  ;;  %v3909_v48 = vld [vmem:[#allocation2 + $0x5c0] sm:$0xf]  ;;  %v4697_v2 = vld [vmem:[#allocation2 + $0x4ac] sm:$0xf0]  ;;  %v3590_v6 = vor.u32 %v4653_v0, %v3589_v62 }
  0x40   :  { %1973 = vmatpush.bf16.msrb.mxu2 %v3542_v3  ;;  %1986 = vmatpush.bf16.msrb.mxu3 %v3670_v5  ;;  %v3910_v63 = vor.u32 %v4733_v56, %v3909_v48  ;;  %v3893_v3 = vld [vmem:[#allocation2 + $0x5a0] sm:$0xf]  ;;  %v4729_v4 = vld [vmem:[#allocation2 + $0x5ac] sm:$0xf0]  ;;  %v3462_v5 = vor.u32 %v4621_v61, %v3461_v60  ;;  %v3766_v7 = vor.u32 %v4697_v2, %v3765_v1 }
  0x41   :  { %1967 = vmatpush.bf16.msrb.mxu1 %v3302_v44  ;;  %v3445_v8 = vld [vmem:[#allocation2 + $0x220] sm:$0xf]  ;;  %v4617_v9 = vld [vmem:[#allocation2 + $0x22c] sm:$0xf0]  ;;  %v3894_v11 = vor.u32 %v4729_v4, %v3893_v3 }
  0x42   :  { %1954 = vmatpush.bf16.msrb.mxu0 %v3174_v41  ;;  %v3573_v10 = vld [vmem:[#allocation2 + $0x320] sm:$0xf]  ;;  %v4649_v12 = vld [vmem:[#allocation2 + $0x32c] sm:$0xf0] }
  0x43   :  { %v3749_v13 = vld [vmem:[#allocation2 + $0x480] sm:$0xf]  ;;  %v4693_v14 = vld [vmem:[#allocation2 + $0x48c] sm:$0xf0]  ;;  %v3574_v19 = vor.u32 %v4649_v12, %v3573_v10 }
  0x44   :  { %1974 = vmatpush.bf16.msrb.mxu2 %v3526_v15  ;;  %1987 = vmatpush.bf16.msrb.mxu3 %v3654_v17  ;;  %v3877_v15 = vld [vmem:[#allocation2 + $0x580] sm:$0xf]  ;;  %v4725_v16 = vld [vmem:[#allocation2 + $0x58c] sm:$0xf0]  ;;  %v3446_v17 = vor.u32 %v4617_v9, %v3445_v8  ;;  %v3750_v20 = vor.u32 %v4693_v14, %v3749_v13 }
  0x45   :  { %2012 = vmatpush.bf16.msra.mxu1 %v3926_v53  ;;  %v3429_v18 = vld [vmem:[#allocation2 + $0x200] sm:$0xf]  ;;  %v4613_v21 = vld [vmem:[#allocation2 + $0x20c] sm:$0xf0]  ;;  %v3878_v24 = vor.u32 %v4725_v16, %v3877_v15 }
  0x46   :  { %1999 = vmatpush.bf16.msra.mxu0 %v3798_v49  ;;  %v3557_v22 = vld [vmem:[#allocation2 + $0x300] sm:$0xf]  ;;  %v4645_v23 = vld [vmem:[#allocation2 + $0x30c] sm:$0xf0]  ;;  %v3430_v31 = vor.u32 %v4613_v21, %v3429_v18 }
  0x47   :  { %v3733_v25 = vld [vmem:[#allocation2 + $0x460] sm:$0xf]  ;;  %v4689_v26 = vld [vmem:[#allocation2 + $0x46c] sm:$0xf0] }
  0x48   :  { %1975 = vmatpush.bf16.msrb.mxu2 %v3510_v30  ;;  %1988 = vmatpush.bf16.msrb.mxu3 %v3638_v34  ;;  %v3861_v27 = vld [vmem:[#allocation2 + $0x560] sm:$0xf]  ;;  %v4721_v28 = vld [vmem:[#allocation2 + $0x56c] sm:$0xf0]  ;;  %v3558_v34 = vor.u32 %v4645_v23, %v3557_v22  ;;  %v3734_v35 = vor.u32 %v4689_v26, %v3733_v25 }
  0x49   :  { %2013 = vmatpush.bf16.msra.mxu1 %v3910_v63  ;;  %v4053_v29 = vld [vmem:[#allocation2 + $0x6e0] sm:$0xf]  ;;  %v4769_v30 = vld [vmem:[#allocation2 + $0x6ec] sm:$0xf0]  ;;  %v3862_v36 = vor.u32 %v4721_v28, %v3861_v27 }
  0x4a   :  { %2000 = vmatpush.bf16.msra.mxu0 %v3782_v59  ;;  %v4181_v32 = vld [vmem:[#allocation2 + $0x7e0] sm:$0xf]  ;;  %v4801_v33 = vld [vmem:[#allocation2 + $0x7ec] sm:$0xf0]  ;;  %v4054_v37 = vor.u32 %v4769_v30, %v4053_v29 }
  0x4b   :  { %v3717_v38 = vld [vmem:[#allocation2 + $0x440] sm:$0xf]  ;;  %v4685_v39 = vld [vmem:[#allocation2 + $0x44c] sm:$0xf0]  ;;  %v4182_v41 = vor.u32 %v4801_v33, %v4181_v32 }
  0x4c   :  { %1976 = vmatpush.bf16.msrb.mxu2 %v3494_v45  ;;  %1989 = vmatpush.bf16.msrb.mxu3 %v3622_v47  ;;  %v3845_v40 = vld [vmem:[#allocation2 + $0x540] sm:$0xf]  ;;  %v4717_v42 = vld [vmem:[#allocation2 + $0x54c] sm:$0xf0]  ;;  %v3718_v47 = vor.u32 %v4685_v39, %v3717_v38 }
  0x4d   :  { %2014 = vmatpush.bf16.msra.mxu1 %v3894_v11  ;;  %v4037_v43 = vld [vmem:[#allocation2 + $0x6c0] sm:$0xf]  ;;  %v4765_v44 = vld [vmem:[#allocation2 + $0x6cc] sm:$0xf0]  ;;  %v3846_v49 = vor.u32 %v4717_v42, %v3845_v40  ;;  %v3287_v42 = vld [vmem:[#allocation2 + $0xf0] sm:$0xf0] }
  0x4e   :  { %2001 = vmatpush.bf16.msra.mxu0 %v3766_v7  ;;  %v4165_v45 = vld [vmem:[#allocation2 + $0x7c0] sm:$0xf]  ;;  %v4797_v46 = vld [vmem:[#allocation2 + $0x7cc] sm:$0xf0]  ;;  %v4038_v50 = vor.u32 %v4765_v44, %v4037_v43  ;;  %v4607_v44 = vld [vmem:[#allocation2 + $0x1e4] sm:$0xf] }
  0x4f   :  { %v4166_v51 = vor.u32 %v4797_v46, %v4165_v45  ;;  %v3701_v52 = vld [vmem:[#allocation2 + $0x420] sm:$0xf]  ;;  %v4681_v53 = vld [vmem:[#allocation2 + $0x42c] sm:$0xf0]  ;;  %v3415_v45 = vld [vmem:[#allocation2 + $0x1f0] sm:$0xf0] }
  0x50   :  { %1977 = vmatpush.bf16.msrb.mxu2 %v3478_v57  ;;  %1990 = vmatpush.bf16.msrb.mxu3 %v3606_v58  ;;  %v3702_v54 = vor.u32 %v4681_v53, %v3701_v52  ;;  %v3829_v55 = vld [vmem:[#allocation2 + $0x520] sm:$0xf]  ;;  %v4713_v48 = vld [vmem:[#allocation2 + $0x52c] sm:$0xf0]  ;;  %v3418_v53 = vor.u32 %v4607_v44, %v3415_v45  ;;  %v4587_v45 = vld [vmem:[#allocation2 + $0x144] sm:$0xf] }
  0x51   :  { %2015 = vmatpush.bf16.msra.mxu1 %v3878_v24  ;;  %v4021_v56 = vld [vmem:[#allocation2 + $0x6a0] sm:$0xf]  ;;  %v3830_v57 = vor.u32 %v4713_v48, %v3829_v55  ;;  %v4761_v58 = vld [vmem:[#allocation2 + $0x6ac] sm:$0xf0]  ;;  %v3271_v55 = vld [vmem:[#allocation2 + $0xd0] sm:$0xf0] }
  0x52   :  { %2002 = vmatpush.bf16.msra.mxu0 %v3750_v20  ;;  %v4149_v59 = vld [vmem:[#allocation2 + $0x7a0] sm:$0xf]  ;;  %v4793_v60 = vld [vmem:[#allocation2 + $0x7ac] sm:$0xf0]  ;;  %v4022_v61 = vor.u32 %v4761_v58, %v4021_v56  ;;  %v4603_v56 = vld [vmem:[#allocation2 + $0x1c4] sm:$0xf] }
  0x53   :  { %v4150_v62 = vor.u32 %v4793_v60, %v4149_v59  ;;  %v3685_v63 = vld [vmem:[#allocation2 + $0x400] sm:$0xf]  ;;  %v4677_v0 = vld [vmem:[#allocation2 + $0x40c] sm:$0xf0] }
  0x54   :  { %1978 = vmatpush.bf16.msrb.mxu2 %v3462_v5  ;;  %1991 = vmatpush.bf16.msrb.mxu3 %v3590_v6  ;;  %v3813_v1 = vld [vmem:[#allocation2 + $0x500] sm:$0xf]  ;;  %v3686_v2 = vor.u32 %v4677_v0, %v3685_v63  ;;  %v4709_v3 = vld [vmem:[#allocation2 + $0x50c] sm:$0xf0]  ;;  %v4567_v0 = vld [vmem:[#allocation2 + $0xa4] sm:$0xf] }
  0x55   :  { %2016 = vmatpush.bf16.msra.mxu1 %v3862_v36  ;;  %v4005_v4 = vld [vmem:[#allocation2 + $0x680] sm:$0xf]  ;;  %v4757_v5 = vld [vmem:[#allocation2 + $0x68c] sm:$0xf0]  ;;  %v3814_v6 = vor.u32 %v4709_v3, %v3813_v1  ;;  %v3255_v1 = vld [vmem:[#allocation2 + $0xb0] sm:$0xf0] }
  0x56   :  { %2003 = vmatpush.bf16.msra.mxu0 %v3734_v35  ;;  %v4006_v7 = vor.u32 %v4757_v5, %v4005_v4  ;;  %v4133_v8 = vld [vmem:[#allocation2 + $0x780] sm:$0xf]  ;;  %v4789_v9 = vld [vmem:[#allocation2 + $0x78c] sm:$0xf0]  ;;  %v3383_v3 = vld [vmem:[#allocation2 + $0x1b0] sm:$0xf0] }
  0x57   :  { %v4134_v10 = vor.u32 %v4789_v9, %v4133_v8  ;;  %v3989_v11 = vld [vmem:[#allocation2 + $0x660] sm:$0xf]  ;;  %v4753_v12 = vld [vmem:[#allocation2 + $0x66c] sm:$0xf0] }
  0x58   :  { %1979 = vmatpush.bf16.msrb.mxu2 %v3446_v17  ;;  %1992 = vmatpush.bf16.msrb.mxu3 %v3574_v19  ;;  %v4117_v13 = vld [vmem:[#allocation2 + $0x760] sm:$0xf]  ;;  %v3990_v14 = vor.u32 %v4753_v12, %v3989_v11  ;;  %v4785_v15 = vld [vmem:[#allocation2 + $0x76c] sm:$0xf0]  ;;  %v4563_v11 = vld [vmem:[#allocation2 + $0x84] sm:$0xf] }
  0x59   :  { %2017 = vmatpush.bf16.msra.mxu1 %v3846_v49  ;;  %v4118_v16 = vor.u32 %v4785_v15, %v4117_v13  ;;  %v3973_v17 = vld [vmem:[#allocation2 + $0x640] sm:$0xf]  ;;  %v4749_v18 = vld [vmem:[#allocation2 + $0x64c] sm:$0xf0]  ;;  %v3239_v12 = vld [vmem:[#allocation2 + $0x90] sm:$0xf0] }
  0x5a   :  { %2004 = vmatpush.bf16.msra.mxu0 %v3718_v47  ;;  %v4101_v19 = vld [vmem:[#allocation2 + $0x740] sm:$0xf]  ;;  %v3974_v20 = vor.u32 %v4749_v18, %v3973_v17  ;;  %v4781_v21 = vld [vmem:[#allocation2 + $0x74c] sm:$0xf0]  ;;  %v3367_v15 = vld [vmem:[#allocation2 + $0x190] sm:$0xf0] }
  0x5b   :  { %v4102_v22 = vor.u32 %v4781_v21, %v4101_v19  ;;  %v3957_v23 = vld [vmem:[#allocation2 + $0x620] sm:$0xf]  ;;  %v4745_v24 = vld [vmem:[#allocation2 + $0x62c] sm:$0xf0]  ;;  %v3242_v19 = vor.u32 %v4563_v11, %v3239_v12  ;;  %v3303_v12 = vld [vmem:[#allocation2 + $0x110] sm:$0xf0] }
  0x5c   :  { %1980 = vmatpush.bf16.msrb.mxu2 %v3430_v31  ;;  %1993 = vmatpush.bf16.msrb.mxu3 %v3558_v34  ;;  %v4085_v25 = vld [vmem:[#allocation2 + $0x720] sm:$0xf]  ;;  %v4777_v26 = vld [vmem:[#allocation2 + $0x72c] sm:$0xf0]  ;;  %v3958_v27 = vor.u32 %v4745_v24, %v3957_v23  ;;  %v4559_v23 = vld [vmem:[#allocation2 + $0x64] sm:$0xf] }
  0x5d   :  { %2018 = vmatpush.bf16.msra.mxu1 %v3830_v57  ;;  %v4086_v28 = vor.u32 %v4777_v26, %v4085_v25  ;;  %v3941_v29 = vld [vmem:[#allocation2 + $0x600] sm:$0xf]  ;;  %v4741_v30 = vld [vmem:[#allocation2 + $0x60c] sm:$0xf0]  ;;  %v3399_v57 = vld [vmem:[#allocation2 + $0x1d0] sm:$0xf0] }
  0x5e   :  { %2005 = vmatpush.bf16.msra.mxu0 %v3702_v54  ;;  %v4069_v31 = vld [vmem:[#allocation2 + $0x700] sm:$0xf]  ;;  %v3942_v32 = vor.u32 %v4741_v30, %v3941_v29  ;;  %v4773_v33 = vld [vmem:[#allocation2 + $0x70c] sm:$0xf0]  ;;  %v4571_v54 = vld [vmem:[#allocation2 + $0xc4] sm:$0xf]  ;;  %v3402_v63 = vor.u32 %v4603_v56, %v3399_v57 }
  0x5f   :  { %v4070_v34 = vor.u32 %v4773_v33, %v4069_v31  ;;  %v5221_v35 = vld [vmem:[%s5405_s2] sm:$0xff]  ;;  %v3274_v60 = vor.u32 %v4571_v54, %v3271_v55  ;;  %v3223_v24 = vld [vmem:[#allocation2 + $0x70] sm:$0xf0] }
  0x60   :  { %2025 = vmatpush.bf16.msra.mxu2 %v4054_v37  ;;  %2038 = vmatpush.bf16.msra.mxu3 %v4182_v41  ;;  %v101_v36 = vperm.slane %v5221_v35, 0  ;;  %v102_v37 = vperm.slane %v5221_v35, 1  ;;  %v4575_v41 = vld [vmem:[#allocation2 + $0xe4] sm:$0xf]  ;;  %v105_v58 = vperm.slane %v5221_v35, 4  ;;  %v104_v13 = vperm.slane %v5221_v35, 3 }
  0x61   :  { %2019 = vmatpush.bf16.msra.mxu1 %v3814_v6  ;;  %v3258_v6 = vor.u32 %v4567_v0, %v3255_v1  ;;  %v4591_v25 = vld [vmem:[#allocation2 + $0x164] sm:$0xf]  ;;  %v3543_v29 = vld [vmem:[#allocation2 + $0x2f0] sm:$0xf0] }
  0x62   :  { %2006 = vmatpush.bf16.msra.mxu0 %v3686_v2  ;;  %v4599_v2 = vld [vmem:[#allocation2 + $0x1a4] sm:$0xf]  ;;  %v3671_v33 = vld [vmem:[#allocation2 + $0x3f0] sm:$0xf0] }
  0x63   :  { %v3386_v9 = vor.u32 %v4599_v2, %v3383_v3  ;;  %v4551_v57 = vld [vmem:[#allocation2 + $0x24] sm:$0xf]  ;;  %v3511_v0 = vld [vmem:[#allocation2 + $0x2b0] sm:$0xf0]  ;;  %v107_v3 = vperm.slane %v5221_v35, 6 }
  0x64   :  { %2026 = vmatpush.bf16.msra.mxu2 %v4038_v50  ;;  %2039 = vmatpush.bf16.msra.mxu3 %v4166_v51  ;;  %v3290_v50 = vor.u32 %v4575_v41, %v3287_v42  ;;  %v3207_v41 = vld [vmem:[#allocation2 + $0x50] sm:$0xf0]  ;;  %v4663_v1 = vld [vmem:[#allocation2 + $0x3a4] sm:$0xf] }
  0x65   :  { %v3639_v2 = vld [vmem:[#allocation2 + $0x3b0] sm:$0xf0] }
  0x66   :  { %v3642_v11 = vor.u32 %v4663_v1, %v3639_v2  ;;  %v4615_v1 = vld [vmem:[#allocation2 + $0x224] sm:$0xf]  ;;  %v3447_v2 = vld [vmem:[#allocation2 + $0x230] sm:$0xf0] }
  0x68   :  { %2027 = vmatpush.bf16.msra.mxu2 %v4022_v61  ;;  %2040 = vmatpush.bf16.msra.mxu3 %v4150_v62  ;;  %v106_v61 = vperm.slane %v5221_v35, 5 }
  0x6c   :  { %2028 = vmatpush.bf16.msra.mxu2 %v4006_v7  ;;  %2041 = vmatpush.bf16.msra.mxu3 %v4134_v10  ;;  %v103_v10 = vperm.slane %v5221_v35, 2 }
  0x70   :  { %2029 = vmatpush.bf16.msra.mxu2 %v3990_v14  ;;  %2042 = vmatpush.bf16.msra.mxu3 %v4118_v16  ;;  %v4595_v14 = vld [vmem:[#allocation2 + $0x184] sm:$0xf] }
  0x74   :  { %2030 = vmatpush.bf16.msra.mxu2 %v3974_v20  ;;  %2043 = vmatpush.bf16.msra.mxu3 %v4102_v22  ;;  %v3370_v22 = vor.u32 %v4595_v14, %v3367_v15  ;;  %v3495_v14 = vld [vmem:[#allocation2 + $0x290] sm:$0xf0]  ;;  %v4659_v15 = vld [vmem:[#allocation2 + $0x384] sm:$0xf] }
  0x78   :  { %2031 = vmatpush.bf16.msra.mxu2 %v3958_v27  ;;  %2044 = vmatpush.bf16.msra.mxu3 %v4086_v28  ;;  %v3351_v27 = vld [vmem:[#allocation2 + $0x170] sm:$0xf0]  ;;  %v4639_v28 = vld [vmem:[#allocation2 + $0x2e4] sm:$0xf] }
  0x7c   :  { %2032 = vmatpush.bf16.msra.mxu2 %v3942_v32  ;;  %2045 = vmatpush.bf16.msra.mxu3 %v4070_v34  ;;  %v4671_v32 = vld [vmem:[#allocation2 + $0x3e4] sm:$0xf] }
  0x7d   :  { %v3674_v44 = vor.u32 %v4671_v32, %v3671_v33  ;;  %v3607_v32 = vld [vmem:[#allocation2 + $0x370] sm:$0xf0] }
  0xa2   :  { %v290_v38 = vpop.f32.mrf.mxu2  ;;  %v303_v40 = vpop.f32.mrf.mxu3 }
  0xa3   :  { %v291_v39 = vadd.f32 %v290_v38, %v101_v36  ;;  %v304_v43 = vadd.f32 %v303_v40, %v102_v37  ;;  %v342_v46 = vpop.f32.mrf.mxu0  ;;  %v355_v51 = vpop.f32.mrf.mxu1  ;;  %v3226_v38 = vor.u32 %v4559_v23, %v3223_v24  ;;  %v4555_v40 = vld [vmem:[#allocation2 + $0x44] sm:$0xf] }
  0xa4   :  { %v343_v5 = vadd.f32 %v342_v46, %v105_v58  ;;  %v356_v7 = vadd.f32 %v355_v51, %v106_v61  ;;  %v3335_v46 = vld [vmem:[#allocation2 + $0x150] sm:$0xf0]  ;;  %v3210_v55 = vor.u32 %v4555_v40, %v3207_v41  ;;  %v4583_v61 = vld [vmem:[#allocation2 + $0x124] sm:$0xf] }
  0xa5   :  { %v385_v47 = vmax.f32 %v291_v39, 0.0  ;;  %v386_v49 = vmax.f32 %v304_v43, 0.0  ;;  %v3354_v39 = vor.u32 %v4591_v25, %v3351_v27  ;;  %v3546_v43 = vor.u32 %v4639_v28, %v3543_v29  ;;  %v3655_v51 = vld [vmem:[#allocation2 + $0x3d0] sm:$0xf0]  ;;  %v4623_v25 = vld [vmem:[#allocation2 + $0x264] sm:$0xf] }
  0xa6   :  { %v389_v16 = vmax.f32 %v343_v5, 0.0  ;;  %v390_v18 = vmax.f32 %v356_v7, 0.0  ;;  %v3338_v56 = vor.u32 %v4587_v45, %v3335_v46  ;;  %v3191_v58 = vld [vmem:[#allocation2 + $0x30] sm:$0xf0]  ;;  %v4547_v7 = vld [vmem:[#allocation2 + $0x4] sm:$0xf] }
  0xa7   :  { %v5225_v52 = vpack.c.bf16 %v385_v47, %v385_v47  ;;  %v5227_v48 = vpack.c.bf16 %v386_v49, %v386_v49  ;;  %v4635_v47 = vld [vmem:[#allocation2 + $0x2c4] sm:$0xf]  ;;  %v3527_v49 = vld [vmem:[#allocation2 + $0x2d0] sm:$0xf0]  ;;  %v3194_v5 = vor.u32 %v4551_v57, %v3191_v58 }
  0xa8   :  { %v5235_v31 = vpack.c.bf16 %v389_v16, %v389_v16  ;;  %v5237_v36 = vpack.c.bf16 %v390_v18, %v390_v18  ;;  %v3623_v16 = vld [vmem:[#allocation2 + $0x390] sm:$0xf0]  ;;  %v4695_v57 = vld [vmem:[#allocation2 + $0x4a4] sm:$0xf] }
  0xa9   :  { %1955 = vmatmul.bf16.vlgmr.msrb.gmra.mxu0 %v5225_v52  ;;  %1968 = vmatmul.bf16.vlgmr.msrb.gmra.mxu1 %v5227_v48  ;;  %v3626_v28 = vor.u32 %v4659_v15, %v3623_v16  ;;  %v3479_v29 = vld [vmem:[#allocation2 + $0x270] sm:$0xf0]  ;;  %v4643_v15 = vld [vmem:[#allocation2 + $0x304] sm:$0xf] }
  0xaa   :  { %2051 = vmatpush.bf16.msrb.mxu0 %v3290_v50  ;;  %v292_v59 = vpop.f32.mrf.mxu2  ;;  %2064 = vmatpush.bf16.msrb.mxu1 %v3418_v53  ;;  %v305_v62 = vpop.f32.mrf.mxu3  ;;  %v4667_v50 = vld [vmem:[#allocation2 + $0x3c4] sm:$0xf]  ;;  %v3783_v40 = vld [vmem:[#allocation2 + $0x4d0] sm:$0xf0] }
  0xab   :  { %v344_v4 = vpop.f32.mrf.mxu0  ;;  %v357_v8 = vpop.f32.mrf.mxu1  ;;  %v3530_v59 = vor.u32 %v4635_v47, %v3527_v49  ;;  %v3319_v62 = vld [vmem:[#allocation2 + $0x130] sm:$0xf0]  ;;  %v3482_v47 = vor.u32 %v4623_v25, %v3479_v29 }
  0xac   :  { %v108_v4 = vperm.slane %v5221_v35, 7  ;;  %v3175_v8 = vld [vmem:[#allocation2 + $0x10] sm:$0xf0]  ;;  %v4735_v35 = vld [vmem:[#allocation2 + $0x5e4] sm:$0xf] }
  0xad   :  { %v3178_v23 = vor.u32 %v4547_v7, %v3175_v8  ;;  %v3767_v58 = vld [vmem:[#allocation2 + $0x4b0] sm:$0xf0]  ;;  %v4691_v7 = vld [vmem:[#allocation2 + $0x484] sm:$0xf] }
  0xae   :  { %2052 = vmatpush.bf16.msrb.mxu0 %v3274_v60  ;;  %2065 = vmatpush.bf16.msrb.mxu1 %v3402_v63  ;;  %v3658_v60 = vor.u32 %v4667_v50, %v3655_v51  ;;  %v4631_v63 = vld [vmem:[#allocation2 + $0x2a4] sm:$0xf]  ;;  %v3463_v51 = vld [vmem:[#allocation2 + $0x250] sm:$0xf0] }
  0xaf   :  { %v4619_v50 = vld [vmem:[#allocation2 + $0x244] sm:$0xf]  ;;  %v3751_v8 = vld [vmem:[#allocation2 + $0x490] sm:$0xf0] }
  0xb0   :  { %v3754_v16 = vor.u32 %v4691_v7, %v3751_v8  ;;  %v4183_v25 = vld [vmem:[#allocation2 + $0x7f0] sm:$0xf0]  ;;  %v4787_v7 = vld [vmem:[#allocation2 + $0x784] sm:$0xf] }
  0xb1   :  { %v4135_v8 = vld [vmem:[#allocation2 + $0x790] sm:$0xf0] }
  0xb2   :  { %2053 = vmatpush.bf16.msrb.mxu0 %v3258_v6  ;;  %v316_v17 = vpop.f32.mrf.mxu2  ;;  %2066 = vmatpush.bf16.msrb.mxu1 %v3386_v9  ;;  %v329_v21 = vpop.f32.mrf.mxu3  ;;  %v3322_v6 = vor.u32 %v4583_v61, %v3319_v62  ;;  %v4579_v9 = vld [vmem:[#allocation2 + $0x104] sm:$0xf] }
  0xb3   :  { %v317_v20 = vadd.f32 %v316_v17, %v103_v10  ;;  %v330_v26 = vadd.f32 %v329_v21, %v104_v13  ;;  %v3514_v10 = vor.u32 %v4631_v63, %v3511_v0  ;;  %v4627_v13 = vld [vmem:[#allocation2 + $0x284] sm:$0xf]  ;;  %v3306_v24 = vor.u32 %v4579_v9, %v3303_v12 }
  0xb4   :  { %v4703_v17 = vld [vmem:[#allocation2 + $0x4e4] sm:$0xf]  ;;  %v3498_v27 = vor.u32 %v4627_v13, %v3495_v14  ;;  %v3466_v63 = vor.u32 %v4619_v50, %v3463_v51  ;;  %v3431_v14 = vld [vmem:[#allocation2 + $0x210] sm:$0xf0] }
  0xb5   :  { %v387_v30 = vmax.f32 %v317_v20, 0.0  ;;  %v388_v34 = vmax.f32 %v330_v26, 0.0  ;;  %v3927_v20 = vld [vmem:[#allocation2 + $0x5f0] sm:$0xf0]  ;;  %v4723_v9 = vld [vmem:[#allocation2 + $0x584] sm:$0xf] }
  0xb6   :  { %2054 = vmatpush.bf16.msrb.mxu0 %v3242_v19  ;;  %2067 = vmatpush.bf16.msrb.mxu1 %v3370_v22  ;;  %v3799_v19 = vld [vmem:[#allocation2 + $0x4f0] sm:$0xf0]  ;;  %v4611_v13 = vld [vmem:[#allocation2 + $0x204] sm:$0xf] }
  0xb7   :  { %v5239_v37 = vpack.c.bf16 %v387_v30, %v387_v30  ;;  %v5241_v42 = vpack.c.bf16 %v388_v34, %v388_v34  ;;  %v4655_v30 = vld [vmem:[#allocation2 + $0x364] sm:$0xf]  ;;  %v3802_v34 = vor.u32 %v4703_v17, %v3799_v19  ;;  %v3703_v51 = vld [vmem:[#allocation2 + $0x430] sm:$0xf0] }
  0xb8   :  { %v3610_v49 = vor.u32 %v4655_v30, %v3607_v32  ;;  %v4687_v19 = vld [vmem:[#allocation2 + $0x464] sm:$0xf]  ;;  %v3719_v32 = vld [vmem:[#allocation2 + $0x450] sm:$0xf0] }
  0xb9   :  { %1981 = vmatmul.bf16.vlgmr.msrb.gmra.mxu2 %v5239_v37  ;;  %2007 = vmatmul.bf16.vlgmr.msra.gmra.mxu0 %v5235_v31  ;;  %v4683_v30 = vld [vmem:[#allocation2 + $0x444] sm:$0xf] }
  0xba   :  { %1994 = vmatmul.bf16.vlgmr.msrb.gmra.mxu3 %v5241_v42  ;;  %2020 = vmatmul.bf16.vlgmr.msra.gmra.mxu1 %v5237_v36  ;;  %v318_v53 = vpop.f32.mrf.mxu2  ;;  %v331_v54 = vpop.f32.mrf.mxu3  ;;  %v4679_v50 = vld [vmem:[#allocation2 + $0x424] sm:$0xf] }
  0xbb   :  { %2055 = vmatpush.bf16.msrb.mxu0 %v3226_v38  ;;  %2068 = vmatpush.bf16.msrb.mxu1 %v3354_v39  ;;  %v3930_v38 = vor.u32 %v4735_v35, %v3927_v20  ;;  %v4699_v39 = vld [vmem:[#allocation2 + $0x4c4] sm:$0xf]  ;;  %v3735_v35 = vld [vmem:[#allocation2 + $0x470] sm:$0xf0] }
  0xbc   :  { %2077 = vmatpush.bf16.msrb.mxu2 %v3546_v43  ;;  %2090 = vmatpush.bf16.msrb.mxu3 %v3674_v44  ;;  %v4731_v43 = vld [vmem:[#allocation2 + $0x5c4] sm:$0xf]  ;;  %v3911_v44 = vld [vmem:[#allocation2 + $0x5d0] sm:$0xf0]  ;;  %v3786_v53 = vor.u32 %v4699_v39, %v3783_v40 }
  0xbd   :  { %v3914_v54 = vor.u32 %v4731_v43, %v3911_v44  ;;  %v4719_v20 = vld [vmem:[#allocation2 + $0x564] sm:$0xf]  ;;  %v3847_v39 = vld [vmem:[#allocation2 + $0x550] sm:$0xf0] }
  0xbe   :  { %v4763_v40 = vld [vmem:[#allocation2 + $0x6c4] sm:$0xf]  ;;  %v4167_v44 = vld [vmem:[#allocation2 + $0x7d0] sm:$0xf0] }
  0xbf   :  { %2056 = vmatpush.bf16.msrb.mxu0 %v3210_v55  ;;  %2069 = vmatpush.bf16.msrb.mxu1 %v3338_v56  ;;  %v4651_v55 = vld [vmem:[#allocation2 + $0x344] sm:$0xf]  ;;  %v3591_v56 = vld [vmem:[#allocation2 + $0x350] sm:$0xf0] }
  0xc0   :  { %2078 = vmatpush.bf16.msrb.mxu2 %v3530_v59  ;;  %2091 = vmatpush.bf16.msrb.mxu3 %v3658_v60  ;;  %v4727_v59 = vld [vmem:[#allocation2 + $0x5a4] sm:$0xf]  ;;  %v3895_v60 = vld [vmem:[#allocation2 + $0x5b0] sm:$0xf0]  ;;  %v3594_v0 = vor.u32 %v4651_v55, %v3591_v56 }
  0xc1   :  { %v4795_v43 = vld [vmem:[#allocation2 + $0x7c4] sm:$0xf]  ;;  %v3831_v56 = vld [vmem:[#allocation2 + $0x530] sm:$0xf0] }
  0xc2   :  { %v368_v18 = vpop.f32.mrf.mxu2  ;;  %v381_v22 = vpop.f32.mrf.mxu3  ;;  %v4711_v55 = vld [vmem:[#allocation2 + $0x524] sm:$0xf] }
  0xc3   :  { %2057 = vmatpush.bf16.msrb.mxu0 %v3194_v5  ;;  %2070 = vmatpush.bf16.msrb.mxu1 %v3322_v6  ;;  %v369_v21 = vadd.f32 %v368_v18, %v107_v3  ;;  %v382_v26 = vadd.f32 %v381_v22, %v108_v4  ;;  %v3770_v3 = vor.u32 %v4695_v57, %v3767_v58  ;;  %v4647_v5 = vld [vmem:[#allocation2 + $0x324] sm:$0xf]  ;;  %v3575_v6 = vld [vmem:[#allocation2 + $0x330] sm:$0xf0] }
  0xc4   :  { %2079 = vmatpush.bf16.msrb.mxu2 %v3514_v10  ;;  %2092 = vmatpush.bf16.msrb.mxu3 %v3642_v11  ;;  %v3898_v4 = vor.u32 %v4727_v59, %v3895_v60  ;;  %v3879_v10 = vld [vmem:[#allocation2 + $0x590] sm:$0xf0]  ;;  %v3450_v11 = vor.u32 %v4615_v1, %v3447_v2  ;;  %v3578_v12 = vor.u32 %v4647_v5, %v3575_v6  ;;  %v4767_v22 = vld [vmem:[#allocation2 + $0x6e4] sm:$0xf] }
  0xc5   :  { %v391_v33 = vmax.f32 %v369_v21, 0.0  ;;  %v392_v41 = vmax.f32 %v382_v26, 0.0  ;;  %v3882_v17 = vor.u32 %v4723_v9, %v3879_v10  ;;  %v3559_v18 = vld [vmem:[#allocation2 + $0x310] sm:$0xf0]  ;;  %v3434_v26 = vor.u32 %v4611_v13, %v3431_v14  ;;  %v4759_v57 = vld [vmem:[#allocation2 + $0x6a4] sm:$0xf] }
  0xc6   :  { %v3863_v21 = vld [vmem:[#allocation2 + $0x570] sm:$0xf0]  ;;  %v4791_v59 = vld [vmem:[#allocation2 + $0x7a4] sm:$0xf]  ;;  %v3293_v9 = vld [vmem:[#allocation2 + $0xe8] sm:$0xf] }
  0xc7   :  { %v5249_v45 = vpack.c.bf16 %v391_v33, %v391_v33  ;;  %2058 = vmatpush.bf16.msrb.mxu0 %v3178_v23  ;;  %2071 = vmatpush.bf16.msrb.mxu1 %v3306_v24  ;;  %v5251_v46 = vpack.c.bf16 %v392_v41, %v392_v41  ;;  %v4055_v23 = vld [vmem:[#allocation2 + $0x6f0] sm:$0xf0]  ;;  %v4799_v24 = vld [vmem:[#allocation2 + $0x7e4] sm:$0xf]  ;;  %v3866_v29 = vor.u32 %v4719_v20, %v3863_v21  ;;  %v4578_v10 = vld [vmem:[#allocation2 + $0xf4] sm:$0xf0] }
  0xc8   :  { %2080 = vmatpush.bf16.msrb.mxu2 %v3498_v27  ;;  %2093 = vmatpush.bf16.msrb.mxu3 %v3626_v28  ;;  %v3562_v27 = vor.u32 %v4643_v15, %v3559_v18  ;;  %v3738_v28 = vor.u32 %v4687_v19, %v3735_v35  ;;  %v4058_v33 = vor.u32 %v4767_v22, %v4055_v23  ;;  %v4039_v41 = vld [vmem:[#allocation2 + $0x6d0] sm:$0xf0]  ;;  %v4707_v1 = vld [vmem:[#allocation2 + $0x504] sm:$0xf]  ;;  %v3277_v22 = vld [vmem:[#allocation2 + $0xc8] sm:$0xf] }
  0xc9   :  { %2033 = vmatmul.bf16.vlgmr.msra.gmra.mxu2 %v5249_v45  ;;  %v4023_v58 = vld [vmem:[#allocation2 + $0x6b0] sm:$0xf0]  ;;  %v4755_v5 = vld [vmem:[#allocation2 + $0x684] sm:$0xf]  ;;  %v3294_v19 = vor.u32 %v4578_v10, %v3293_v9  ;;  %v4574_v23 = vld [vmem:[#allocation2 + $0xd4] sm:$0xf0] }
  0xca   :  { %2046 = vmatmul.bf16.vlgmr.msra.gmra.mxu3 %v5251_v46  ;;  %v370_v61 = vpop.f32.mrf.mxu2  ;;  %2059 = vmatmul.bf16.vlgmr.msrb.gmra.mxu0 %v5225_v52  ;;  %v383_v62 = vpop.f32.mrf.mxu3  ;;  %v4151_v60 = vld [vmem:[#allocation2 + $0x7b0] sm:$0xf0]  ;;  %v4026_v2 = vor.u32 %v4759_v57, %v4023_v58  ;;  %v4783_v20 = vld [vmem:[#allocation2 + $0x764] sm:$0xf]  ;;  %v3373_v57 = vld [vmem:[#allocation2 + $0x188] sm:$0xf] }
  0xcb   :  { %2103 = vmatpush.bf16.msra.mxu0 %v3802_v34  ;;  %2116 = vmatpush.bf16.msra.mxu1 %v3930_v38  ;;  %v4186_v34 = vor.u32 %v4799_v24, %v4183_v25  ;;  %v4715_v38 = vld [vmem:[#allocation2 + $0x544] sm:$0xf]  ;;  %v3706_v61 = vor.u32 %v4679_v50, %v3703_v51  ;;  %v3834_v62 = vor.u32 %v4711_v55, %v3831_v56  ;;  %v4007_v6 = vld [vmem:[#allocation2 + $0x690] sm:$0xf0]  ;;  %v3405_v24 = vld [vmem:[#allocation2 + $0x1c8] sm:$0xf] }
  0xcc   :  { %2072 = vmatmul.bf16.vlgmr.msrb.gmra.mxu1 %v5227_v48  ;;  %2081 = vmatpush.bf16.msrb.mxu2 %v3482_v47  ;;  %v3722_v47 = vor.u32 %v4683_v30, %v3719_v32  ;;  %v4010_v15 = vor.u32 %v4755_v5, %v4007_v6  ;;  %v3991_v18 = vld [vmem:[#allocation2 + $0x670] sm:$0xf0]  ;;  %v4606_v25 = vld [vmem:[#allocation2 + $0x1d4] sm:$0xf0]  ;;  %v3278_v30 = vor.u32 %v4574_v23, %v3277_v22  ;;  %v3245_v55 = vld [vmem:[#allocation2 + $0x88] sm:$0xf] }
  0xcd   :  { %2094 = vmatpush.bf16.msrb.mxu3 %v3610_v49  ;;  %v3850_v49 = vor.u32 %v4715_v38, %v3847_v39  ;;  %v4119_v21 = vld [vmem:[#allocation2 + $0x770] sm:$0xf0]  ;;  %v3406_v32 = vor.u32 %v4606_v25, %v3405_v24  ;;  %v3261_v38 = vld [vmem:[#allocation2 + $0xa8] sm:$0xf]  ;;  %v4570_v39 = vld [vmem:[#allocation2 + $0xb4] sm:$0xf0] }
  0xce   :  { %v3262_v50 = vor.u32 %v4570_v39, %v3261_v38  ;;  %v4566_v56 = vld [vmem:[#allocation2 + $0x94] sm:$0xf0]  ;;  %v3357_v5 = vld [vmem:[#allocation2 + $0x168] sm:$0xf] }
  0xcf   :  { %2104 = vmatpush.bf16.msra.mxu0 %v3786_v53  ;;  %2117 = vmatpush.bf16.msra.mxu1 %v3914_v54  ;;  %v4042_v53 = vor.u32 %v4763_v40, %v4039_v41  ;;  %v4170_v54 = vor.u32 %v4795_v43, %v4167_v44  ;;  %v3389_v40 = vld [vmem:[#allocation2 + $0x1a8] sm:$0xf]  ;;  %v4602_v41 = vld [vmem:[#allocation2 + $0x1b4] sm:$0xf0] }
  0xd0   :  { %2082 = vmatpush.bf16.msrb.mxu2 %v3466_v63  ;;  %v4675_v63 = vld [vmem:[#allocation2 + $0x404] sm:$0xf]  ;;  %v3390_v51 = vor.u32 %v4602_v41, %v3389_v40  ;;  %v4598_v58 = vld [vmem:[#allocation2 + $0x194] sm:$0xf0]  ;;  %v3677_v9 = vld [vmem:[#allocation2 + $0x3e8] sm:$0xf] }
  0xd1   :  { %2095 = vmatpush.bf16.msrb.mxu3 %v3594_v0  ;;  %v3687_v0 = vld [vmem:[#allocation2 + $0x410] sm:$0xf0]  ;;  %v4594_v6 = vld [vmem:[#allocation2 + $0x174] sm:$0xf0]  ;;  %v3661_v22 = vld [vmem:[#allocation2 + $0x3c8] sm:$0xf] }
  0xd2   :  { %v3690_v13 = vor.u32 %v4675_v63, %v3687_v0  ;;  %v4771_v63 = vld [vmem:[#allocation2 + $0x704] sm:$0xf]  ;;  %v3246_v0 = vor.u32 %v4566_v56, %v3245_v55  ;;  %v4674_v10 = vld [vmem:[#allocation2 + $0x3f4] sm:$0xf0]  ;;  %v3645_v38 = vld [vmem:[#allocation2 + $0x3a8] sm:$0xf] }
  0xd3   :  { %2105 = vmatpush.bf16.msra.mxu0 %v3770_v3  ;;  %2118 = vmatpush.bf16.msra.mxu1 %v3898_v4  ;;  %v4154_v3 = vor.u32 %v4791_v59, %v4151_v60  ;;  %v3815_v4 = vld [vmem:[#allocation2 + $0x510] sm:$0xf0]  ;;  %v4670_v23 = vld [vmem:[#allocation2 + $0x3d4] sm:$0xf0]  ;;  %v3629_v55 = vld [vmem:[#allocation2 + $0x388] sm:$0xf] }
  0xd4   :  { %2083 = vmatpush.bf16.msrb.mxu2 %v3450_v11  ;;  %v3421_v11 = vld [vmem:[#allocation2 + $0x1e8] sm:$0xf]  ;;  %v3818_v14 = vor.u32 %v4707_v1, %v3815_v4  ;;  %v3374_v1 = vor.u32 %v4598_v58, %v3373_v57  ;;  %v4562_v4 = vld [vmem:[#allocation2 + $0x74] sm:$0xf0] }
  0xd5   :  { %2096 = vmatpush.bf16.msrb.mxu3 %v3578_v12  ;;  %v4610_v12 = vld [vmem:[#allocation2 + $0x1f4] sm:$0xf0]  ;;  %v3805_v57 = vld [vmem:[#allocation2 + $0x4e8] sm:$0xf] }
  0xd6   :  { %v3422_v35 = vor.u32 %v4610_v12, %v3421_v11  ;;  %v4666_v39 = vld [vmem:[#allocation2 + $0x3b4] sm:$0xf0] }
  0xd7   :  { %2106 = vmatpush.bf16.msra.mxu0 %v3754_v16  ;;  %2119 = vmatpush.bf16.msra.mxu1 %v3882_v17  ;;  %v4138_v16 = vor.u32 %v4787_v7, %v4135_v8  ;;  %v4751_v17 = vld [vmem:[#allocation2 + $0x664] sm:$0xf]  ;;  %v3549_v7 = vld [vmem:[#allocation2 + $0x2e8] sm:$0xf]  ;;  %v4642_v8 = vld [vmem:[#allocation2 + $0x2f4] sm:$0xf0] }
  0xd8   :  { %2084 = vmatpush.bf16.msrb.mxu2 %v3434_v26  ;;  %v3994_v26 = vor.u32 %v4751_v17, %v3991_v18  ;;  %v3550_v17 = vor.u32 %v4642_v8, %v3549_v7  ;;  %v3678_v18 = vor.u32 %v4674_v10, %v3677_v9  ;;  %v4662_v56 = vld [vmem:[#allocation2 + $0x394] sm:$0xf0]  ;;  %v3789_v7 = vld [vmem:[#allocation2 + $0x4c8] sm:$0xf] }
  0xd9   :  { %2097 = vmatpush.bf16.msrb.mxu3 %v3562_v27  ;;  %v4122_v27 = vor.u32 %v4783_v20, %v4119_v21  ;;  %v3533_v20 = vld [vmem:[#allocation2 + $0x2c8] sm:$0xf]  ;;  %v4638_v21 = vld [vmem:[#allocation2 + $0x2d4] sm:$0xf0] }
  0xda   :  { %v4706_v58 = vld [vmem:[#allocation2 + $0x4f4] sm:$0xf0]  ;;  %v3917_v9 = vld [vmem:[#allocation2 + $0x5c8] sm:$0xf] }
  0xdb   :  { %2107 = vmatpush.bf16.msra.mxu0 %v3738_v28  ;;  %2120 = vmatpush.bf16.msra.mxu1 %v3866_v29  ;;  %v4747_v28 = vld [vmem:[#allocation2 + $0x644] sm:$0xf]  ;;  %v3975_v29 = vld [vmem:[#allocation2 + $0x650] sm:$0xf0]  ;;  %v4702_v8 = vld [vmem:[#allocation2 + $0x4d4] sm:$0xf0] }
  0xdc   :  { %2129 = vmatpush.bf16.msra.mxu2 %v4058_v33  ;;  %2098 = vmatmul.bf16.vlgmr.msrb.gmra.mxu3 %v5241_v42  ;;  %v4779_v33 = vld [vmem:[#allocation2 + $0x744] sm:$0xf]  ;;  %v3978_v43 = vor.u32 %v4747_v28, %v3975_v29  ;;  %v3534_v28 = vor.u32 %v4638_v21, %v3533_v20  ;;  %v3662_v29 = vor.u32 %v4670_v23, %v3661_v22  ;;  %v4734_v10 = vld [vmem:[#allocation2 + $0x5d4] sm:$0xf0]  ;;  %v3901_v20 = vld [vmem:[#allocation2 + $0x5a8] sm:$0xf] }
  0xdd   :  { %2142 = vmatpush.bf16.msra.mxu3 %v4186_v34  ;;  %2085 = vmatmul.bf16.vlgmr.msrb.gmra.mxu2 %v5239_v37  ;;  %v4103_v34 = vld [vmem:[#allocation2 + $0x750] sm:$0xf0]  ;;  %v4730_v21 = vld [vmem:[#allocation2 + $0x5b4] sm:$0xf0] }
  0xde   :  { %v4106_v44 = vor.u32 %v4779_v33, %v4103_v34  ;;  %v3517_v33 = vld [vmem:[#allocation2 + $0x2a8] sm:$0xf]  ;;  %v4634_v34 = vld [vmem:[#allocation2 + $0x2b4] sm:$0xf0] }
  0xdf   :  { %2108 = vmatpush.bf16.msra.mxu0 %v3722_v47  ;;  %2121 = vmatpush.bf16.msra.mxu1 %v3850_v49  ;;  %v4743_v47 = vld [vmem:[#allocation2 + $0x624] sm:$0xf]  ;;  %v3959_v49 = vld [vmem:[#allocation2 + $0x630] sm:$0xf0] }
  0xe0   :  { %2130 = vmatpush.bf16.msra.mxu2 %v4042_v53  ;;  %v4775_v53 = vld [vmem:[#allocation2 + $0x724] sm:$0xf]  ;;  %v3962_v59 = vor.u32 %v4743_v47, %v3959_v49  ;;  %v3309_v47 = vld [vmem:[#allocation2 + $0x108] sm:$0xf]  ;;  %v3518_v49 = vor.u32 %v4634_v34, %v3517_v33  ;;  %v4726_v34 = vld [vmem:[#allocation2 + $0x594] sm:$0xf0] }
  0xe1   :  { %2143 = vmatpush.bf16.msra.mxu3 %v4170_v54  ;;  %v4087_v54 = vld [vmem:[#allocation2 + $0x730] sm:$0xf0]  ;;  %v3885_v33 = vld [vmem:[#allocation2 + $0x588] sm:$0xf] }
  0xe2   :  { %v4090_v60 = vor.u32 %v4775_v53, %v4087_v54  ;;  %v3501_v53 = vld [vmem:[#allocation2 + $0x288] sm:$0xf]  ;;  %v4630_v54 = vld [vmem:[#allocation2 + $0x294] sm:$0xf0] }
  0xe3   :  { %2109 = vmatpush.bf16.msra.mxu0 %v3706_v61  ;;  %2122 = vmatpush.bf16.msra.mxu1 %v3834_v62  ;;  %v4739_v61 = vld [vmem:[#allocation2 + $0x604] sm:$0xf]  ;;  %v3943_v62 = vld [vmem:[#allocation2 + $0x610] sm:$0xf0] }
  0xe4   :  { %2131 = vmatpush.bf16.msra.mxu2 %v4026_v2  ;;  %v4071_v2 = vld [vmem:[#allocation2 + $0x710] sm:$0xf0]  ;;  %v3946_v11 = vor.u32 %v4739_v61, %v3943_v62 }
  0xe5   :  { %2144 = vmatpush.bf16.msra.mxu3 %v4154_v3  ;;  %v3229_v3 = vld [vmem:[#allocation2 + $0x68] sm:$0xf]  ;;  %v4074_v12 = vor.u32 %v4771_v63, %v4071_v2  ;;  %v3502_v63 = vor.u32 %v4630_v54, %v3501_v53  ;;  %v4626_v2 = vld [vmem:[#allocation2 + $0x274] sm:$0xf0] }
  0xe6   :  { %v3869_v53 = vld [vmem:[#allocation2 + $0x568] sm:$0xf]  ;;  %v4722_v54 = vld [vmem:[#allocation2 + $0x574] sm:$0xf0] }
  0xe7   :  { %2110 = vmatpush.bf16.msra.mxu0 %v3690_v13  ;;  %2123 = vmatpush.bf16.msra.mxu1 %v3818_v14  ;;  %v3230_v13 = vor.u32 %v4562_v4, %v3229_v3  ;;  %v3358_v14 = vor.u32 %v4594_v6, %v3357_v5  ;;  %v3806_v3 = vor.u32 %v4706_v58, %v3805_v57  ;;  %v3613_v5 = vld [vmem:[#allocation2 + $0x368] sm:$0xf]  ;;  %v4658_v6 = vld [vmem:[#allocation2 + $0x374] sm:$0xf0] }
  0xe8   :  { %2132 = vmatpush.bf16.msra.mxu2 %v4010_v15  ;;  %v3213_v15 = vld [vmem:[#allocation2 + $0x48] sm:$0xf]  ;;  %v4802_v58 = vld [vmem:[#allocation2 + $0x7f4] sm:$0xf0] }
  0xe9   :  { %2145 = vmatpush.bf16.msra.mxu3 %v4138_v16  ;;  %v4558_v16 = vld [vmem:[#allocation2 + $0x54] sm:$0xf0]  ;;  %v4189_v57 = vld [vmem:[#allocation2 + $0x7e8] sm:$0xf] }
  0xea   :  { %2111 = vmatmul.bf16.vlgmr.msra.gmra.mxu0 %v5235_v31  ;;  %2124 = vmatmul.bf16.vlgmr.msra.gmra.mxu1 %v5237_v36  ;;  %v3214_v24 = vor.u32 %v4558_v16, %v3213_v15  ;;  %v3790_v15 = vor.u32 %v4702_v8, %v3789_v7  ;;  %v3918_v16 = vor.u32 %v4734_v10, %v3917_v9  ;;  %v4173_v7 = vld [vmem:[#allocation2 + $0x7c8] sm:$0xf]  ;;  %v4798_v8 = vld [vmem:[#allocation2 + $0x7d4] sm:$0xf0] }
  0xeb   :  { %2155 = vmatpush.bf16.msrb.mxu0 %v3294_v19  ;;  %2168 = vmatpush.bf16.msrb.mxu1 %v3422_v35  ;;  %v3341_v19 = vld [vmem:[#allocation2 + $0x148] sm:$0xf]  ;;  %v4590_v35 = vld [vmem:[#allocation2 + $0x154] sm:$0xf0] }
  0xec   :  { %2133 = vmatpush.bf16.msra.mxu2 %v3994_v26  ;;  %v3342_v25 = vor.u32 %v4590_v35, %v3341_v19  ;;  %v3197_v26 = vld [vmem:[#allocation2 + $0x28] sm:$0xf]  ;;  %v4698_v35 = vld [vmem:[#allocation2 + $0x4b4] sm:$0xf0] }
  0xed   :  { %2146 = vmatpush.bf16.msra.mxu3 %v4122_v27  ;;  %v4554_v27 = vld [vmem:[#allocation2 + $0x34] sm:$0xf0]  ;;  %v3773_v19 = vld [vmem:[#allocation2 + $0x4a8] sm:$0xf] }
  0xee   :  { %v3198_v40 = vor.u32 %v4554_v27, %v3197_v26  ;;  %v3774_v26 = vor.u32 %v4698_v35, %v3773_v19  ;;  %v3902_v27 = vor.u32 %v4730_v21, %v3901_v20  ;;  %v4157_v19 = vld [vmem:[#allocation2 + $0x7a8] sm:$0xf]  ;;  %v4794_v35 = vld [vmem:[#allocation2 + $0x7b4] sm:$0xf0] }
  0xef   :  { %2156 = vmatpush.bf16.msrb.mxu0 %v3278_v30  ;;  %2169 = vmatpush.bf16.msrb.mxu1 %v3406_v32  ;;  %v3325_v30 = vld [vmem:[#allocation2 + $0x128] sm:$0xf]  ;;  %v4586_v32 = vld [vmem:[#allocation2 + $0x134] sm:$0xf0] }
  0xf0   :  { %2134 = vmatpush.bf16.msra.mxu2 %v3978_v43  ;;  %v3326_v41 = vor.u32 %v4586_v32, %v3325_v30  ;;  %v3181_v43 = vld [vmem:[#allocation2 + $0x8] sm:$0xf]  ;;  %v4694_v32 = vld [vmem:[#allocation2 + $0x494] sm:$0xf0] }
  0xf1   :  { %2147 = vmatpush.bf16.msra.mxu3 %v4106_v44  ;;  %v4550_v44 = vld [vmem:[#allocation2 + $0x14] sm:$0xf0]  ;;  %v3757_v30 = vld [vmem:[#allocation2 + $0x488] sm:$0xf] }
  0xf2   :  { %v3182_v61 = vor.u32 %v4550_v44, %v3181_v43  ;;  %v3565_v43 = vld [vmem:[#allocation2 + $0x308] sm:$0xf]  ;;  %v3758_v44 = vor.u32 %v4694_v32, %v3757_v30  ;;  %v4790_v32 = vld [vmem:[#allocation2 + $0x794] sm:$0xf0] }
  0xf3   :  { %2157 = vmatpush.bf16.msrb.mxu0 %v3262_v50  ;;  %2170 = vmatpush.bf16.msrb.mxu1 %v3390_v51  ;;  %v3646_v50 = vor.u32 %v4666_v39, %v3645_v38  ;;  %v4582_v51 = vld [vmem:[#allocation2 + $0x114] sm:$0xf0]  ;;  %v4141_v30 = vld [vmem:[#allocation2 + $0x788] sm:$0xf] }
  0xf4   :  { %2135 = vmatpush.bf16.msra.mxu2 %v3962_v59  ;;  %v3933_v59 = vld [vmem:[#allocation2 + $0x5e8] sm:$0xf]  ;;  %v3310_v62 = vor.u32 %v4582_v51, %v3309_v47  ;;  %v3886_v47 = vor.u32 %v4726_v34, %v3885_v33  ;;  %v4690_v51 = vld [vmem:[#allocation2 + $0x474] sm:$0xf0]  ;;  %v4576_v33 = vld [vmem:[#allocation2 + $0xec] sm:$0xf] }
  0xf5   :  { %2148 = vmatpush.bf16.msra.mxu3 %v4090_v60  ;;  %v4738_v60 = vld [vmem:[#allocation2 + $0x5f4] sm:$0xf0]  ;;  %v3295_v34 = vld [vmem:[#allocation2 + $0xf8] sm:$0xf0] }
  0xf6   :  { %v3934_v4 = vor.u32 %v4738_v60, %v3933_v59 }
  0xf7   :  { %2158 = vmatpush.bf16.msrb.mxu0 %v3246_v0  ;;  %2171 = vmatpush.bf16.msrb.mxu1 %v3374_v1  ;;  %v3630_v0 = vor.u32 %v4662_v56, %v3629_v55  ;;  %v3485_v1 = vld [vmem:[#allocation2 + $0x268] sm:$0xf]  ;;  %v4770_v56 = vld [vmem:[#allocation2 + $0x6f4] sm:$0xf0] }
  0xf8   :  { %2136 = vmatpush.bf16.msra.mxu2 %v3946_v11  ;;  %v3486_v11 = vor.u32 %v4626_v2, %v3485_v1  ;;  %v4061_v55 = vld [vmem:[#allocation2 + $0x6e8] sm:$0xf]  ;;  %v4190_v2 = vor.u32 %v4802_v58, %v4189_v57  ;;  %v4604_v57 = vld [vmem:[#allocation2 + $0x1cc] sm:$0xf]  ;;  %v3407_v58 = vld [vmem:[#allocation2 + $0x1d8] sm:$0xf0] }
  0xf9   :  { %2149 = vmatpush.bf16.msra.mxu3 %v4074_v12  ;;  %v3614_v12 = vor.u32 %v4658_v6, %v3613_v5  ;;  %v4062_v1 = vor.u32 %v4770_v56, %v4061_v55  ;;  %v4045_v5 = vld [vmem:[#allocation2 + $0x6c8] sm:$0xf]  ;;  %v4766_v6 = vld [vmem:[#allocation2 + $0x6d4] sm:$0xf0]  ;;  %v4572_v55 = vld [vmem:[#allocation2 + $0xcc] sm:$0xf] }
  0xfa   :  { %v3279_v56 = vld [vmem:[#allocation2 + $0xd8] sm:$0xf0] }
  0xfb   :  { %2159 = vmatpush.bf16.msrb.mxu0 %v3230_v13  ;;  %2172 = vmatpush.bf16.msrb.mxu1 %v3358_v14  ;;  %v3469_v13 = vld [vmem:[#allocation2 + $0x248] sm:$0xf]  ;;  %v4622_v14 = vld [vmem:[#allocation2 + $0x254] sm:$0xf0] }
  0xfc   :  { %2181 = vmatpush.bf16.msrb.mxu2 %v3550_v17  ;;  %2150 = vmatmul.bf16.vlgmr.msra.gmra.mxu3 %v5251_v46  ;;  %v3597_v17 = vld [vmem:[#allocation2 + $0x348] sm:$0xf]  ;;  %v3470_v22 = vor.u32 %v4622_v14, %v3469_v13  ;;  %v4046_v13 = vor.u32 %v4766_v6, %v4045_v5  ;;  %v4174_v14 = vor.u32 %v4798_v8, %v4173_v7  ;;  %v3263_v6 = vld [vmem:[#allocation2 + $0xb8] sm:$0xf0]  ;;  %v4600_v7 = vld [vmem:[#allocation2 + $0x1ac] sm:$0xf] }
  0xfd   :  { %2194 = vmatpush.bf16.msrb.mxu3 %v3678_v18  ;;  %2137 = vmatmul.bf16.vlgmr.msra.gmra.mxu2 %v5249_v45  ;;  %v4654_v18 = vld [vmem:[#allocation2 + $0x354] sm:$0xf0]  ;;  %v3391_v8 = vld [vmem:[#allocation2 + $0x1b8] sm:$0xf0] }
  0xfe   :  { %v3598_v23 = vor.u32 %v4654_v18, %v3597_v17  ;;  %v4029_v17 = vld [vmem:[#allocation2 + $0x6a8] sm:$0xf]  ;;  %v4762_v18 = vld [vmem:[#allocation2 + $0x6b4] sm:$0xf0] }
  0xff   :  { %2160 = vmatpush.bf16.msrb.mxu0 %v3214_v24  ;;  %2173 = vmatpush.bf16.msrb.mxu1 %v3342_v25  ;;  %v3453_v24 = vld [vmem:[#allocation2 + $0x228] sm:$0xf]  ;;  %v4618_v25 = vld [vmem:[#allocation2 + $0x234] sm:$0xf0] }
 0x100   :  { %2182 = vmatpush.bf16.msrb.mxu2 %v3534_v28  ;;  %v3581_v28 = vld [vmem:[#allocation2 + $0x328] sm:$0xf]  ;;  %v3454_v38 = vor.u32 %v4618_v25, %v3453_v24  ;;  %v4030_v25 = vor.u32 %v4762_v18, %v4029_v17 }
 0x101   :  { %2195 = vmatpush.bf16.msrb.mxu3 %v3662_v29  ;;  %v4650_v29 = vld [vmem:[#allocation2 + $0x334] sm:$0xf0]  ;;  %v3821_v24 = vld [vmem:[#allocation2 + $0x508] sm:$0xf] }
 0x102   :  { %v3582_v39 = vor.u32 %v4650_v29, %v3581_v28  ;;  %v4013_v28 = vld [vmem:[#allocation2 + $0x688] sm:$0xf]  ;;  %v4758_v29 = vld [vmem:[#allocation2 + $0x694] sm:$0xf0] }
 0x103   :  { %2161 = vmatpush.bf16.msrb.mxu0 %v3198_v40  ;;  %2174 = vmatpush.bf16.msrb.mxu1 %v3326_v41  ;;  %v3437_v40 = vld [vmem:[#allocation2 + $0x208] sm:$0xf]  ;;  %v4614_v41 = vld [vmem:[#allocation2 + $0x214] sm:$0xf0] }
 0x104   :  { %2183 = vmatpush.bf16.msrb.mxu2 %v3518_v49  ;;  %v4646_v49 = vld [vmem:[#allocation2 + $0x314] sm:$0xf0]  ;;  %v3438_v59 = vor.u32 %v4614_v41, %v3437_v40  ;;  %v4093_v18 = vld [vmem:[#allocation2 + $0x728] sm:$0xf] }
 0x105   :  { %2196 = vmatpush.bf16.msrb.mxu3 %v3646_v50  ;;  %v3741_v50 = vld [vmem:[#allocation2 + $0x468] sm:$0xf]  ;;  %v3566_v60 = vor.u32 %v4646_v49, %v3565_v43  ;;  %v4014_v43 = vor.u32 %v4758_v29, %v4013_v28  ;;  %v4754_v49 = vld [vmem:[#allocation2 + $0x674] sm:$0xf0] }
 0x106   :  { %v4077_v28 = vld [vmem:[#allocation2 + $0x708] sm:$0xf] }
 0x107   :  { %2162 = vmatpush.bf16.msrb.mxu0 %v3182_v61  ;;  %2175 = vmatpush.bf16.msrb.mxu1 %v3310_v62  ;;  %v3742_v61 = vor.u32 %v4690_v51, %v3741_v50  ;;  %v3870_v62 = vor.u32 %v4722_v54, %v3869_v53  ;;  %v4125_v50 = vld [vmem:[#allocation2 + $0x768] sm:$0xf]  ;;  %v3298_v51 = vor.u32 %v4576_v33, %v3295_v34  ;;  %v4786_v54 = vld [vmem:[#allocation2 + $0x774] sm:$0xf0]  ;;  %v4560_v33 = vld [vmem:[#allocation2 + $0x6c] sm:$0xf] }
 0x108   :  { %2184 = vmatpush.bf16.msrb.mxu2 %v3502_v63  ;;  %v3725_v63 = vld [vmem:[#allocation2 + $0x448] sm:$0xf]  ;;  %v3231_v34 = vld [vmem:[#allocation2 + $0x78] sm:$0xf0] }
 0x109   :  { %2197 = vmatpush.bf16.msrb.mxu3 %v3630_v0  ;;  %v4686_v0 = vld [vmem:[#allocation2 + $0x454] sm:$0xf0] }
 0x10a   :  { %2163 = vmatmul.bf16.vlgmr.msrb.gmra.mxu0 %v5225_v52  ;;  %2176 = vmatmul.bf16.vlgmr.msrb.gmra.mxu1 %v5227_v48  ;;  %v3726_v9 = vor.u32 %v4686_v0, %v3725_v63  ;;  %v4750_v63 = vld [vmem:[#allocation2 + $0x654] sm:$0xf0]  ;;  %v4109_v0 = vld [vmem:[#allocation2 + $0x748] sm:$0xf] }
 0x10b   :  { %2207 = vmatpush.bf16.msra.mxu0 %v3806_v3  ;;  %2220 = vmatpush.bf16.msra.mxu1 %v3934_v4  ;;  %v3853_v3 = vld [vmem:[#allocation2 + $0x548] sm:$0xf]  ;;  %v4718_v4 = vld [vmem:[#allocation2 + $0x554] sm:$0xf0] }
 0x10c   :  { %2185 = vmatpush.bf16.msrb.mxu2 %v3486_v11  ;;  %v3854_v10 = vor.u32 %v4718_v4, %v3853_v3  ;;  %v3709_v11 = vld [vmem:[#allocation2 + $0x428] sm:$0xf]  ;;  %v4782_v3 = vld [vmem:[#allocation2 + $0x754] sm:$0xf0]  ;;  %v4568_v4 = vld [vmem:[#allocation2 + $0xac] sm:$0xf] }
 0x10d   :  { %2198 = vmatpush.bf16.msrb.mxu3 %v3614_v12  ;;  %v4682_v12 = vld [vmem:[#allocation2 + $0x434] sm:$0xf0] }
 0x10e   :  { %v3710_v20 = vor.u32 %v4682_v12, %v3709_v11  ;;  %v3965_v12 = vld [vmem:[#allocation2 + $0x628] sm:$0xf] }
 0x10f   :  { %2208 = vmatpush.bf16.msra.mxu0 %v3790_v15  ;;  %2221 = vmatpush.bf16.msra.mxu1 %v3918_v16  ;;  %v3837_v15 = vld [vmem:[#allocation2 + $0x528] sm:$0xf]  ;;  %v4714_v16 = vld [vmem:[#allocation2 + $0x534] sm:$0xf0] }
 0x110   :  { %2186 = vmatpush.bf16.msrb.mxu2 %v3470_v22  ;;  %v3838_v21 = vor.u32 %v4714_v16, %v3837_v15  ;;  %v3693_v22 = vld [vmem:[#allocation2 + $0x408] sm:$0xf]  ;;  %v3394_v15 = vor.u32 %v4600_v7, %v3391_v8  ;;  %v4584_v8 = vld [vmem:[#allocation2 + $0x12c] sm:$0xf] }
 0x111   :  { %2199 = vmatpush.bf16.msrb.mxu3 %v3598_v23  ;;  %v4678_v23 = vld [vmem:[#allocation2 + $0x414] sm:$0xf0] }
 0x112   :  { %v3694_v40 = vor.u32 %v4678_v23, %v3693_v22  ;;  %v3375_v22 = vld [vmem:[#allocation2 + $0x198] sm:$0xf0] }
 0x113   :  { %2209 = vmatpush.bf16.msra.mxu0 %v3774_v26  ;;  %2222 = vmatpush.bf16.msra.mxu1 %v3902_v27  ;;  %v4158_v26 = vor.u32 %v4794_v35, %v4157_v19  ;;  %v4710_v27 = vld [vmem:[#allocation2 + $0x514] sm:$0xf0]  ;;  %v4564_v35 = vld [vmem:[#allocation2 + $0x8c] sm:$0xf] }
 0x114   :  { %2187 = vmatpush.bf16.msrb.mxu2 %v3454_v38  ;;  %v4608_v38 = vld [vmem:[#allocation2 + $0x1ec] sm:$0xf]  ;;  %v3822_v41 = vor.u32 %v4710_v27, %v3821_v24  ;;  %v4778_v19 = vld [vmem:[#allocation2 + $0x734] sm:$0xf0] }
 0x115   :  { %2200 = vmatpush.bf16.msrb.mxu3 %v3582_v39  ;;  %v3423_v39 = vld [vmem:[#allocation2 + $0x1f8] sm:$0xf0]  ;;  %v4742_v27 = vld [vmem:[#allocation2 + $0x614] sm:$0xf0] }
 0x116   :  { %v3426_v53 = vor.u32 %v4608_v38, %v3423_v39  ;;  %v4592_v38 = vld [vmem:[#allocation2 + $0x16c] sm:$0xf]  ;;  %v3359_v39 = vld [vmem:[#allocation2 + $0x178] sm:$0xf0] }
 0x117   :  { %2210 = vmatpush.bf16.msra.mxu0 %v3758_v44  ;;  %2223 = vmatpush.bf16.msra.mxu1 %v3886_v47  ;;  %v4142_v44 = vor.u32 %v4790_v32, %v4141_v30  ;;  %v3997_v47 = vld [vmem:[#allocation2 + $0x668] sm:$0xf]  ;;  %v4774_v32 = vld [vmem:[#allocation2 + $0x714] sm:$0xf0] }
 0x118   :  { %2188 = vmatpush.bf16.msrb.mxu2 %v3438_v59  ;;  %v5270_v59 = vld [vmem:[%s5407_s4] sm:$0xf] }
 0x119   :  { %2201 = vmatpush.bf16.msrb.mxu3 %v3566_v60  ;;  %v3998_v60 = vor.u32 %v4754_v49, %v3997_v47  ;;  %v659_v5 = vperm.slane %v5270_v59, 0  ;;  %v4078_v49 = vor.u32 %v4774_v32, %v4077_v28  ;;  %v4704_v28 = vld [vmem:[#allocation2 + $0x4ec] sm:$0xf]  ;;  %v3935_v32 = vld [vmem:[#allocation2 + $0x5f8] sm:$0xf0] }
 0x11b   :  { %2211 = vmatpush.bf16.msra.mxu0 %v3742_v61  ;;  %2224 = vmatpush.bf16.msra.mxu1 %v3870_v62  ;;  %v4126_v61 = vor.u32 %v4786_v54, %v4125_v50  ;;  %v3981_v62 = vld [vmem:[#allocation2 + $0x648] sm:$0xf] }
 0x11c   :  { %2233 = vmatpush.bf16.msra.mxu2 %v4062_v1  ;;  %2202 = vmatmul.bf16.vlgmr.msrb.gmra.mxu3 %v5241_v42  ;;  %v3282_v1 = vor.u32 %v4572_v55, %v3279_v56  ;;  %v4556_v55 = vld [vmem:[#allocation2 + $0x4c] sm:$0xf]  ;;  %v3215_v56 = vld [vmem:[#allocation2 + $0x58] sm:$0xf0] }
 0x11d   :  { %2246 = vmatpush.bf16.msra.mxu3 %v4190_v2  ;;  %2189 = vmatmul.bf16.vlgmr.msrb.gmra.mxu2 %v5239_v37  ;;  %v3410_v2 = vor.u32 %v4604_v57, %v3407_v58 }
 0x11f   :  { %2212 = vmatpush.bf16.msra.mxu0 %v3726_v9  ;;  %2225 = vmatpush.bf16.msra.mxu1 %v3854_v10  ;;  %v3982_v9 = vor.u32 %v4750_v63, %v3981_v62  ;;  %v4110_v10 = vor.u32 %v4782_v3, %v4109_v0  ;;  %v4636_v62 = vld [vmem:[#allocation2 + $0x2cc] sm:$0xf]  ;;  %v3535_v63 = vld [vmem:[#allocation2 + $0x2d8] sm:$0xf0] }
 0x120   :  { %2234 = vmatpush.bf16.msra.mxu2 %v4046_v13  ;;  %v4746_v13 = vld [vmem:[#allocation2 + $0x634] sm:$0xf0]  ;;  %v4668_v0 = vld [vmem:[#allocation2 + $0x3cc] sm:$0xf] }
 0x121   :  { %2247 = vmatpush.bf16.msra.mxu3 %v4174_v14  ;;  %v3266_v14 = vor.u32 %v4568_v4, %v3263_v6  ;;  %v3966_v24 = vor.u32 %v4746_v13, %v3965_v12  ;;  %v4552_v4 = vld [vmem:[#allocation2 + $0x2c] sm:$0xf]  ;;  %v3538_v6 = vor.u32 %v4636_v62, %v3535_v63  ;;  %v3647_v13 = vld [vmem:[#allocation2 + $0x3b8] sm:$0xf0] }
 0x122   :  { %v4664_v12 = vld [vmem:[#allocation2 + $0x3ac] sm:$0xf]  ;;  %v3471_v63 = vld [vmem:[#allocation2 + $0x258] sm:$0xf0] }
 0x123   :  { %2213 = vmatpush.bf16.msra.mxu0 %v3710_v20  ;;  %2226 = vmatpush.bf16.msra.mxu1 %v3838_v21  ;;  %v3247_v20 = vld [vmem:[#allocation2 + $0x98] sm:$0xf0]  ;;  %v4596_v21 = vld [vmem:[#allocation2 + $0x18c] sm:$0xf] }
 0x124   :  { %2235 = vmatpush.bf16.msra.mxu2 %v4030_v25  ;;  %v4094_v25 = vor.u32 %v4778_v19, %v4093_v18  ;;  %v3250_v29 = vor.u32 %v4564_v35, %v3247_v20  ;;  %v3378_v30 = vor.u32 %v4596_v21, %v3375_v22  ;;  %v4548_v18 = vld [vmem:[#allocation2 + $0xc] sm:$0xf]  ;;  %v3183_v19 = vld [vmem:[#allocation2 + $0x18] sm:$0xf0]  ;;  %v3650_v21 = vor.u32 %v4664_v12, %v3647_v13 }
 0x125   :  { %2248 = vmatpush.bf16.msra.mxu3 %v4158_v26  ;;  %v3949_v26 = vld [vmem:[#allocation2 + $0x608] sm:$0xf]  ;;  %v4580_v35 = vld [vmem:[#allocation2 + $0x10c] sm:$0xf]  ;;  %v3311_v22 = vld [vmem:[#allocation2 + $0x118] sm:$0xf0] }
 0x126   :  { %v1956_v11 = vpop.f32.mrf.mxu0  ;;  %v1969_v17 = vpop.f32.mrf.mxu1  ;;  %v3950_v47 = vor.u32 %v4742_v27, %v3949_v26  ;;  %v4660_v26 = vld [vmem:[#allocation2 + $0x38c] sm:$0xf]  ;;  %v3631_v27 = vld [vmem:[#allocation2 + $0x398] sm:$0xf0] }
 0x127   :  { %2214 = vmatpush.bf16.msra.mxu0 %v3694_v40  ;;  %2227 = vmatpush.bf16.msra.mxu1 %v3822_v41  ;;  %v1957_v16 = vadd.f32 %v1956_v11, %v659_v5  ;;  %v4640_v40 = vld [vmem:[#allocation2 + $0x2ec] sm:$0xf]  ;;  %v3551_v41 = vld [vmem:[#allocation2 + $0x2f8] sm:$0xf0] }
 0x128   :  { %2236 = vmatpush.bf16.msra.mxu2 %v4014_v43  ;;  %v4672_v43 = vld [vmem:[#allocation2 + $0x3ec] sm:$0xf]  ;;  %v3554_v57 = vor.u32 %v4640_v40, %v3551_v41  ;;  %v3199_v5 = vld [vmem:[#allocation2 + $0x38] sm:$0xf0] }
 0x129   :  { %2249 = vmatpush.bf16.msra.mxu3 %v4142_v44  ;;  %v5275_v23 = vadd.f32 %v1969_v17, %v1957_v16  ;;  %v3679_v44 = vld [vmem:[#allocation2 + $0x3f8] sm:$0xf0]  ;;  %v4624_v41 = vld [vmem:[#allocation2 + $0x26c] sm:$0xf] }
 0x12a   :  { %2215 = vmatmul.bf16.vlgmr.msra.gmra.mxu0 %v5235_v31  ;;  %2228 = vmatmul.bf16.vlgmr.msra.gmra.mxu1 %v5237_v36  ;;  %v3682_v58 = vor.u32 %v4672_v43, %v3679_v44  ;;  %v3519_v11 = vld [vmem:[#allocation2 + $0x2b8] sm:$0xf0]  ;;  %v4620_v62 = vld [vmem:[#allocation2 + $0x24c] sm:$0xf] }
 0x12b   :  { %2259 = vmatpush.bf16.msrb.mxu0 %v3298_v51  ;;  %2272 = vmatpush.bf16.msrb.mxu1 %v3426_v53  ;;  %v3234_v51 = vor.u32 %v4560_v33, %v3231_v34  ;;  %v3362_v53 = vor.u32 %v4592_v38, %v3359_v39  ;;  %v3186_v33 = vor.u32 %v4548_v18, %v3183_v19  ;;  %v3487_v43 = vld [vmem:[#allocation2 + $0x278] sm:$0xf0]  ;;  %v4648_v18 = vld [vmem:[#allocation2 + $0x32c] sm:$0xf] }
 0x12c   :  { %2237 = vmatpush.bf16.msra.mxu2 %v3998_v60  ;;  %v4588_v60 = vld [vmem:[#allocation2 + $0x14c] sm:$0xf]  ;;  %v3314_v34 = vor.u32 %v4580_v35, %v3311_v22  ;;  %v3634_v39 = vor.u32 %v4660_v26, %v3631_v27  ;;  %v3455_v12 = vld [vmem:[#allocation2 + $0x238] sm:$0xf0] }
 0x12d   :  { %2250 = vmatpush.bf16.msra.mxu3 %v4126_v61  ;;  %v3343_v61 = vld [vmem:[#allocation2 + $0x158] sm:$0xf0]  ;;  %v4612_v26 = vld [vmem:[#allocation2 + $0x20c] sm:$0xf] }
 0x12e   :  { %v1958_v50 = vpop.f32.mrf.mxu0  ;;  %v1971_v54 = vpop.f32.mrf.mxu1  ;;  %v3346_v3 = vor.u32 %v4588_v60, %v3343_v61  ;;  %v3490_v60 = vor.u32 %v4624_v41, %v3487_v43  ;;  %v3583_v19 = vld [vmem:[#allocation2 + $0x338] sm:$0xf0]  ;;  %v4768_v41 = vld [vmem:[#allocation2 + $0x6ec] sm:$0xf] }
 0x12f   :  { %2260 = vmatpush.bf16.msrb.mxu0 %v3282_v1  ;;  %2273 = vmatpush.bf16.msrb.mxu1 %v3410_v2  ;;  %v3663_v1 = vld [vmem:[#allocation2 + $0x3d8] sm:$0xf0]  ;;  %v3218_v2 = vor.u32 %v4556_v55, %v3215_v56  ;;  %v4656_v50 = vld [vmem:[#allocation2 + $0x36c] sm:$0xf]  ;;  %v3586_v22 = vor.u32 %v4648_v18, %v3583_v19 }
 0x130   :  { %2238 = vmatpush.bf16.msra.mxu2 %v3982_v9  ;;  %v3666_v7 = vor.u32 %v4668_v0, %v3663_v1  ;;  %v3327_v9 = vld [vmem:[#allocation2 + $0x138] sm:$0xf0]  ;;  %v4732_v56 = vld [vmem:[#allocation2 + $0x5cc] sm:$0xf] }
 0x131   :  { %2251 = vmatpush.bf16.msra.mxu3 %v4110_v10  ;;  %v4632_v10 = vld [vmem:[#allocation2 + $0x2ac] sm:$0xf]  ;;  %v3330_v16 = vor.u32 %v4584_v8, %v3327_v9  ;;  %v3791_v55 = vld [vmem:[#allocation2 + $0x4d8] sm:$0xf0]  ;;  %v3474_v8 = vor.u32 %v4620_v62, %v3471_v63 }
 0x132   :  { %v3522_v20 = vor.u32 %v4632_v10, %v3519_v11  ;;  %v4616_v11 = vld [vmem:[#allocation2 + $0x22c] sm:$0xf]  ;;  %v3759_v35 = vld [vmem:[#allocation2 + $0x498] sm:$0xf0] }
 0x133   :  { %2261 = vmatpush.bf16.msrb.mxu0 %v3266_v14  ;;  %2274 = vmatpush.bf16.msrb.mxu1 %v3394_v15  ;;  %v3202_v15 = vor.u32 %v4552_v4, %v3199_v5  ;;  %v4696_v4 = vld [vmem:[#allocation2 + $0x4ac] sm:$0xf]  ;;  %v3775_v5 = vld [vmem:[#allocation2 + $0x4b8] sm:$0xf0] }
 0x134   :  { %2239 = vmatpush.bf16.msra.mxu2 %v3966_v24  ;;  %v4628_v24 = vld [vmem:[#allocation2 + $0x28c] sm:$0xf]  ;;  %v3778_v13 = vor.u32 %v4696_v4, %v3775_v5  ;;  %v3439_v27 = vld [vmem:[#allocation2 + $0x218] sm:$0xf0] }
 0x135   :  { %2252 = vmatpush.bf16.msra.mxu3 %v4094_v25  ;;  %v3503_v25 = vld [vmem:[#allocation2 + $0x298] sm:$0xf0]  ;;  %v4716_v62 = vld [vmem:[#allocation2 + $0x54c] sm:$0xf] }
 0x136   :  { %v5279_v14 = vpop.f32.mrf.mxu0  ;;  %v3506_v38 = vor.u32 %v4628_v24, %v3503_v25  ;;  %v4063_v43 = vld [vmem:[#allocation2 + $0x6f8] sm:$0xf0]  ;;  %v4792_v18 = vld [vmem:[#allocation2 + $0x7ac] sm:$0xf] }
 0x137   :  { %2262 = vmatpush.bf16.msrb.mxu0 %v3250_v29  ;;  %2275 = vmatpush.bf16.msrb.mxu1 %v3378_v30  ;;  %v5281_v17 = vpop.f32.mrf.mxu1  ;;  %v3807_v29 = vld [vmem:[#allocation2 + $0x4f8] sm:$0xf0]  ;;  %v4736_v30 = vld [vmem:[#allocation2 + $0x5ec] sm:$0xf] }
 0x138   :  { %2240 = vmatpush.bf16.msra.mxu2 %v3950_v47  ;;  %v3810_v44 = vor.u32 %v4704_v28, %v3807_v29  ;;  %v3938_v47 = vor.u32 %v4736_v30, %v3935_v32  ;;  %v4644_v28 = vld [vmem:[#allocation2 + $0x30c] sm:$0xf]  ;;  %v3567_v32 = vld [vmem:[#allocation2 + $0x318] sm:$0xf0] }
 0x139   :  { %2253 = vmatpush.bf16.msra.mxu3 %v4078_v49  ;;  %v3855_v63 = vld [vmem:[#allocation2 + $0x558] sm:$0xf0] }
 0x13a   :  { %v4159_v19 = vld [vmem:[#allocation2 + $0x7b8] sm:$0xf0] }
 0x13b   :  { %2263 = vmatpush.bf16.msrb.mxu0 %v3234_v51  ;;  %2276 = vmatpush.bf16.msrb.mxu1 %v3362_v53  ;;  %v3615_v51 = vld [vmem:[#allocation2 + $0x378] sm:$0xf0]  ;;  %v4700_v53 = vld [vmem:[#allocation2 + $0x4cc] sm:$0xf] }
 0x13c   :  { %2285 = vmatpush.bf16.msrb.mxu2 %v3554_v57  ;;  %2254 = vmatmul.bf16.vlgmr.msra.gmra.mxu3 %v5251_v46  ;;  %v5283_v40 = vpop.f32.mrf.mxu2  ;;  %v3919_v57 = vld [vmem:[#allocation2 + $0x5d8] sm:$0xf0]  ;;  %v3618_v61 = vor.u32 %v4656_v50, %v3615_v51  ;;  %v3794_v0 = vor.u32 %v4700_v53, %v3791_v55  ;;  %v3442_v50 = vor.u32 %v4612_v26, %v3439_v27  ;;  %v4708_v26 = vld [vmem:[#allocation2 + $0x50c] sm:$0xf] }
 0x13d   :  { %2298 = vmatpush.bf16.msrb.mxu3 %v3682_v58  ;;  %2241 = vmatmul.bf16.vlgmr.msra.gmra.mxu2 %v5249_v45  ;;  %v5285_v49 = vpop.f32.mrf.mxu3  ;;  %v3922_v1 = vor.u32 %v4732_v56, %v3919_v57  ;;  %v3570_v51 = vor.u32 %v4644_v28, %v3567_v32  ;;  %v4684_v57 = vld [vmem:[#allocation2 + $0x44c] sm:$0xf]  ;;  %v4162_v28 = vor.u32 %v4792_v18, %v4159_v19  ;;  %v4143_v32 = vld [vmem:[#allocation2 + $0x798] sm:$0xf0] }
 0x13e   :  { %v2010_v54 = vpop.f32.mrf.mxu0  ;;  %v4744_v19 = vld [vmem:[#allocation2 + $0x62c] sm:$0xf] }
 0x13f   :  { %2264 = vmatpush.bf16.msrb.mxu0 %v3218_v2  ;;  %2277 = vmatpush.bf16.msrb.mxu1 %v3346_v3  ;;  %v2023_v58 = vpop.f32.mrf.mxu1  ;;  %v4652_v2 = vld [vmem:[#allocation2 + $0x34c] sm:$0xf]  ;;  %v3599_v3 = vld [vmem:[#allocation2 + $0x358] sm:$0xf0] }
 0x140   :  { %2286 = vmatpush.bf16.msrb.mxu2 %v3538_v6  ;;  %v4728_v6 = vld [vmem:[#allocation2 + $0x5ac] sm:$0xf]  ;;  %v3602_v9 = vor.u32 %v4652_v2, %v3599_v3  ;;  %v3727_v58 = vld [vmem:[#allocation2 + $0x458] sm:$0xf0] }
 0x141   :  { %2299 = vmatpush.bf16.msrb.mxu3 %v3666_v7  ;;  %v3903_v7 = vld [vmem:[#allocation2 + $0x5b8] sm:$0xf0]  ;;  %v4796_v2 = vld [vmem:[#allocation2 + $0x7cc] sm:$0xf] }
 0x142   :  { %v4175_v3 = vld [vmem:[#allocation2 + $0x7d8] sm:$0xf0] }
 0x143   :  { %2265 = vmatpush.bf16.msrb.mxu0 %v3202_v15  ;;  %2278 = vmatpush.bf16.msrb.mxu1 %v3330_v16  ;;  %v3906_v15 = vor.u32 %v4728_v6, %v3903_v7  ;;  %v3730_v6 = vor.u32 %v4684_v57, %v3727_v58  ;;  %v3858_v7 = vor.u32 %v4716_v62, %v3855_v63  ;;  %v4784_v57 = vld [vmem:[#allocation2 + $0x76c] sm:$0xf]  ;;  %v4127_v58 = vld [vmem:[#allocation2 + $0x778] sm:$0xf0]  ;;  %v4309_v62 = vld [vmem:[#allocation4 + $0xe0] sm:$0xf] }
 0x144   :  { %2287 = vmatpush.bf16.msrb.mxu2 %v3522_v20  ;;  %v1984_v10 = vpop.f32.mrf.mxu2  ;;  %v3887_v20 = vld [vmem:[#allocation2 + $0x598] sm:$0xf0]  ;;  %v4832_v63 = vld [vmem:[#allocation4 + $0xe4] sm:$0xf0] }
 0x145   :  { %2300 = vmatpush.bf16.msrb.mxu3 %v3650_v21  ;;  %v1997_v16 = vpop.f32.mrf.mxu3  ;;  %v3458_v21 = vor.u32 %v4616_v11, %v3455_v12  ;;  %v4178_v11 = vor.u32 %v4796_v2, %v4175_v3  ;;  %v4712_v12 = vld [vmem:[#allocation2 + $0x52c] sm:$0xf] }
 0x146   :  { %v4031_v16 = vld [vmem:[#allocation2 + $0x6b8] sm:$0xf0] }
 0x147   :  { %2266 = vmatpush.bf16.msrb.mxu0 %v3186_v33  ;;  %2279 = vmatpush.bf16.msrb.mxu1 %v3314_v34  ;;  %v5289_v24 = vpop.f32.mrf.mxu0  ;;  %v4688_v33 = vld [vmem:[#allocation2 + $0x46c] sm:$0xf]  ;;  %v3743_v34 = vld [vmem:[#allocation2 + $0x478] sm:$0xf0] }
 0x148   :  { %2288 = vmatpush.bf16.msrb.mxu2 %v3506_v38  ;;  %v4720_v38 = vld [vmem:[#allocation2 + $0x56c] sm:$0xf]  ;;  %v3746_v53 = vor.u32 %v4688_v33, %v3743_v34  ;;  %v4253_v33 = vld [vmem:[#allocation4 + $0x70] sm:$0xf]  ;;  %v4818_v34 = vld [vmem:[#allocation4 + $0x74] sm:$0xf0] }
 0x149   :  { %2301 = vmatpush.bf16.msrb.mxu3 %v3634_v39  ;;  %v5291_v25 = vpop.f32.mrf.mxu1  ;;  %v3871_v39 = vld [vmem:[#allocation2 + $0x578] sm:$0xf0] }
 0x14a   :  { %2267 = vmatmul.bf16.vlgmr.msrb.gmra.mxu0 %v5225_v52  ;;  %2280 = vmatmul.bf16.vlgmr.msrb.gmra.mxu1 %v5227_v48  ;;  %v4692_v52 = vld [vmem:[#allocation2 + $0x48c] sm:$0xf]  ;;  %v3874_v54 = vor.u32 %v4720_v38, %v3871_v39  ;;  %v4317_v38 = vld [vmem:[#allocation4 + $0xf0] sm:$0xf]  ;;  %v4834_v39 = vld [vmem:[#allocation4 + $0xf4] sm:$0xf0] }
 0x14b   :  { %2311 = vmatpush.bf16.msra.mxu0 %v3810_v44  ;;  %2324 = vmatpush.bf16.msra.mxu1 %v3938_v47  ;;  %v4724_v48 = vld [vmem:[#allocation2 + $0x58c] sm:$0xf]  ;;  %v3762_v29 = vor.u32 %v4692_v52, %v3759_v35  ;;  %v4191_v47 = vld [vmem:[#allocation2 + $0x7f8] sm:$0xf0] }
 0x14c   :  { %2289 = vmatpush.bf16.msrb.mxu2 %v3490_v60  ;;  %v3890_v30 = vor.u32 %v4724_v48, %v3887_v20  ;;  %v4800_v44 = vld [vmem:[#allocation2 + $0x7ec] sm:$0xf]  ;;  %v5293_v55 = vpop.f32.mrf.mxu2  ;;  %v4066_v60 = vor.u32 %v4768_v41, %v4063_v43 }
 0x14d   :  { %2302 = vmatpush.bf16.msrb.mxu3 %v3618_v61  ;;  %v5295_v56 = vpop.f32.mrf.mxu3  ;;  %v4194_v61 = vor.u32 %v4800_v44, %v4191_v47 }
 0x14f   :  { %2312 = vmatpush.bf16.msra.mxu0 %v3794_v0  ;;  %2325 = vmatpush.bf16.msra.mxu1 %v3922_v1  ;;  %v4764_v0 = vld [vmem:[#allocation2 + $0x6cc] sm:$0xf]  ;;  %v4047_v1 = vld [vmem:[#allocation2 + $0x6d8] sm:$0xf0]  ;;  %v2062_v4 = vpop.f32.mrf.mxu0 }
 0x150   :  { %2290 = vmatpush.bf16.msrb.mxu2 %v3474_v8  ;;  %v4680_v8 = vld [vmem:[#allocation2 + $0x42c] sm:$0xf]  ;;  %v4050_v10 = vor.u32 %v4764_v0, %v4047_v1  ;;  %v4130_v1 = vor.u32 %v4784_v57, %v4127_v58  ;;  %v4213_v58 = vld [vmem:[#allocation4 + $0x20] sm:$0xf] }
 0x151   :  { %2303 = vmatpush.bf16.msrb.mxu3 %v3602_v9  ;;  %v2075_v5 = vpop.f32.mrf.mxu1  ;;  %v3711_v9 = vld [vmem:[#allocation2 + $0x438] sm:$0xf0]  ;;  %v4748_v4 = vld [vmem:[#allocation2 + $0x64c] sm:$0xf] }
 0x152   :  { %v3714_v52 = vor.u32 %v4680_v8, %v3711_v9  ;;  %v3983_v5 = vld [vmem:[#allocation2 + $0x658] sm:$0xf0]  ;;  %v4780_v8 = vld [vmem:[#allocation2 + $0x74c] sm:$0xf] }
 0x153   :  { %2313 = vmatpush.bf16.msra.mxu0 %v3778_v13  ;;  %2326 = vmatpush.bf16.msra.mxu1 %v3906_v15  ;;  %v3839_v13 = vld [vmem:[#allocation2 + $0x538] sm:$0xf0]  ;;  %v4760_v15 = vld [vmem:[#allocation2 + $0x6ac] sm:$0xf] }
 0x154   :  { %2291 = vmatpush.bf16.msrb.mxu2 %v3458_v21  ;;  %v3842_v35 = vor.u32 %v4712_v12, %v3839_v13  ;;  %v2036_v48 = vpop.f32.mrf.mxu2  ;;  %v4676_v21 = vld [vmem:[#allocation2 + $0x40c] sm:$0xf]  ;;  %v4034_v27 = vor.u32 %v4760_v15, %v4031_v16  ;;  %v4111_v9 = vld [vmem:[#allocation2 + $0x758] sm:$0xf0]  ;;  %v4301_v12 = vld [vmem:[#allocation4 + $0xd0] sm:$0xf]  ;;  %v1983_v15 = vadd.f32 %v5283_v40, %v5275_v23  ;;  %v3986_v16 = vor.u32 %v4748_v4, %v3983_v5 }
 0x155   :  { %2304 = vmatpush.bf16.msrb.mxu3 %v3586_v22  ;;  %v2049_v20 = vpop.f32.mrf.mxu3  ;;  %v3695_v22 = vld [vmem:[#allocation2 + $0x418] sm:$0xf0]  ;;  %v4830_v13 = vld [vmem:[#allocation4 + $0xd4] sm:$0xf0]  ;;  %v4114_v18 = vor.u32 %v4780_v8, %v4111_v9  ;;  %v660_v40 = vperm.slane %v5270_v59, 1 }
 0x156   :  { %v3698_v41 = vor.u32 %v4676_v21, %v3695_v22  ;;  %v4302_v48 = vor.u32 %v4830_v13, %v4301_v12  ;;  %v4776_v20 = vld [vmem:[#allocation2 + $0x72c] sm:$0xf]  ;;  %v4229_v21 = vld [vmem:[#allocation4 + $0x40] sm:$0xf]  ;;  %v4269_v8 = vld [vmem:[#allocation4 + $0x90] sm:$0xf] }
 0x157   :  { %2314 = vmatpush.bf16.msra.mxu0 %v3762_v29  ;;  %2327 = vmatpush.bf16.msra.mxu1 %v3890_v30  ;;  %v3823_v29 = vld [vmem:[#allocation2 + $0x518] sm:$0xf0]  ;;  %v4293_v22 = vld [vmem:[#allocation4 + $0xc0] sm:$0xf]  ;;  %v4822_v9 = vld [vmem:[#allocation4 + $0x94] sm:$0xf0] }
 0x158   :  { %2292 = vmatpush.bf16.msrb.mxu2 %v3442_v50  ;;  %v4015_v30 = vld [vmem:[#allocation2 + $0x698] sm:$0xf0]  ;;  %v3826_v43 = vor.u32 %v4708_v26, %v3823_v29  ;;  %v4752_v50 = vld [vmem:[#allocation2 + $0x66c] sm:$0xf]  ;;  %v4828_v26 = vld [vmem:[#allocation4 + $0xc4] sm:$0xf0] }
 0x159   :  { %2305 = vmatpush.bf16.msrb.mxu3 %v3570_v51  ;;  %v3999_v51 = vld [vmem:[#allocation2 + $0x678] sm:$0xf0]  ;;  %v4804_v12 = vld [vmem:[#allocation4 + $0x4] sm:$0xf0]  ;;  %v4261_v13 = vld [vmem:[#allocation4 + $0x80] sm:$0xf] }
 0x15a   :  { %v4002_v0 = vor.u32 %v4752_v50, %v3999_v51  ;;  %v2061_v50 = vadd.f32 %v5289_v24, %v660_v40  ;;  %v4247_v40 = vld [vmem:[#allocation4 + $0x68] sm:$0xf0] }
 0x15b   :  { %2315 = vmatpush.bf16.msra.mxu0 %v3746_v53  ;;  %2328 = vmatpush.bf16.msra.mxu1 %v3874_v54  ;;  %v4254_v53 = vor.u32 %v4818_v34, %v4253_v33  ;;  %v4318_v54 = vor.u32 %v4834_v39, %v4317_v38  ;;  %v3951_v33 = vld [vmem:[#allocation2 + $0x618] sm:$0xf0]  ;;  %v4294_v38 = vor.u32 %v4828_v26, %v4293_v22  ;;  %v4772_v39 = vld [vmem:[#allocation2 + $0x70c] sm:$0xf]  ;;  %v4815_v22 = vld [vmem:[#allocation4 + $0x64] sm:$0xf] }
 0x15c   :  { %2337 = vmatpush.bf16.msra.mxu2 %v4066_v60  ;;  %2306 = vmatmul.bf16.vlgmr.msrb.gmra.mxu3 %v5241_v42  ;;  %v4788_v42 = vld [vmem:[#allocation2 + $0x78c] sm:$0xf]  ;;  %v4245_v60 = vld [vmem:[#allocation4 + $0x60] sm:$0xf] }
 0x15d   :  { %2350 = vmatpush.bf16.msra.mxu3 %v4194_v61  ;;  %2293 = vmatmul.bf16.vlgmr.msrb.gmra.mxu2 %v5239_v37  ;;  %v4756_v37 = vld [vmem:[#allocation2 + $0x68c] sm:$0xf]  ;;  %v4146_v47 = vor.u32 %v4788_v42, %v4143_v32  ;;  %v4816_v61 = vld [vmem:[#allocation4 + $0x64] sm:$0xf0]  ;;  %v4373_v26 = vld [vmem:[#allocation4 + $0x160] sm:$0xf] }
 0x15e   :  { %v4018_v44 = vor.u32 %v4756_v37, %v4015_v30  ;;  %v4740_v32 = vld [vmem:[#allocation2 + $0x60c] sm:$0xf] }
 0x15f   :  { %2316 = vmatpush.bf16.msra.mxu0 %v3730_v6  ;;  %2329 = vmatpush.bf16.msra.mxu1 %v3858_v7  ;;  %v5301_v3 = vpop.f32.mrf.mxu3  ;;  %v4246_v6 = vor.u32 %v4816_v61, %v4245_v60  ;;  %v4310_v7 = vor.u32 %v4832_v63, %v4309_v62  ;;  %v3954_v51 = vor.u32 %v4740_v32, %v3951_v33  ;;  %v4808_v60 = vld [vmem:[#allocation4 + $0x24] sm:$0xf0]  ;;  %v4277_v61 = vld [vmem:[#allocation4 + $0xa0] sm:$0xf] }
 0x160   :  { %2338 = vmatpush.bf16.msra.mxu2 %v4050_v10  ;;  %v5299_v2 = vpop.f32.mrf.mxu2  ;;  %v4237_v10 = vld [vmem:[#allocation4 + $0x50] sm:$0xf]  ;;  %v4824_v62 = vld [vmem:[#allocation4 + $0xa4] sm:$0xf0]  ;;  %v4214_v4 = vor.u32 %v4808_v60, %v4213_v58  ;;  %v4250_v33 = vor.u32 %v4815_v22, %v4247_v40  ;;  %v4231_v58 = vld [vmem:[#allocation4 + $0x48] sm:$0xf0] }
 0x161   :  { %2351 = vmatpush.bf16.msra.mxu3 %v4178_v11  ;;  %v4814_v11 = vld [vmem:[#allocation4 + $0x54] sm:$0xf0]  ;;  %v4278_v5 = vor.u32 %v4824_v62, %v4277_v61  ;;  %v4827_v61 = vld [vmem:[#allocation4 + $0xc4] sm:$0xf]  ;;  %v4295_v62 = vld [vmem:[#allocation4 + $0xc8] sm:$0xf0] }
 0x162   :  { %v4271_v22 = vld [vmem:[#allocation4 + $0x98] sm:$0xf0]  ;;  %v4836_v40 = vld [vmem:[#allocation4 + $0x104] sm:$0xf0] }
 0x163   :  { %2317 = vmatpush.bf16.msra.mxu0 %v3714_v52  ;;  %2330 = vmatpush.bf16.msra.mxu1 %v3842_v35  ;;  %v3967_v52 = vld [vmem:[#allocation2 + $0x638] sm:$0xf0]  ;;  %v4238_v35 = vor.u32 %v4814_v11, %v4237_v10  ;;  %v4270_v11 = vor.u32 %v4822_v9, %v4269_v8  ;;  %v4349_v8 = vld [vmem:[#allocation4 + $0x130] sm:$0xf]  ;;  %v4842_v9 = vld [vmem:[#allocation4 + $0x134] sm:$0xf0] }
 0x164   :  { %2339 = vmatpush.bf16.msra.mxu2 %v4034_v27  ;;  %v1996_v27 = vadd.f32 %v5285_v49, %v1983_v15  ;;  %v3970_v29 = vor.u32 %v4744_v19, %v3967_v52  ;;  %v4079_v49 = vld [vmem:[#allocation2 + $0x718] sm:$0xf0]  ;;  %v4820_v15 = vld [vmem:[#allocation4 + $0x84] sm:$0xf0]  ;;  %v4850_v19 = vld [vmem:[#allocation4 + $0x174] sm:$0xf0] }
 0x165   :  { %2352 = vmatpush.bf16.msra.mxu3 %v4162_v28 }
 0x166   :  { %v2009_v59 = vadd.f32 %v5279_v14, %v1996_v27  ;;  %v2074_v14 = vadd.f32 %v5291_v25, %v2061_v50  ;;  %v4848_v27 = vld [vmem:[#allocation4 + $0x164] sm:$0xf0] }
 0x167   :  { %2318 = vmatpush.bf16.msra.mxu0 %v3698_v41  ;;  %2331 = vmatpush.bf16.msra.mxu1 %v3826_v43  ;;  %v5308_v28 = vpop.f32.mrf.mxu0  ;;  %v5310_v23 = vpop.f32.mrf.mxu1  ;;  %v4221_v41 = vld [vmem:[#allocation4 + $0x30] sm:$0xf]  ;;  %v4810_v43 = vld [vmem:[#allocation4 + $0x34] sm:$0xf0]  ;;  %v4844_v50 = vld [vmem:[#allocation4 + $0x144] sm:$0xf0] }
 0x168   :  { %2340 = vmatpush.bf16.msra.mxu2 %v4018_v44  ;;  %v2088_v30 = vpop.f32.mrf.mxu2  ;;  %v2101_v42 = vpop.f32.mrf.mxu3  ;;  %v4285_v44 = vld [vmem:[#allocation4 + $0xb0] sm:$0xf]  ;;  %v2022_v63 = vadd.f32 %v5281_v17, %v2009_v59  ;;  %v2087_v10 = vadd.f32 %v5299_v2, %v2074_v14  ;;  %v4197_v17 = vld [vmem:[#allocation4] sm:$0xf]  ;;  %v4255_v2 = vld [vmem:[#allocation4 + $0x78] sm:$0xf0] }
 0x169   :  { %2353 = vmatpush.bf16.msra.mxu3 %v4146_v47  ;;  %v4826_v47 = vld [vmem:[#allocation4 + $0xb4] sm:$0xf0] }
 0x16a   :  { %2319 = vmatmul.bf16.vlgmr.msra.gmra.mxu0 %v5235_v31  ;;  %2332 = vmatmul.bf16.vlgmr.msra.gmra.mxu1 %v5237_v36  ;;  %v4095_v31 = vld [vmem:[#allocation2 + $0x738] sm:$0xf0]  ;;  %v4812_v36 = vld [vmem:[#allocation4 + $0x44] sm:$0xf0]  ;;  %v4286_v57 = vor.u32 %v4826_v47, %v4285_v44  ;;  %v2035_v24 = vadd.f32 %v5293_v55, %v2022_v63  ;;  %v2100_v52 = vadd.f32 %v5301_v3, %v2087_v10  ;;  %v4311_v3 = vld [vmem:[#allocation4 + $0xe8] sm:$0xf0] }
 0x16b   :  { %2761 = vmatpush.bf16.msrb.mxu0 %v4254_v53  ;;  %2774 = vmatpush.bf16.msrb.mxu1 %v4318_v54  ;;  %v4098_v37 = vor.u32 %v4776_v20, %v4095_v31  ;;  %v4230_v34 = vor.u32 %v4812_v36, %v4229_v21  ;;  %v4082_v53 = vor.u32 %v4772_v39, %v4079_v49  ;;  %v4365_v39 = vld [vmem:[#allocation4 + $0x150] sm:$0xf]  ;;  %v4846_v49 = vld [vmem:[#allocation4 + $0x154] sm:$0xf0]  ;;  %v4829_v44 = vld [vmem:[#allocation4 + $0xd4] sm:$0xf] }
 0x16c   :  { %2341 = vmatpush.bf16.msra.mxu2 %v4002_v0  ;;  %v4222_v54 = vor.u32 %v4810_v43, %v4221_v41  ;;  %v2048_v25 = vadd.f32 %v5295_v56, %v2035_v24  ;;  %v2113_v20 = vadd.f32 %v5308_v28, %v2100_v52  ;;  %v4198_v56 = vor.u32 %v4804_v12, %v4197_v17  ;;  %v4239_v43 = vld [vmem:[#allocation4 + $0x58] sm:$0xf0]  ;;  %v4825_v17 = vld [vmem:[#allocation4 + $0xb4] sm:$0xf]  ;;  %v4840_v12 = vld [vmem:[#allocation4 + $0x124] sm:$0xf0] }
 0x16d   :  { %2354 = vmatpush.bf16.msra.mxu3 %v4130_v1  ;;  %v4262_v31 = vor.u32 %v4820_v15, %v4261_v13  ;;  %v4303_v47 = vld [vmem:[#allocation4 + $0xd8] sm:$0xf0]  ;;  %v4366_v59 = vor.u32 %v4846_v49, %v4365_v39  ;;  %v4279_v52 = vld [vmem:[#allocation4 + $0xa8] sm:$0xf0]  ;;  %v4847_v49 = vld [vmem:[#allocation4 + $0x164] sm:$0xf] }
 0x16e   :  { %v2126_v30 = vadd.f32 %v5310_v23, %v2113_v20  ;;  %v4357_v23 = vld [vmem:[#allocation4 + $0x140] sm:$0xf]  ;;  %v4223_v10 = vld [vmem:[#allocation4 + $0x38] sm:$0xf0] }
 0x16f   :  { %2762 = vmatpush.bf16.msrb.mxu0 %v4246_v6  ;;  %2775 = vmatpush.bf16.msrb.mxu1 %v4310_v7  ;;  %v2114_v0 = vpop.f32.mrf.mxu0  ;;  %v2127_v1 = vpop.f32.mrf.mxu1  ;;  %v4205_v6 = vld [vmem:[#allocation4 + $0x10] sm:$0xf]  ;;  %v4806_v7 = vld [vmem:[#allocation4 + $0x14] sm:$0xf0]  ;;  %v4358_v63 = vor.u32 %v4844_v50, %v4357_v23  ;;  %v4367_v23 = vld [vmem:[#allocation4 + $0x158] sm:$0xf0] }
 0x170   :  { %2342 = vmatpush.bf16.msra.mxu2 %v3986_v16  ;;  %v4206_v55 = vor.u32 %v4806_v7, %v4205_v6  ;;  %v4817_v16 = vld [vmem:[#allocation4 + $0x74] sm:$0xf]  ;;  %v4298_v6 = vor.u32 %v4827_v61, %v4295_v62 }
 0x171   :  { %2355 = vmatpush.bf16.msra.mxu3 %v4114_v18  ;;  %v4381_v18 = vld [vmem:[#allocation4 + $0x170] sm:$0xf]  ;;  %v4258_v21 = vor.u32 %v4817_v16, %v4255_v2  ;;  %v4809_v7 = vld [vmem:[#allocation4 + $0x34] sm:$0xf]  ;;  %v4807_v16 = vld [vmem:[#allocation4 + $0x24] sm:$0xf] }
 0x172   :  { %v4226_v13 = vor.u32 %v4809_v7, %v4223_v10  ;;  %v4841_v62 = vld [vmem:[#allocation4 + $0x134] sm:$0xf]  ;;  %v4343_v7 = vld [vmem:[#allocation4 + $0x128] sm:$0xf0] }
 0x173   :  { %2763 = vmatpush.bf16.msrb.mxu0 %v4238_v35  ;;  %2776 = vmatpush.bf16.msrb.mxu1 %v4302_v48  ;;  %v4833_v35 = vld [vmem:[#allocation4 + $0xf4] sm:$0xf]  ;;  %v4382_v48 = vor.u32 %v4850_v19, %v4381_v18  ;;  %v4215_v18 = vld [vmem:[#allocation4 + $0x28] sm:$0xf0]  ;;  %v4823_v19 = vld [vmem:[#allocation4 + $0xa4] sm:$0xf] }
 0x174   :  { %2343 = vmatpush.bf16.msra.mxu2 %v3970_v29  ;;  %v4831_v29 = vld [vmem:[#allocation4 + $0xe4] sm:$0xf]  ;;  %v4218_v20 = vor.u32 %v4807_v16, %v4215_v18  ;;  %v4837_v10 = vld [vmem:[#allocation4 + $0x114] sm:$0xf] }
 0x175   :  { %2356 = vmatpush.bf16.msra.mxu3 %v4098_v37  ;;  %v4374_v37 = vor.u32 %v4848_v27, %v4373_v26  ;;  %v4325_v27 = vld [vmem:[#allocation4 + $0x100] sm:$0xf]  ;;  %v4835_v18 = vld [vmem:[#allocation4 + $0x104] sm:$0xf] }
 0x177   :  { %2764 = vmatpush.bf16.msrb.mxu0 %v4230_v34  ;;  %2777 = vmatpush.bf16.msrb.mxu1 %v4294_v38  ;;  %v4314_v34 = vor.u32 %v4831_v29, %v4311_v3  ;;  %v4813_v38 = vld [vmem:[#allocation4 + $0x54] sm:$0xf]  ;;  %v4383_v3 = vld [vmem:[#allocation4 + $0x178] sm:$0xf0] }
 0x178   :  { %2344 = vmatpush.bf16.msra.mxu2 %v3954_v51  ;;  %v4849_v29 = vld [vmem:[#allocation4 + $0x174] sm:$0xf] }
 0x179   :  { %2357 = vmatpush.bf16.msra.mxu3 %v4082_v53  ;;  %v4242_v53 = vor.u32 %v4813_v38, %v4239_v43  ;;  %v4326_v38 = vor.u32 %v4836_v40, %v4325_v27  ;;  %v4386_v39 = vor.u32 %v4849_v29, %v4383_v3  ;;  %v4860_v27 = vld [vmem:[#allocation4 + $0x1c4] sm:$0xf0] }
 0x17b   :  { %2765 = vmatpush.bf16.msrb.mxu0 %v4222_v54  ;;  %2778 = vmatpush.bf16.msrb.mxu1 %v4286_v57  ;;  %v4306_v54 = vor.u32 %v4829_v44, %v4303_v47  ;;  %v4811_v57 = vld [vmem:[#allocation4 + $0x44] sm:$0xf] }
 0x17c   :  { %2345 = vmatmul.bf16.vlgmr.msra.gmra.mxu2 %v5249_v45  ;;  %2358 = vmatmul.bf16.vlgmr.msra.gmra.mxu3 %v5251_v46  ;;  %v4319_v45 = vld [vmem:[#allocation4 + $0xf8] sm:$0xf0]  ;;  %v2363_v46 = vmax.f32 %v2048_v25, 0.0 }
 0x17d   :  { %v4322_v36 = vor.u32 %v4833_v35, %v4319_v45  ;;  %2787 = vmatpush.bf16.msrb.mxu2 %v4382_v48  ;;  %v4287_v25 = vld [vmem:[#allocation4 + $0xb8] sm:$0xf0]  ;;  %v4333_v35 = vld [vmem:[#allocation4 + $0x110] sm:$0xf]  ;;  %v4838_v45 = vld [vmem:[#allocation4 + $0x114] sm:$0xf0] }
 0x17e   :  { %v5325_v42 = vpack.c.bf16 %v2363_v46, %v2363_v46  ;;  %v4290_v15 = vor.u32 %v4825_v17, %v4287_v25  ;;  %v4334_v26 = vor.u32 %v4838_v45, %v4333_v35  ;;  %v4335_v17 = vld [vmem:[#allocation4 + $0x118] sm:$0xf0]  ;;  %v4445_v25 = vld [vmem:[#allocation4 + $0x1f0] sm:$0xf]  ;;  %v4437_v45 = vld [vmem:[#allocation4 + $0x1e0] sm:$0xf] }
 0x17f   :  { %2766 = vmatpush.bf16.msrb.mxu0 %v4214_v4  ;;  %2779 = vmatpush.bf16.msrb.mxu1 %v4278_v5  ;;  %v2151_v32 = vpop.f32.mrf.mxu3  ;;  %v4234_v5 = vor.u32 %v4811_v57, %v4231_v58  ;;  %v4359_v57 = vld [vmem:[#allocation4 + $0x148] sm:$0xf0] }
 0x180   :  { %v2138_v28 = vpop.f32.mrf.mxu2 }
 0x181   :  { %v2139_v41 = vadd.f32 %v2138_v28, %v2126_v30  ;;  %2788 = vmatpush.bf16.msrb.mxu2 %v4374_v37  ;;  %v4803_v28 = vld [vmem:[#allocation4 + $0x4] sm:$0xf] }
 0x183   :  { %2767 = vmatpush.bf16.msrb.mxu0 %v4206_v55  ;;  %2780 = vmatpush.bf16.msrb.mxu1 %v4270_v11  ;;  %v2152_v51 = vadd.f32 %v2151_v32, %v2139_v41  ;;  %v4350_v55 = vor.u32 %v4842_v9, %v4349_v8  ;;  %v4341_v11 = vld [vmem:[#allocation4 + $0x120] sm:$0xf]  ;;  %v4199_v32 = vld [vmem:[#allocation4 + $0x8] sm:$0xf0] }
 0x184   :  { %v4342_v2 = vor.u32 %v4840_v12, %v4341_v11  ;;  %v4375_v41 = vld [vmem:[#allocation4 + $0x168] sm:$0xf0]  ;;  %v4202_v43 = vor.u32 %v4803_v28, %v4199_v32 }
 0x185   :  { %v2364_v60 = vmax.f32 %v2152_v51, 0.0  ;;  %2789 = vmatpush.bf16.msrb.mxu2 %v4366_v59  ;;  %v4378_v47 = vor.u32 %v4847_v49, %v4375_v41  ;;  %v4845_v59 = vld [vmem:[#allocation4 + $0x154] sm:$0xf]  ;;  %v4405_v49 = vld [vmem:[#allocation4 + $0x1a0] sm:$0xf] }
 0x186   :  { %v4856_v41 = vld [vmem:[#allocation4 + $0x1a4] sm:$0xf0] }
 0x187   :  { %2768 = vmatpush.bf16.msrb.mxu0 %v4198_v56  ;;  %2781 = vmatpush.bf16.msrb.mxu1 %v4262_v31  ;;  %v5328_v0 = vpack.c.bf16 %v2364_v60, %v2364_v60  ;;  %v5330_v1 = vpop.f32.mrf.mxu0  ;;  %v5332_v14 = vpop.f32.mrf.mxu1  ;;  %v4282_v56 = vor.u32 %v4823_v19, %v4279_v52  ;;  %v4805_v31 = vld [vmem:[#allocation4 + $0x14] sm:$0xf]  ;;  %v4327_v19 = vld [vmem:[#allocation4 + $0x108] sm:$0xf0] }
 0x188   :  { %v2140_v24 = vpop.f32.mrf.mxu2  ;;  %v2153_v4 = vpop.f32.mrf.mxu3 }
 0x189   :  { %2790 = vmatpush.bf16.msrb.mxu2 %v4358_v63  ;;  %v4351_v63 = vld [vmem:[#allocation4 + $0x138] sm:$0xf0] }
 0x18a   :  { %2769 = vmatmul.bf16.vlgmr.msrb.gmra.mxu0 %v5325_v42  ;;  %2782 = vmatmul.bf16.vlgmr.msrb.gmra.mxu1 %v5328_v0 }
 0x18b   :  { %2813 = vmatpush.bf16.msra.mxu0 %v4258_v21  ;;  %2826 = vmatpush.bf16.msra.mxu1 %v4322_v36  ;;  %v4207_v21 = vld [vmem:[#allocation4 + $0x18] sm:$0xf0]  ;;  %v4821_v36 = vld [vmem:[#allocation4 + $0x94] sm:$0xf] }
 0x18c   :  { %v4210_v37 = vor.u32 %v4805_v31, %v4207_v21  ;;  %v4274_v30 = vor.u32 %v4821_v36, %v4271_v22 }
 0x18d   :  { %2791 = vmatpush.bf16.msrb.mxu2 %v4350_v55  ;;  %v4866_v55 = vld [vmem:[#allocation4 + $0x1f4] sm:$0xf0] }
 0x18f   :  { %2814 = vmatpush.bf16.msra.mxu0 %v4250_v33  ;;  %2827 = vmatpush.bf16.msra.mxu1 %v4314_v34  ;;  %v2166_v48 = vpop.f32.mrf.mxu0  ;;  %v2179_v46 = vpop.f32.mrf.mxu1  ;;  %v4819_v33 = vld [vmem:[#allocation4 + $0x84] sm:$0xf]  ;;  %v4263_v34 = vld [vmem:[#allocation4 + $0x88] sm:$0xf0] }
 0x190   :  { %v4266_v44 = vor.u32 %v4819_v33, %v4263_v34 }
 0x191   :  { %2792 = vmatpush.bf16.msrb.mxu2 %v4342_v2  ;;  %v4330_v2 = vor.u32 %v4835_v18, %v4327_v19 }
 0x193   :  { %2815 = vmatpush.bf16.msra.mxu0 %v4242_v53  ;;  %2828 = vmatpush.bf16.msra.mxu1 %v4306_v54  ;;  %v4370_v53 = vor.u32 %v4845_v59, %v4367_v23  ;;  %v4843_v54 = vld [vmem:[#allocation4 + $0x144] sm:$0xf]  ;;  %v4389_v23 = vld [vmem:[#allocation4 + $0x180] sm:$0xf] }
 0x194   :  { %v4362_v58 = vor.u32 %v4843_v54, %v4359_v57  ;;  %v4865_v54 = vld [vmem:[#allocation4 + $0x1f4] sm:$0xf]  ;;  %v4447_v57 = vld [vmem:[#allocation4 + $0x1f8] sm:$0xf0] }
 0x195   :  { %2793 = vmatpush.bf16.msrb.mxu2 %v4334_v26  ;;  %v4421_v26 = vld [vmem:[#allocation4 + $0x1c0] sm:$0xf] }
 0x196   :  { %v4422_v40 = vor.u32 %v4860_v27, %v4421_v26 }
 0x197   :  { %2816 = vmatpush.bf16.msra.mxu0 %v4234_v5  ;;  %2829 = vmatpush.bf16.msra.mxu1 %v4298_v6  ;;  %v4354_v5 = vor.u32 %v4841_v62, %v4351_v63  ;;  %v5340_v6 = vld [vmem:[%s5407_s4] sm:$0xf]  ;;  %v4439_v62 = vld [vmem:[#allocation4 + $0x1e8] sm:$0xf0] }
 0x198   :  { %v662_v19 = vperm.slane %v5340_v6, 3 }
 0x199   :  { %2794 = vmatpush.bf16.msrb.mxu2 %v4326_v38 }
 0x19b   :  { %2817 = vmatpush.bf16.msra.mxu0 %v4226_v13  ;;  %2830 = vmatpush.bf16.msra.mxu1 %v4290_v15  ;;  %v4446_v13 = vor.u32 %v4866_v55, %v4445_v25  ;;  %v4338_v15 = vor.u32 %v4837_v10, %v4335_v17  ;;  %v4857_v10 = vld [vmem:[#allocation4 + $0x1b4] sm:$0xf]  ;;  %v4415_v17 = vld [vmem:[#allocation4 + $0x1b8] sm:$0xf0] }
 0x19c   :  { %v4418_v25 = vor.u32 %v4857_v10, %v4415_v17  ;;  %v4878_v10 = vld [vmem:[%s5410_s7 + $0x58] sm:$0xff]  ;;  %v4877_v17 = vld [vmem:[%s5410_s7 + $0x50] sm:$0xff] }
 0x19d   :  { %2839 = vmatpush.bf16.msra.mxu2 %v4386_v39  ;;  %2800 = vmatpush.bf16.msrb.mxu3 %v4446_v13  ;;  %v4407_v13 = vld [vmem:[#allocation4 + $0x1a8] sm:$0xf0] }
 0x19f   :  { %2818 = vmatpush.bf16.msra.mxu0 %v4218_v20  ;;  %2831 = vmatpush.bf16.msra.mxu1 %v4282_v56  ;;  %v2203_v51 = vpop.f32.mrf.mxu3  ;;  %v4429_v20 = vld [vmem:[#allocation4 + $0x1d0] sm:$0xf]  ;;  %v4862_v56 = vld [vmem:[#allocation4 + $0x1d4] sm:$0xf0] }
 0x1a0   :  { %v2190_v50 = vpop.f32.mrf.mxu2  ;;  %v4430_v21 = vor.u32 %v4862_v56, %v4429_v20 }
 0x1a1   :  { %2840 = vmatpush.bf16.msra.mxu2 %v4378_v47  ;;  %v4854_v47 = vld [vmem:[#allocation4 + $0x194] sm:$0xf0] }
 0x1a3   :  { %2819 = vmatpush.bf16.msra.mxu0 %v4210_v37  ;;  %2832 = vmatpush.bf16.msra.mxu1 %v4274_v30  ;;  %v4413_v37 = vld [vmem:[#allocation4 + $0x1b0] sm:$0xf]  ;;  %v4858_v30 = vld [vmem:[#allocation4 + $0x1b4] sm:$0xf0] }
 0x1a4   :  { %v4414_v34 = vor.u32 %v4858_v30, %v4413_v37 }
 0x1a5   :  { %2841 = vmatpush.bf16.msra.mxu2 %v4370_v53 }
 0x1a7   :  { %2820 = vmatpush.bf16.msra.mxu0 %v4202_v43  ;;  %2833 = vmatpush.bf16.msra.mxu1 %v4266_v44  ;;  %v2216_v60 = vpop.f32.mrf.mxu0  ;;  %v2229_v61 = vpop.f32.mrf.mxu1  ;;  %v4406_v43 = vor.u32 %v4856_v41, %v4405_v49  ;;  %v4397_v44 = vld [vmem:[#allocation4 + $0x190] sm:$0xf] }
 0x1a8   :  { %v2192_v24 = vpop.f32.mrf.mxu2  ;;  %v2205_v4 = vpop.f32.mrf.mxu3  ;;  %v4398_v59 = vor.u32 %v4854_v47, %v4397_v44 }
 0x1a9   :  { %2842 = vmatpush.bf16.msra.mxu2 %v4362_v58  ;;  %v4861_v24 = vld [vmem:[#allocation4 + $0x1d4] sm:$0xf]  ;;  %v4431_v4 = vld [vmem:[#allocation4 + $0x1d8] sm:$0xf0] }
 0x1aa   :  { %2821 = vmatmul.bf16.vlgmr.msra.gmra.mxu0 %v5325_v42  ;;  %2834 = vmatmul.bf16.vlgmr.msra.gmra.mxu1 %v5328_v0  ;;  %v661_v42 = vperm.slane %v5340_v6, 2  ;;  %v4839_v0 = vld [vmem:[#allocation4 + $0x124] sm:$0xf] }
 0x1ab   :  { %v4346_v8 = vor.u32 %v4839_v0, %v4343_v7  ;;  %v4859_v7 = vld [vmem:[#allocation4 + $0x1c4] sm:$0xf] }
 0x1ac   :  { %v2165_v9 = vadd.f32 %v5330_v1, %v661_v42  ;;  %v4864_v1 = vld [vmem:[#allocation4 + $0x1e4] sm:$0xf0] }
 0x1ad   :  { %2843 = vmatpush.bf16.msra.mxu2 %v4354_v5  ;;  %v4438_v48 = vor.u32 %v4864_v1, %v4437_v45  ;;  %v4434_v5 = vor.u32 %v4861_v24, %v4431_v4  ;;  %v4851_v45 = vld [vmem:[#allocation4 + $0x184] sm:$0xf]  ;;  %v4869_v4 = vld [vmem:[%s5410_s7 + $0x10] sm:$0xff] }
 0x1ae   :  { %v2178_v16 = vadd.f32 %v5332_v14, %v2165_v9 }
 0x1af   :  { %v2218_v11 = vpop.f32.mrf.mxu0  ;;  %v2231_v12 = vpop.f32.mrf.mxu1  ;;  %2801 = vmatpush.bf16.msrb.mxu3 %v4438_v48  ;;  %v4391_v48 = vld [vmem:[#allocation4 + $0x188] sm:$0xf0] }
 0x1b0   :  { %v2191_v52 = vadd.f32 %v2190_v50, %v2178_v16  ;;  %v4852_v50 = vld [vmem:[#allocation4 + $0x184] sm:$0xf0]  ;;  %v4855_v12 = vld [vmem:[#allocation4 + $0x1a4] sm:$0xf]  ;;  %v4394_v56 = vor.u32 %v4851_v45, %v4391_v48 }
 0x1b1   :  { %2844 = vmatpush.bf16.msra.mxu2 %v4346_v8  ;;  %v4390_v58 = vor.u32 %v4852_v50, %v4389_v23  ;;  %v4423_v8 = vld [vmem:[#allocation4 + $0x1c8] sm:$0xf0]  ;;  %v4410_v18 = vor.u32 %v4855_v12, %v4407_v13 }
 0x1b2   :  { %v2204_v35 = vadd.f32 %v2203_v51, %v2191_v52  ;;  %v4426_v9 = vor.u32 %v4859_v7, %v4423_v8  ;;  %v4880_v7 = vld [vmem:[%s5410_s7 + $0x68] sm:$0xff]  ;;  %v4867_v8 = vld [vmem:[%s5410_s7] sm:$0xff] }
 0x1b3   :  { %2802 = vmatpush.bf16.msrb.mxu3 %v4430_v21 }
 0x1b4   :  { %v2217_v46 = vadd.f32 %v2216_v60, %v2204_v35  ;;  %v4450_v60 = vor.u32 %v4865_v54, %v4447_v57  ;;  %v4399_v35 = vld [vmem:[#allocation4 + $0x198] sm:$0xf0]  ;;  %v4873_v57 = vld [vmem:[%s5410_s7 + $0x30] sm:$0xff] }
 0x1b5   :  { %2845 = vmatpush.bf16.msra.mxu2 %v4338_v15  ;;  %v4882_v54 = vld [vmem:[%s5410_s7 + $0x78] sm:$0xff] }
 0x1b6   :  { %v2230_v31 = vadd.f32 %v2229_v61, %v2217_v46  ;;  %v4863_v61 = vld [vmem:[#allocation4 + $0x1e4] sm:$0xf]  ;;  %3014 = vmatpush.bf16.msrb.mxu1 %v4882_v54 }
 0x1b7   :  { %2803 = vmatpush.bf16.msrb.mxu3 %v4422_v40  ;;  %v4442_v63 = vor.u32 %v4863_v61, %v4439_v62  ;;  %v4871_v62 = vld [vmem:[%s5410_s7 + $0x20] sm:$0xff] }
 0x1b9   :  { %2846 = vmatpush.bf16.msra.mxu2 %v4330_v2  ;;  %v4853_v2 = vld [vmem:[#allocation4 + $0x194] sm:$0xf] }
 0x1ba   :  { %v4402_v1 = vor.u32 %v4853_v2, %v4399_v35 }
 0x1bb   :  { %2804 = vmatpush.bf16.msrb.mxu3 %v4414_v34 }
 0x1bf   :  { %v2255_v22 = vpop.f32.mrf.mxu3  ;;  %2805 = vmatpush.bf16.msrb.mxu3 %v4406_v43 }
 0x1c0   :  { %v2242_v36 = vpop.f32.mrf.mxu2 }
 0x1c1   :  { %v2243_v14 = vadd.f32 %v2242_v36, %v2230_v31 }
 0x1c3   :  { %v2256_v29 = vadd.f32 %v2255_v22, %v2243_v14  ;;  %2806 = vmatpush.bf16.msrb.mxu3 %v4398_v59 }
 0x1c5   :  { %v2365_v3 = vmax.f32 %v2256_v29, 0.0 }
 0x1c7   :  { %v2369_v28 = vpack.c.bf16 %v2365_v3, %v2365_v3  ;;  %v2268_v32 = vpop.f32.mrf.mxu0  ;;  %v2281_v33 = vpop.f32.mrf.mxu1  ;;  %2807 = vmatpush.bf16.msrb.mxu3 %v4390_v58  ;;  %v2435_v3 = vld [vmem:[%s5409_s6] sm:$0x3]  ;;  %v4881_v58 = vld [vmem:[%s5410_s7 + $0x70] sm:$0xff] }
 0x1c8   :  { %v2244_v38 = vpop.f32.mrf.mxu2  ;;  %v2257_v39 = vpop.f32.mrf.mxu3  ;;  %v2269_v52 = vadd.f32 %v2268_v32, %v662_v19  ;;  %v2437_v34 = vperm.slane %v2435_v3, 0  ;;  %v2438_v43 = vperm.slane %v2435_v3, 1  ;;  %3015 = vmatpush.bf16.msrb.mxu1 %v4881_v58 }
 0x1c9   :  { %2795 = vmatmul.bf16.vlgmr.msrb.gmra.mxu2 %v2369_v28 }
 0x1ca   :  { %v2282_v31 = vadd.f32 %v2281_v33, %v2269_v52 }
 0x1cb   :  { %2852 = vmatpush.bf16.msra.mxu3 %v4450_v60  ;;  %v4872_v60 = vld [vmem:[%s5410_s7 + $0x28] sm:$0xff] }
 0x1cc   :  { %3016 = vmatpush.bf16.msrb.mxu1 %v4880_v7 }
 0x1cf   :  { %v2270_v51 = vpop.f32.mrf.mxu0  ;;  %v2283_v53 = vpop.f32.mrf.mxu1  ;;  %2853 = vmatpush.bf16.msra.mxu3 %v4442_v63  ;;  %v4870_v63 = vld [vmem:[%s5410_s7 + $0x18] sm:$0xff] }
 0x1d0   :  { %v4874_v53 = vld [vmem:[%s5410_s7 + $0x38] sm:$0xff] }
 0x1d1   :  { %3001 = vmatpush.bf16.msrb.mxu0 %v4874_v53 }
 0x1d3   :  { %2854 = vmatpush.bf16.msra.mxu3 %v4434_v5 }
 0x1d5   :  { %3002 = vmatpush.bf16.msrb.mxu0 %v4873_v57 }
 0x1d7   :  { %2855 = vmatpush.bf16.msra.mxu3 %v4426_v9  ;;  %v4879_v9 = vld [vmem:[%s5410_s7 + $0x60] sm:$0xff] }
 0x1d8   :  { %3017 = vmatpush.bf16.msrb.mxu1 %v4879_v9 }
 0x1d9   :  { %2847 = vmatmul.bf16.vlgmr.msra.gmra.mxu2 %v2369_v28  ;;  %3003 = vmatpush.bf16.msrb.mxu0 %v4872_v60 }
 0x1db   :  { %2856 = vmatpush.bf16.msra.mxu3 %v4418_v25  ;;  %v4876_v25 = vld [vmem:[%s5410_s7 + $0x48] sm:$0xff] }
 0x1dc   :  { %3018 = vmatpush.bf16.msrb.mxu1 %v4878_v10 }
 0x1dd   :  { %3004 = vmatpush.bf16.msrb.mxu0 %v4871_v62 }
 0x1df   :  { %v2307_v0 = vpop.f32.mrf.mxu3  ;;  %2857 = vmatpush.bf16.msra.mxu3 %v4410_v18 }
 0x1e0   :  { %v2294_v42 = vpop.f32.mrf.mxu2  ;;  %3019 = vmatpush.bf16.msrb.mxu1 %v4877_v17 }
 0x1e1   :  { %v2295_v21 = vadd.f32 %v2294_v42, %v2282_v31  ;;  %3005 = vmatpush.bf16.msrb.mxu0 %v4870_v63 }
 0x1e3   :  { %2858 = vmatpush.bf16.msra.mxu3 %v4402_v1  ;;  %v2308_v36 = vadd.f32 %v2307_v0, %v2295_v21  ;;  %v4868_v0 = vld [vmem:[%s5410_s7 + $0x8] sm:$0xff] }
 0x1e4   :  { %3020 = vmatpush.bf16.msrb.mxu1 %v4876_v25 }
 0x1e5   :  { %3006 = vmatpush.bf16.msrb.mxu0 %v4869_v4 }
 0x1e7   :  { %v2320_v55 = vpop.f32.mrf.mxu0  ;;  %v2333_v11 = vpop.f32.mrf.mxu1  ;;  %2859 = vmatpush.bf16.msra.mxu3 %v4394_v56 }
 0x1e8   :  { %v2296_v15 = vpop.f32.mrf.mxu2  ;;  %v2309_v16 = vpop.f32.mrf.mxu3  ;;  %v2321_v22 = vadd.f32 %v2320_v55, %v2308_v36  ;;  %v4875_v55 = vld [vmem:[%s5410_s7 + $0x40] sm:$0xff] }
 0x1e9   :  { %3007 = vmatpush.bf16.msrb.mxu0 %v4868_v0  ;;  %3021 = vmatpush.bf16.msrb.mxu1 %v4875_v55 }
 0x1ea   :  { %v2334_v14 = vadd.f32 %v2333_v11, %v2321_v22 }
 0x1ed   :  { %3008 = vmatpush.bf16.msrb.mxu0 %v4867_v8 }
 0x1ef   :  { %v2322_v46 = vpop.f32.mrf.mxu0  ;;  %v2335_v20 = vpop.f32.mrf.mxu1 }
 0x1f0   :  { %v4889_v20 = vld [vmem:[%s5411_s8] ss:$0 sm:$0xff] }
 0x1ff   :  { %v2346_v26 = vpop.f32.mrf.mxu2  ;;  %v2359_v27 = vpop.f32.mrf.mxu3 }
 0x200   :  { %v2347_v6 = vadd.f32 %v2346_v26, %v2334_v14 }
 0x202   :  { %v2360_v40 = vadd.f32 %v2359_v27, %v2347_v6 }
 0x204   :  { %v2366_v29 = vmax.f32 %v2360_v40, 0.0 }
 0x206   :  { %v2370_v37 = vpack.c.bf16 %v2366_v29, %v2366_v29 }
 0x207   :  { %v2770_v30 = vpop.f32.mrf.mxu0  ;;  %v2348_v28 = vpop.f32.mrf.mxu2 }
 0x208   :  { %v2361_v32 = vpop.f32.mrf.mxu3  ;;  %2808 = vmatmul.bf16.vlgmr.msrb.gmra.mxu3 %v2370_v37  ;;  %v2771_v33 = vadd.f32 %v2770_v30, %v2437_v34  ;;  %v2783_v38 = vpop.f32.mrf.mxu1 }
 0x20a   :  { %v2784_v49 = vadd.f32 %v2783_v38, %v2771_v33 }
 0x20f   :  { %v2772_v39 = vpop.f32.mrf.mxu0 }
 0x210   :  { %v2785_v41 = vpop.f32.mrf.mxu1 }
 0x218   :  { %2860 = vmatmul.bf16.vlgmr.msra.gmra.mxu3 %v2370_v37 }
 0x227   :  { %v2822_v44 = vpop.f32.mrf.mxu0  ;;  %v2835_v47 = vpop.f32.mrf.mxu1 }
 0x228   :  { %v2823_v59 = vadd.f32 %v2822_v44, %v2438_v43 }
 0x22a   :  { %v2836_v23 = vadd.f32 %v2835_v47, %v2823_v59 }
 0x22f   :  { %v2824_v50 = vpop.f32.mrf.mxu0  ;;  %v2837_v51 = vpop.f32.mrf.mxu1 }
 0x24c   :  { %v2796_v61 = vpop.f32.mrf.mxu2 }
 0x24d   :  { %v2797_v11 = vadd.f32 %v2796_v61, %v2784_v49 }
 0x254   :  { %v2798_v24 = vpop.f32.mrf.mxu2 }
 0x25c   :  { %v2848_v5 = vpop.f32.mrf.mxu2 }
 0x25d   :  { %v2849_v19 = vadd.f32 %v2848_v5, %v2836_v23 }
 0x264   :  { %v2850_v42 = vpop.f32.mrf.mxu2 }
 0x28b   :  { %v2809_v12 = vpop.f32.mrf.mxu3 }
 0x28c   :  { %v2810_v13 = vadd.f32 %v2809_v12, %v2797_v11 }
 0x28e   :  { %v2865_v15 = vmax.f32 %v2810_v13, 0.0 }
 0x290   :  { %v2867_v16 = vpack.c.bf16 %v2865_v15, %v2865_v15 }
 0x292   :  { %3009 = vmatmul.bf16.vlgmr.msrb.gmra.mxu0 %v2867_v16 }
 0x293   :  { %v2811_v18 = vpop.f32.mrf.mxu3 }
 0x29b   :  { %v2861_v52 = vpop.f32.mrf.mxu3 }
 0x29c   :  { %v2862_v2 = vadd.f32 %v2861_v52, %v2849_v19 }
 0x29e   :  { %v2866_v35 = vmax.f32 %v2862_v2, 0.0 }
 0x2a0   :  { %v2868_v45 = vpack.c.bf16 %v2866_v35, %v2866_v35 }
 0x2a2   :  { %3022 = vmatmul.bf16.vlgmr.msrb.gmra.mxu1 %v2868_v45 }
 0x2a3   :  { %v2863_v1 = vpop.f32.mrf.mxu3 }
 0x30f   :  { %v3010_v48 = vpop.f32.mrf.mxu0 }
 0x310   :  { %v3011_v56 = vadd.f32 %v4889_v20, %v3010_v48 }
 0x317   :  { %v3012_v46 = vpop.f32.mrf.mxu0 }
 0x31f   :  { %v3023_v31 = vpop.f32.mrf.mxu1 }
 0x320   :  { %v3024_v21 = vadd.f32 %v3023_v31, %v3011_v56 }
 0x322   :  { %3028 = vst.msk [vmem:[%s5412_s9] sm:$0xff] %vm3027_vm1, %v3024_v21 }
 0x327   :  { %v3025_v36 = vpop.f32.mrf.mxu1 }
 0x328   :  { %3033 = vsyncpa [#allocation3], 1 }
 0x329   :  { %3034 = vsyncpa [#allocation5], 1 }

</bundles_post_ra>
